<compile_context>
chip_gen: v6e
topology: v6e:2x2x1
jax: 0.10.0
libtpu: 0.0.40
codegen_flags: <defaults>
</compile_context>

<pallas_src>
import math
import functools

import jax
import jax.numpy as jnp
from jax import lax
from jax.experimental import pallas as pl
from jax.experimental.pallas import tpu as pltpu

LOG2 = math.log(2.0)
BN_EPS = 1e-5


def _softplus(v):
    return jnp.maximum(v, 0.0) + jnp.log1p(jnp.exp(-jnp.abs(v)))


def _mm(a, b):
    return jnp.dot(a, b, preferred_element_type=jnp.float32)


def gcn_infomax_kernel(num_layers, tile_n, n_buf, stream,
                       x_ref, pool_ref, batch_ref, adj_ref, *rest):
    n_params = 4 * num_layers + 14
    params = rest[:n_params]
    out_ref = rest[n_params]
    scratch = rest[n_params + 1:]
    if stream:
        adj_buf, dma_sem, pre_ref, h_ref, m_ref, y_ref = scratch
    else:
        pre_ref, h_ref, m_ref, y_ref = scratch
        adj_buf = dma_sem = None

    gin = params[:4 * num_layers]
    gd = params[4 * num_layers:4 * num_layers + 7]
    ld = params[4 * num_layers + 7:]
    gd_w1s, gd_b1, gd_w2, gd_b2, gd_w3, gd_b3, gd_bs = gd
    ld_w1s, ld_b1, ld_w2, ld_b2, ld_w3, ld_b3, ld_bs = ld

    n_nodes = adj_ref.shape[0]
    n_graphs = pool_ref.shape[0]
    hid = pre_ref.shape[1]
    emb = gd_w1s.shape[0]                 # embedding_dim = L * H
    n_tiles = n_nodes // tile_n
    total_steps = num_layers * n_tiles

    def adj_dma(r, slot):
        row = r * tile_n
        if not isinstance(row, int):
            row = pl.multiple_of(row, tile_n)
        return pltpu.make_async_copy(
            adj_ref.at[pl.ds(row, tile_n), :],
            adj_buf.at[slot],
            dma_sem.at[slot])

    if stream:
        # Prime the prefetch pipeline (n_buf - 1 tiles in flight).
        for s in range(min(n_buf - 1, total_steps)):
            adj_dma(s % n_tiles, s % n_buf).start()

    # ---------------- encoder: L x (GINConv -> ReLU -> BatchNorm) -----------
    for layer in range(num_layers):
        w1 = gin[4 * layer][...]
        b1 = gin[4 * layer + 1][...]
        w2 = gin[4 * layer + 2][...]
        b2 = gin[4 * layer + 3][...]
        lo = layer * hid

        def tile_body(r, carry, layer=layer, w1=w1, b1=b1, w2=w2, b2=b2):
            f_sum, f_sq = carry
            row = pl.multiple_of(r * tile_n, tile_n)
            h_in = x_ref[...] if layer == 0 else h_ref[...]     # bf16 layer input
            if stream:
                step = layer * n_tiles + r
                slot = step % n_buf
                adj_dma(r, slot).wait()
                nxt = step + (n_buf - 1)

                @pl.when(nxt < total_steps)
                def _():
                    adj_dma(nxt % n_tiles, nxt % n_buf).start()

                adj_t = adj_buf[slot].astype(jnp.bfloat16)      # int8 -> bf16
            else:
                adj_t = adj_ref[pl.ds(row, tile_n), :].astype(jnp.bfloat16)
            # GINConv (eps=0): self + neighbour sum folded into adj = A + I.
            agg = _mm(adj_t, h_in)                                           # f32
            t = jnp.maximum(_mm(agg.astype(jnp.bfloat16), w1) + b1, 0.0)     # MLP
            t = jnp.maximum(_mm(t.astype(jnp.bfloat16), w2) + b2, 0.0)       # + outer ReLU
            pre_ref[pl.ds(row, tile_n), :] = t
            f_sum = f_sum + jnp.sum(t, axis=0, keepdims=True)
            f_sq = f_sq + jnp.sum(t * t, axis=0, keepdims=True)
            return f_sum, f_sq

        zero = jnp.zeros((1, hid), jnp.float32)
        f_sum, f_sq = lax.fori_loop(0, n_tiles, tile_body, (zero, zero))

        # BatchNorm1d, training-mode biased batch stats, gamma=1 / beta=0,
        # single-pass statistics with variance clamped at 0 (cancellation fix).
        mean = f_sum / n_nodes
        var = jnp.maximum(f_sq / n_nodes - mean * mean, 0.0)
        inv = lax.rsqrt(var + BN_EPS)
        h_bf = ((pre_ref[...] - mean) * inv).astype(jnp.bfloat16)
        h_ref[...] = h_bf                              # next layer's MXU operand
        m_ref[:, lo:lo + hid] = h_bf                   # M = concat_l x_l (bf16)
        pooled = _mm(pool_ref[...], h_bf)              # global_add_pool [B, H]
        y_ref[:, lo:lo + hid] = pooled.astype(jnp.bfloat16)

    # ---------------- FF heads + JSD loss ------------------------------------
    def ff_tail(first, short, b1_, w2_, b2_, w3_, b3_, bs_):
        hh = jnp.maximum(first + b1_[...], 0.0)
        hh = jnp.maximum(_mm(hh.astype(jnp.bfloat16), w2_[...]) + b2_[...], 0.0)
        hh = jnp.maximum(_mm(hh.astype(jnp.bfloat16), w3_[...]) + b3_[...], 0.0)
        return hh + short + bs_[...]

    # global_d on y (tiny): packed [emb, 2*emb] first-layer + shortcut weight.
    g_both = _mm(y_ref[...], gd_w1s[...])
    g_enc = ff_tail(g_both[:, :emb], g_both[:, emb:],
                    gd_b1, gd_w2, gd_b2, gd_w3, gd_b3, gd_bs)
    g_enc_bf = g_enc.astype(jnp.bfloat16)

    # local_d + loss tiled over node rows: no [N, emb] / [N, B] temporaries.
    def loss_body(r, carry):
        ep, en = carry
        row = pl.multiple_of(r * tile_n, tile_n)
        m_t = m_ref[pl.ds(row, tile_n), :]                        # [T, emb] bf16
        l_both = _mm(m_t, ld_w1s[...])                            # [T, 2*emb] f32
        l_enc = ff_tail(l_both[:, :emb], l_both[:, emb:],
                        ld_b1, ld_w2, ld_b2, ld_w3, ld_b3, ld_bs)
        res = lax.dot_general(l_enc.astype(jnp.bfloat16), g_enc_bf,
                              (((1,), (1,)), ((), ())),
                              preferred_element_type=jnp.float32)  # [T, B]
        bt = batch_ref[pl.ds(row, tile_n), :]                     # [T, 1] int32
        gid = lax.broadcasted_iota(jnp.int32, (tile_n, n_graphs), 1)
        pos = (bt == gid).astype(jnp.float32)                     # in-kernel pos_mask
        sp = _softplus(-res)
        # JSD expectations with folded masks (masked entries contribute 0).
        ep = ep + jnp.sum(pos * (LOG2 - sp), keepdims=True)
        en = en + jnp.sum((1.0 - pos) * (sp + res - LOG2), keepdims=True)
        return ep, en

    z = jnp.zeros((1, 1), jnp.float32)
    ep, en = lax.fori_loop(0, n_tiles, loss_body, (z, z))
    e_pos = ep / n_nodes
    e_neg = en / (n_nodes * (n_graphs - 1))
    out_ref[...] = e_neg - e_pos


def _nbytes(a):
    return int(a.size) * a.dtype.itemsize


def _physical_vmem_bytes():
    try:
        info = pltpu.get_tpu_info()
        for attr in ("vmem_capacity_bytes", "vmem_size_bytes", "vmem_bytes"):
            v = getattr(info, attr, None)
            if v:
                return int(v)
    except Exception:
        pass
    return 64 << 20   # conservative fallback (v7x per-TC VMEM)


def gcn_infomax_forward(x, adj_i8, pool, batch_col,
                        gin_params, gd_params, ld_params,
                        *, tile_n=None, force_stream=None):
    n = adj_i8.shape[0]
    b = pool.shape[0]
    assert b >= 2, "JSD negative expectation divides by (num_graphs - 1)"
    num_layers = len(gin_params) // 4
    hid = gin_params[2].shape[0]            # layer-0 W2 is [H, H]
    emb = hid * num_layers                  # embedding_dim

    # Pack FF first-layer + shortcut weights along the lane axis: one matmul
    # with a 2*emb-wide RHS instead of two.
    gd_pack = [jnp.concatenate([gd_params[0], gd_params[6]], axis=1),
               gd_params[1], gd_params[2], gd_params[3],
               gd_params[4], gd_params[5], gd_params[7]]
    ld_pack = [jnp.concatenate([ld_params[0], ld_params[6]], axis=1),
               ld_params[1], ld_params[2], ld_params[3],
               ld_params[4], ld_params[5], ld_params[7]]
    param_list = list(gin_params) + gd_pack + ld_pack

    phys = _physical_vmem_bytes()
    budget = int(0.85 * phys)               # headroom for compiler scratch

    resident_core = sum(_nbytes(t) for t in [x, pool, batch_col] + param_list)
    scratch_fixed = n * hid * 4 + n * hid * 2 + n * emb * 2 + b * emb * 2
    adj_bytes = _nbytes(adj_i8)

    # Generation-aware adj residency: cache int8 adj in VMEM when it fits
    # (128 MiB v5e/v6e), else stream row tiles from HBM (v7x / very large N).
    can_reside = (resident_core + scratch_fixed + adj_bytes) <= int(0.6 * budget)
    stream = (not can_reside) if force_stream is None else bool(force_stream)

    n_buf = 4   # prefetch depth: keeps DMAs in flight across the BN/FF epilogue
    if tile_n is None:
        tile_n = n
        cands = (512, 384, 256, 128, 64, 32) if stream else (512, 256, 128, 64, 32, 16, 8)
        for cand in cands:
            if n % cand != 0:
                continue
            if stream and n_buf * cand * n > max(budget // 4, n_buf * 32 * n):
                continue
            tile_n = cand
            break
    assert n % tile_n == 0
    if stream:
        assert tile_n % 32 == 0 or tile_n == n, "int8 adj tiles must be 32-row aligned"

    adj_scratch = n_buf * tile_n * n if stream else 0
    interm = (n * hid * 6 + 2 * tile_n * n * 2
              + 4 * tile_n * 2 * emb * 4 + 4 * tile_n * b * 4 + 8 * b * emb * 4)
    need = resident_core + scratch_fixed + adj_scratch + interm
    if not stream:
        need += adj_bytes
    vmem_limit = int(min(budget, max(32 << 20, int(1.5 * need))))

    # Rough cost hint for XLA's scheduler.
    flops = 0
    f_prev = x.shape[1]
    for _ in range(num_layers):
        flops += 2 * n * n * f_prev
        flops += 2 * n * f_prev * hid + 2 * n * hid * hid
        flops += 2 * b * n * hid
        f_prev = hid
    flops += 2 * (n + b) * emb * (2 * emb) + 4 * (n + b) * emb * emb
    flops += 2 * n * emb * b
    cost = pl.CostEstimate(
        flops=int(flops),
        transcendentals=int(n * b),
        bytes_accessed=int((num_layers if stream else 1) * adj_bytes
                           + resident_core + 4))

    in_specs = ([pl.BlockSpec(memory_space=pltpu.MemorySpace.VMEM)] * 3
                + [pl.BlockSpec(memory_space=(pl.ANY if stream
                                              else pltpu.MemorySpace.VMEM))]
                + [pl.BlockSpec(memory_space=pltpu.MemorySpace.VMEM)]
                * len(param_list))

    scratch_shapes = []
    if stream:
        scratch_shapes += [pltpu.VMEM((n_buf, tile_n, n), jnp.int8),  # adj tiles
                           pltpu.SemaphoreType.DMA((n_buf,))]
    scratch_shapes += [pltpu.VMEM((n, hid), jnp.float32),    # pre-BN activations
                       pltpu.VMEM((n, hid), jnp.bfloat16),   # current layer h
                       pltpu.VMEM((n, emb), jnp.bfloat16),   # M = concat_l x_l
                       pltpu.VMEM((b, emb), jnp.bfloat16)]   # y = concat_l pool_l

    kern = functools.partial(gcn_infomax_kernel, num_layers, tile_n, n_buf, stream)
    out = pl.pallas_call(
        kern,
        out_shape=jax.ShapeDtypeStruct((1, 1), jnp.float32),
        in_specs=in_specs,
        out_specs=pl.BlockSpec(memory_space=pltpu.MemorySpace.VMEM),
        scratch_shapes=scratch_shapes,
        compiler_params=pltpu.CompilerParams(vmem_limit_bytes=vmem_limit),
        cost_estimate=cost,
    )(x, pool, batch_col, adj_i8, *param_list)
    return out[0, 0]


def _xavier(key, fan_in, fan_out):
    bound = math.sqrt(6.0 / (fan_in + fan_out))
    w = jax.random.uniform(key, (fan_in, fan_out), jnp.float32, -bound, bound)
    return w.astype(jnp.bfloat16)


def _make_ff_params(key, dim):
    ks = jax.random.split(key, 4)
    params = []
    for k in ks[:3]:
        params.append(_xavier(k, dim, dim))
        params.append(jnp.zeros((1, dim), jnp.float32))
    params.append(_xavier(ks[3], dim, dim))          # linear_shortcut weight
    params.append(jnp.zeros((1, dim), jnp.float32))  # linear_shortcut bias
    return params


if __name__ == "__main__":
    # Small synthetic problem consistent with the module's forward:
    #   dataset_num_features = 16, hidden_dim = 32, num_gc_layers = 2
    #   N = 128 nodes, B = 8 graphs (16 nodes each), E = 512 intra-graph edges.
    F_IN, HID, LAYERS = 16, 32, 2
    D = HID * LAYERS
    B, NPG = 8, 16
    N = B * NPG
    E = 512

    key = jax.random.PRNGKey(0)
    kx, ksrc, kdst, kgin, kgd, kld = jax.random.split(key, 6)

    x = jax.random.normal(kx, (N, F_IN), jnp.float32).astype(jnp.bfloat16)

    batch = jnp.repeat(jnp.arange(B, dtype=jnp.int32), NPG)
    graph_of_edge = jnp.repeat(jnp.arange(B, dtype=jnp.int32), E // B)
    src = jax.random.randint(ksrc, (E,), 0, NPG, jnp.int32) + graph_of_edge * NPG
    dst = jax.random.randint(kdst, (E,), 0, NPG, jnp.int32) + graph_of_edge * NPG

    # glue: dense adjacency (messages src->dst) + identity for (1+eps)*x_i, eps=0.
    # Entries are small integer counts -> exact in int8.
    adj = (jnp.zeros((N, N), jnp.float32).at[dst, src].add(1.0)
           + jnp.eye(N, dtype=jnp.float32))
    adj_i8 = adj.astype(jnp.int8)
    # glue: global_add_pool as a [B, N] one-hot matmul (0/1, exact in bf16)
    pool = jnp.zeros((B, N), jnp.float32).at[batch, jnp.arange(N)].set(1.0)
    pool = pool.astype(jnp.bfloat16)
    # glue: batch assignment vector; pos_mask is rebuilt in-kernel via iota compare
    batch_col = batch.reshape(N, 1)

    # Encoder GIN params: per layer [W1, b1, W2, b2], xavier-uniform / zero bias
    gin_params = []
    gin_keys = jax.random.split(kgin, 2 * LAYERS)
    for i in range(LAYERS):
        fin = F_IN if i == 0 else HID
        gin_params.append(_xavier(gin_keys[2 * i], fin, HID))
        gin_params.append(jnp.zeros((1, HID), jnp.float32))
        gin_params.append(_xavier(gin_keys[2 * i + 1], HID, HID))
        gin_params.append(jnp.zeros((1, HID), jnp.float32))

    gd_params = _make_ff_params(kgd, D)  # global_d
    ld_params = _make_ff_params(kld, D)  # local_d

    # Streamed path (adj kept in HBM, int8 row tiles, 4-deep prefetch);
    # tile_n=64 -> 2 tiles per layer so the DMA pipeline is exercised.
    loss_stream = gcn_infomax_forward(x, adj_i8, pool, batch_col,
                                      gin_params, gd_params, ld_params,
                                      tile_n=64, force_stream=True)
    # VMEM-resident path (what the heuristic picks on 128 MiB parts).
    loss_resident = gcn_infomax_forward(x, adj_i8, pool, batch_col,
                                        gin_params, gd_params, ld_params,
                                        force_stream=False)
    loss_stream = jax.block_until_ready(loss_stream)
    loss_resident = jax.block_until_ready(loss_resident)
    assert jnp.isfinite(loss_stream) and jnp.isfinite(loss_resident)
    assert jnp.allclose(loss_stream, loss_resident, rtol=1e-3, atol=1e-3), (
        loss_stream, loss_resident)
    print("KERNEL_OK")
</pallas_src>

<mosaic_0001>
module attributes {stable_mosaic.version = 11 : i64} {
  func.func @gcn_infomax_kernel(%arg0: memref<128x16xbf16, #tpu.memory_space<vmem>>, %arg1: memref<8x128xbf16, #tpu.memory_space<vmem>>, %arg2: memref<128x1xi32, #tpu.memory_space<vmem>>, %arg3: memref<128x128xi8, #tpu.memory_space<any>>, %arg4: memref<16x32xbf16, #tpu.memory_space<vmem>>, %arg5: memref<1x32xf32, #tpu.memory_space<vmem>>, %arg6: memref<32x32xbf16, #tpu.memory_space<vmem>>, %arg7: memref<1x32xf32, #tpu.memory_space<vmem>>, %arg8: memref<32x32xbf16, #tpu.memory_space<vmem>>, %arg9: memref<1x32xf32, #tpu.memory_space<vmem>>, %arg10: memref<32x32xbf16, #tpu.memory_space<vmem>>, %arg11: memref<1x32xf32, #tpu.memory_space<vmem>>, %arg12: memref<64x128xbf16, #tpu.memory_space<vmem>>, %arg13: memref<1x64xf32, #tpu.memory_space<vmem>>, %arg14: memref<64x64xbf16, #tpu.memory_space<vmem>>, %arg15: memref<1x64xf32, #tpu.memory_space<vmem>>, %arg16: memref<64x64xbf16, #tpu.memory_space<vmem>>, %arg17: memref<1x64xf32, #tpu.memory_space<vmem>>, %arg18: memref<1x64xf32, #tpu.memory_space<vmem>>, %arg19: memref<64x128xbf16, #tpu.memory_space<vmem>>, %arg20: memref<1x64xf32, #tpu.memory_space<vmem>>, %arg21: memref<64x64xbf16, #tpu.memory_space<vmem>>, %arg22: memref<1x64xf32, #tpu.memory_space<vmem>>, %arg23: memref<64x64xbf16, #tpu.memory_space<vmem>>, %arg24: memref<1x64xf32, #tpu.memory_space<vmem>>, %arg25: memref<1x64xf32, #tpu.memory_space<vmem>>, %arg26: memref<1x1xf32, #tpu.memory_space<vmem>>, %arg27: memref<4x64x128xi8, #tpu.memory_space<vmem>>, %arg28: memref<4x!tpu.dma_semaphore, #tpu.memory_space<semaphore_mem>>, %arg29: memref<128x32xf32, #tpu.memory_space<vmem>>, %arg30: memref<128x32xbf16, #tpu.memory_space<vmem>>, %arg31: memref<128x64xbf16, #tpu.memory_space<vmem>>, %arg32: memref<8x64xbf16, #tpu.memory_space<vmem>>) attributes {dimension_semantics = [], scalar_prefetch = 0 : i64, scratch_operands = 6 : i64, tpu.core_type = #tpu.core_type<tc>} {
    %c0_i32 = arith.constant 0 : i32
    %c0_i32_0 = arith.constant 0 : i32
    %c0_i32_1 = arith.constant 0 : i32
    %c0_i32_2 = arith.constant 0 : i32
    %0 = tpu.memref_slice %arg3[%c0_i32_1, %c0_i32_2] : memref<128x128xi8, #tpu.memory_space<any>> -> memref<64x128xi8, #tpu.memory_space<any>>
    %c0_i32_3 = arith.constant 0 : i32
    %c0_i32_4 = arith.constant 0 : i32
    %1 = tpu.memref_slice %arg27[%c0_i32, %c0_i32_3, %c0_i32_4] : memref<4x64x128xi8, #tpu.memory_space<vmem>> -> memref<1x64x128xi8, #tpu.memory_space<vmem>>
    %2 = tpu.memref_squeeze %1 : memref<1x64x128xi8, #tpu.memory_space<vmem>> -> memref<64x128xi8, #tpu.memory_space<vmem>>
    %3 = tpu.memref_slice %arg28[%c0_i32_0] : memref<4x!tpu.dma_semaphore, #tpu.memory_space<semaphore_mem>> -> memref<1x!tpu.dma_semaphore, #tpu.memory_space<semaphore_mem>>
    %4 = tpu.memref_squeeze %3 : memref<1x!tpu.dma_semaphore, #tpu.memory_space<semaphore_mem>> -> memref<!tpu.dma_semaphore, #tpu.memory_space<semaphore_mem>>
    tpu.enqueue_dma source(%0 : memref<64x128xi8, #tpu.memory_space<any>>) target(%2 : memref<64x128xi8, #tpu.memory_space<vmem>>) target_semaphore(%4 : memref<!tpu.dma_semaphore, #tpu.memory_space<semaphore_mem>>)
    %c1_i32 = arith.constant 1 : i32
    %c1_i32_5 = arith.constant 1 : i32
    %c64_i32 = arith.constant 64 : i32
    %c0_i32_6 = arith.constant 0 : i32
    %5 = tpu.memref_slice %arg3[%c64_i32, %c0_i32_6] : memref<128x128xi8, #tpu.memory_space<any>> -> memref<64x128xi8, #tpu.memory_space<any>>
    %c0_i32_7 = arith.constant 0 : i32
    %c0_i32_8 = arith.constant 0 : i32
    %6 = tpu.memref_slice %arg27[%c1_i32, %c0_i32_7, %c0_i32_8] : memref<4x64x128xi8, #tpu.memory_space<vmem>> -> memref<1x64x128xi8, #tpu.memory_space<vmem>>
    %7 = tpu.memref_squeeze %6 : memref<1x64x128xi8, #tpu.memory_space<vmem>> -> memref<64x128xi8, #tpu.memory_space<vmem>>
    %8 = tpu.memref_slice %arg28[%c1_i32_5] : memref<4x!tpu.dma_semaphore, #tpu.memory_space<semaphore_mem>> -> memref<1x!tpu.dma_semaphore, #tpu.memory_space<semaphore_mem>>
    %9 = tpu.memref_squeeze %8 : memref<1x!tpu.dma_semaphore, #tpu.memory_space<semaphore_mem>> -> memref<!tpu.dma_semaphore, #tpu.memory_space<semaphore_mem>>
    tpu.enqueue_dma source(%5 : memref<64x128xi8, #tpu.memory_space<any>>) target(%7 : memref<64x128xi8, #tpu.memory_space<vmem>>) target_semaphore(%9 : memref<!tpu.dma_semaphore, #tpu.memory_space<semaphore_mem>>)
    %c2_i32 = arith.constant 2 : i32
    %c2_i32_9 = arith.constant 2 : i32
    %c0_i32_10 = arith.constant 0 : i32
    %c0_i32_11 = arith.constant 0 : i32
    %10 = tpu.memref_slice %arg3[%c0_i32_10, %c0_i32_11] : memref<128x128xi8, #tpu.memory_space<any>> -> memref<64x128xi8, #tpu.memory_space<any>>
    %c0_i32_12 = arith.constant 0 : i32
    %c0_i32_13 = arith.constant 0 : i32
    %11 = tpu.memref_slice %arg27[%c2_i32, %c0_i32_12, %c0_i32_13] : memref<4x64x128xi8, #tpu.memory_space<vmem>> -> memref<1x64x128xi8, #tpu.memory_space<vmem>>
    %12 = tpu.memref_squeeze %11 : memref<1x64x128xi8, #tpu.memory_space<vmem>> -> memref<64x128xi8, #tpu.memory_space<vmem>>
    %13 = tpu.memref_slice %arg28[%c2_i32_9] : memref<4x!tpu.dma_semaphore, #tpu.memory_space<semaphore_mem>> -> memref<1x!tpu.dma_semaphore, #tpu.memory_space<semaphore_mem>>
    %14 = tpu.memref_squeeze %13 : memref<1x!tpu.dma_semaphore, #tpu.memory_space<semaphore_mem>> -> memref<!tpu.dma_semaphore, #tpu.memory_space<semaphore_mem>>
    tpu.enqueue_dma source(%10 : memref<64x128xi8, #tpu.memory_space<any>>) target(%12 : memref<64x128xi8, #tpu.memory_space<vmem>>) target_semaphore(%14 : memref<!tpu.dma_semaphore, #tpu.memory_space<semaphore_mem>>)
    %c0 = arith.constant 0 : index
    %c0_14 = arith.constant 0 : index
    %15 = vector.load %arg4[%c0, %c0_14] : memref<16x32xbf16, #tpu.memory_space<vmem>>, vector<16x32xbf16>
    %c0_15 = arith.constant 0 : index
    %c0_16 = arith.constant 0 : index
    %16 = vector.load %arg5[%c0_15, %c0_16] : memref<1x32xf32, #tpu.memory_space<vmem>>, vector<1x32xf32>
    %c0_17 = arith.constant 0 : index
    %c0_18 = arith.constant 0 : index
    %17 = vector.load %arg6[%c0_17, %c0_18] : memref<32x32xbf16, #tpu.memory_space<vmem>>, vector<32x32xbf16>
    %c0_19 = arith.constant 0 : index
    %c0_20 = arith.constant 0 : index
    %18 = vector.load %arg7[%c0_19, %c0_20] : memref<1x32xf32, #tpu.memory_space<vmem>>, vector<1x32xf32>
    %cst = arith.constant 0.000000e+00 : f32
    %19 = vector.broadcast %cst : f32 to vector<1x32xf32>
    %c0_i32_21 = arith.constant 0 : i32
    %c2_i32_22 = arith.constant 2 : i32
    %20 = arith.addi %c0_i32_21, %c2_i32_22 : i32
    %c1_i32_23 = arith.constant 1 : i32
    %21:2 = scf.for %arg33 = %c0_i32_21 to %20 step %c1_i32_23 iter_args(%arg34 = %19, %arg35 = %19) -> (vector<1x32xf32>, vector<1x32xf32>)  : i32 {
      %c64_i32_98 = arith.constant 64 : i32
      %115 = arith.muli %arg33, %c64_i32_98 : i32
      %116 = tpu.assume_multiple %115, 64 : i32
      %c0_99 = arith.constant 0 : index
      %c0_100 = arith.constant 0 : index
      %117 = vector.load %arg0[%c0_99, %c0_100] : memref<128x16xbf16, #tpu.memory_space<vmem>>, vector<128x16xbf16>
      %c0_i32_101 = arith.constant 0 : i32
      %118 = arith.addi %c0_i32_101, %arg33 : i32
      %c4_i32 = arith.constant 4 : i32
      %c0_i32_102 = arith.constant 0 : i32
      %119 = arith.cmpi eq, %c4_i32, %c0_i32_102 : i32
      %c1_i32_103 = arith.constant 1 : i32
      %120 = arith.select %119, %c1_i32_103, %c4_i32 : i32
      %121 = arith.remsi %118, %120 : i32
      %c0_i32_104 = arith.constant 0 : i32
      %122 = arith.cmpi ne, %121, %c0_i32_104 : i32
      %c0_i32_105 = arith.constant 0 : i32
      %123 = arith.cmpi slt, %121, %c0_i32_105 : i32
      %c0_i32_106 = arith.constant 0 : i32
      %124 = arith.cmpi slt, %120, %c0_i32_106 : i32
      %125 = arith.xori %123, %124 : i1
      %126 = arith.andi %125, %122 : i1
      %127 = arith.addi %121, %120 : i32
      %128 = arith.select %126, %127, %121 : i32
      %c64_i32_107 = arith.constant 64 : i32
      %129 = arith.muli %arg33, %c64_i32_107 : i32
      %130 = tpu.assume_multiple %129, 64 : i32
      %c0_i32_108 = arith.constant 0 : i32
      %131 = tpu.memref_slice %arg3[%130, %c0_i32_108] : memref<128x128xi8, #tpu.memory_space<any>> -> memref<64x128xi8, #tpu.memory_space<any>>
      %c0_i32_109 = arith.constant 0 : i32
      %c0_i32_110 = arith.constant 0 : i32
      %132 = tpu.memref_slice %arg27[%128, %c0_i32_109, %c0_i32_110] : memref<4x64x128xi8, #tpu.memory_space<vmem>> -> memref<1x64x128xi8, #tpu.memory_space<vmem>>
      %133 = tpu.memref_squeeze %132 : memref<1x64x128xi8, #tpu.memory_space<vmem>> -> memref<64x128xi8, #tpu.memory_space<vmem>>
      %134 = tpu.memref_slice %arg28[%128] : memref<4x!tpu.dma_semaphore, #tpu.memory_space<semaphore_mem>> -> memref<1x!tpu.dma_semaphore, #tpu.memory_space<semaphore_mem>>
      %135 = tpu.memref_squeeze %134 : memref<1x!tpu.dma_semaphore, #tpu.memory_space<semaphore_mem>> -> memref<!tpu.dma_semaphore, #tpu.memory_space<semaphore_mem>>
      tpu.wait_dma2 semaphore(%135 : memref<!tpu.dma_semaphore, #tpu.memory_space<semaphore_mem>>) src(%131 : memref<64x128xi8, #tpu.memory_space<any>>) dst(%133 : memref<64x128xi8, #tpu.memory_space<vmem>>)
      %c3_i32 = arith.constant 3 : i32
      %136 = arith.addi %118, %c3_i32 : i32
      %c4_i32_111 = arith.constant 4 : i32
      %137 = arith.cmpi slt, %136, %c4_i32_111 : i32
      %138 = arith.extui %137 : i1 to i32
      %c0_i32_112 = arith.constant 0 : i32
      %139 = arith.cmpi ne, %138, %c0_i32_112 : i32
      scf.if %139 {
        %c2_i32_123 = arith.constant 2 : i32
        %c0_i32_124 = arith.constant 0 : i32
        %166 = arith.cmpi eq, %c2_i32_123, %c0_i32_124 : i32
        %c1_i32_125 = arith.constant 1 : i32
        %167 = arith.select %166, %c1_i32_125, %c2_i32_123 : i32
        %168 = arith.remsi %136, %167 : i32
        %c0_i32_126 = arith.constant 0 : i32
        %169 = arith.cmpi ne, %168, %c0_i32_126 : i32
        %c0_i32_127 = arith.constant 0 : i32
        %170 = arith.cmpi slt, %168, %c0_i32_127 : i32
        %c0_i32_128 = arith.constant 0 : i32
        %171 = arith.cmpi slt, %167, %c0_i32_128 : i32
        %172 = arith.xori %170, %171 : i1
        %173 = arith.andi %172, %169 : i1
        %174 = arith.addi %168, %167 : i32
        %175 = arith.select %173, %174, %168 : i32
        %c4_i32_129 = arith.constant 4 : i32
        %c0_i32_130 = arith.constant 0 : i32
        %176 = arith.cmpi eq, %c4_i32_129, %c0_i32_130 : i32
        %c1_i32_131 = arith.constant 1 : i32
        %177 = arith.select %176, %c1_i32_131, %c4_i32_129 : i32
        %178 = arith.remsi %136, %177 : i32
        %c0_i32_132 = arith.constant 0 : i32
        %179 = arith.cmpi ne, %178, %c0_i32_132 : i32
        %c0_i32_133 = arith.constant 0 : i32
        %180 = arith.cmpi slt, %178, %c0_i32_133 : i32
        %c0_i32_134 = arith.constant 0 : i32
        %181 = arith.cmpi slt, %177, %c0_i32_134 : i32
        %182 = arith.xori %180, %181 : i1
        %183 = arith.andi %182, %179 : i1
        %184 = arith.addi %178, %177 : i32
        %185 = arith.select %183, %184, %178 : i32
        %c64_i32_135 = arith.constant 64 : i32
        %186 = arith.muli %175, %c64_i32_135 : i32
        %187 = tpu.assume_multiple %186, 64 : i32
        %c0_i32_136 = arith.constant 0 : i32
        %188 = tpu.memref_slice %arg3[%187, %c0_i32_136] : memref<128x128xi8, #tpu.memory_space<any>> -> memref<64x128xi8, #tpu.memory_space<any>>
        %c0_i32_137 = arith.constant 0 : i32
        %c0_i32_138 = arith.constant 0 : i32
        %189 = tpu.memref_slice %arg27[%185, %c0_i32_137, %c0_i32_138] : memref<4x64x128xi8, #tpu.memory_space<vmem>> -> memref<1x64x128xi8, #tpu.memory_space<vmem>>
        %190 = tpu.memref_squeeze %189 : memref<1x64x128xi8, #tpu.memory_space<vmem>> -> memref<64x128xi8, #tpu.memory_space<vmem>>
        %191 = tpu.memref_slice %arg28[%185] : memref<4x!tpu.dma_semaphore, #tpu.memory_space<semaphore_mem>> -> memref<1x!tpu.dma_semaphore, #tpu.memory_space<semaphore_mem>>
        %192 = tpu.memref_squeeze %191 : memref<1x!tpu.dma_semaphore, #tpu.memory_space<semaphore_mem>> -> memref<!tpu.dma_semaphore, #tpu.memory_space<semaphore_mem>>
        tpu.enqueue_dma source(%188 : memref<64x128xi8, #tpu.memory_space<any>>) target(%190 : memref<64x128xi8, #tpu.memory_space<vmem>>) target_semaphore(%192 : memref<!tpu.dma_semaphore, #tpu.memory_space<semaphore_mem>>)
      } else {
      }
      %140 = arith.index_cast %128 : i32 to index
      %c0_113 = arith.constant 0 : index
      %c0_114 = arith.constant 0 : index
      %141 = vector.load %arg27[%140, %c0_113, %c0_114] : memref<4x64x128xi8, #tpu.memory_space<vmem>>, vector<1x64x128xi8>
      %142 = vector.shape_cast %141 : vector<1x64x128xi8> to vector<64x128xi8>
      %143 = arith.sitofp %142 : vector<64x128xi8> to vector<64x128xbf16>
      %cst_115 = arith.constant dense<0.000000e+00> : vector<64x16xf32>
      %144 = tpu.matmul %143, %117, %cst_115 {dimension_numbers = #tpu.dot_dimension_numbers<[1], [0], [0], [1], [0, 0, 1, 1], [], []>} : vector<64x128xbf16>, vector<128x16xbf16>, vector<64x16xf32> -> vector<64x16xf32>
      %145 = arith.truncf %144 : vector<64x16xf32> to vector<64x16xbf16>
      %cst_116 = arith.constant dense<0.000000e+00> : vector<64x32xf32>
      %146 = tpu.matmul %145, %15, %cst_116 {dimension_numbers = #tpu.dot_dimension_numbers<[1], [0], [0], [1], [0, 0, 1, 1], [], []>} : vector<64x16xbf16>, vector<16x32xbf16>, vector<64x32xf32> -> vector<64x32xf32>
      %147 = vector.broadcast %16 : vector<1x32xf32> to vector<64x32xf32>
      %148 = arith.addf %146, %147 : vector<64x32xf32>
      %cst_117 = arith.constant 0.000000e+00 : f32
      %149 = vector.broadcast %cst_117 : f32 to vector<64x32xf32>
      %150 = arith.maximumf %148, %149 : vector<64x32xf32>
      %151 = arith.truncf %150 : vector<64x32xf32> to vector<64x32xbf16>
      %cst_118 = arith.constant dense<0.000000e+00> : vector<64x32xf32>
      %152 = tpu.matmul %151, %17, %cst_118 {dimension_numbers = #tpu.dot_dimension_numbers<[1], [0], [0], [1], [0, 0, 1, 1], [], []>} : vector<64x32xbf16>, vector<32x32xbf16>, vector<64x32xf32> -> vector<64x32xf32>
      %153 = vector.broadcast %18 : vector<1x32xf32> to vector<64x32xf32>
      %154 = arith.addf %152, %153 : vector<64x32xf32>
      %cst_119 = arith.constant 0.000000e+00 : f32
      %155 = vector.broadcast %cst_119 : f32 to vector<64x32xf32>
      %156 = arith.maximumf %154, %155 : vector<64x32xf32>
      %157 = arith.index_cast %116 : i32 to index
      %c0_120 = arith.constant 0 : index
      %158 = vector.load %arg29[%157, %c0_120] : memref<128x32xf32, #tpu.memory_space<vmem>>, vector<64x32xf32>
      tpu.vector_store %arg29[%157, %c0_120], %156 {strides = array<i32>} : memref<128x32xf32, #tpu.memory_space<vmem>>, vector<64x32xf32>,
      %cst_121 = arith.constant dense<0.000000e+00> : vector<32xf32>
      %159 = vector.multi_reduction <add>, %156, %cst_121 [0] : vector<64x32xf32> to vector<32xf32>
      %160 = vector.shape_cast %159 : vector<32xf32> to vector<1x32xf32>
      %161 = arith.addf %arg34, %160 : vector<1x32xf32>
      %162 = arith.mulf %156, %156 : vector<64x32xf32>
      %cst_122 = arith.constant dense<0.000000e+00> : vector<32xf32>
      %163 = vector.multi_reduction <add>, %162, %cst_122 [0] : vector<64x32xf32> to vector<32xf32>
      %164 = vector.shape_cast %163 : vector<32xf32> to vector<1x32xf32>
      %165 = arith.addf %arg35, %164 : vector<1x32xf32>
      scf.yield %161, %165 : vector<1x32xf32>, vector<1x32xf32>
    }
    %c2_i32_24 = arith.constant 2 : i32
    %cst_25 = arith.constant 1.280000e+02 : f32
    %22 = vector.broadcast %cst_25 : f32 to vector<1x32xf32>
    %23 = arith.divf %21#0, %22 : vector<1x32xf32>
    %cst_26 = arith.constant 1.280000e+02 : f32
    %24 = vector.broadcast %cst_26 : f32 to vector<1x32xf32>
    %25 = arith.divf %21#1, %24 : vector<1x32xf32>
    %26 = arith.mulf %23, %23 : vector<1x32xf32>
    %27 = arith.subf %25, %26 : vector<1x32xf32>
    %cst_27 = arith.constant 0.000000e+00 : f32
    %28 = vector.broadcast %cst_27 : f32 to vector<1x32xf32>
    %29 = arith.maximumf %27, %28 : vector<1x32xf32>
    %cst_28 = arith.constant 9.99999974E-6 : f32
    %30 = vector.broadcast %cst_28 : f32 to vector<1x32xf32>
    %31 = arith.addf %29, %30 : vector<1x32xf32>
    %32 = math.rsqrt %31 : vector<1x32xf32>
    %c0_29 = arith.constant 0 : index
    %c0_30 = arith.constant 0 : index
    %33 = vector.load %arg29[%c0_29, %c0_30] : memref<128x32xf32, #tpu.memory_space<vmem>>, vector<128x32xf32>
    %34 = vector.broadcast %23 : vector<1x32xf32> to vector<128x32xf32>
    %35 = arith.subf %33, %34 : vector<128x32xf32>
    %36 = vector.broadcast %32 : vector<1x32xf32> to vector<128x32xf32>
    %37 = arith.mulf %35, %36 : vector<128x32xf32>
    %38 = arith.truncf %37 : vector<128x32xf32> to vector<128x32xbf16>
    %c0_31 = arith.constant 0 : index
    %c0_32 = arith.constant 0 : index
    %39 = vector.load %arg30[%c0_31, %c0_32] : memref<128x32xbf16, #tpu.memory_space<vmem>>, vector<128x32xbf16>
    tpu.vector_store %arg30[%c0_31, %c0_32], %38 {strides = array<i32>} : memref<128x32xbf16, #tpu.memory_space<vmem>>, vector<128x32xbf16>,
    %c0_33 = arith.constant 0 : index
    %c0_34 = arith.constant 0 : index
    %40 = vector.load %arg31[%c0_33, %c0_34] : memref<128x64xbf16, #tpu.memory_space<vmem>>, vector<128x32xbf16>
    tpu.vector_store %arg31[%c0_33, %c0_34], %38 {strides = array<i32>} : memref<128x64xbf16, #tpu.memory_space<vmem>>, vector<128x32xbf16>,
    %c0_35 = arith.constant 0 : index
    %c0_36 = arith.constant 0 : index
    %41 = vector.load %arg1[%c0_35, %c0_36] : memref<8x128xbf16, #tpu.memory_space<vmem>>, vector<8x128xbf16>
    %cst_37 = arith.constant dense<0.000000e+00> : vector<8x32xf32>
    %42 = tpu.matmul %41, %38, %cst_37 {dimension_numbers = #tpu.dot_dimension_numbers<[1], [0], [0], [1], [0, 0, 1, 1], [], []>} : vector<8x128xbf16>, vector<128x32xbf16>, vector<8x32xf32> -> vector<8x32xf32>
    %43 = arith.truncf %42 : vector<8x32xf32> to vector<8x32xbf16>
    %c0_38 = arith.constant 0 : index
    %c0_39 = arith.constant 0 : index
    %44 = vector.load %arg32[%c0_38, %c0_39] : memref<8x64xbf16, #tpu.memory_space<vmem>>, vector<8x32xbf16>
    tpu.vector_store %arg32[%c0_38, %c0_39], %43 {strides = array<i32>} : memref<8x64xbf16, #tpu.memory_space<vmem>>, vector<8x32xbf16>,
    %c0_40 = arith.constant 0 : index
    %c0_41 = arith.constant 0 : index
    %45 = vector.load %arg8[%c0_40, %c0_41] : memref<32x32xbf16, #tpu.memory_space<vmem>>, vector<32x32xbf16>
    %c0_42 = arith.constant 0 : index
    %c0_43 = arith.constant 0 : index
    %46 = vector.load %arg9[%c0_42, %c0_43] : memref<1x32xf32, #tpu.memory_space<vmem>>, vector<1x32xf32>
    %c0_44 = arith.constant 0 : index
    %c0_45 = arith.constant 0 : index
    %47 = vector.load %arg10[%c0_44, %c0_45] : memref<32x32xbf16, #tpu.memory_space<vmem>>, vector<32x32xbf16>
    %c0_46 = arith.constant 0 : index
    %c0_47 = arith.constant 0 : index
    %48 = vector.load %arg11[%c0_46, %c0_47] : memref<1x32xf32, #tpu.memory_space<vmem>>, vector<1x32xf32>
    %cst_48 = arith.constant 0.000000e+00 : f32
    %49 = vector.broadcast %cst_48 : f32 to vector<1x32xf32>
    %c0_i32_49 = arith.constant 0 : i32
    %c2_i32_50 = arith.constant 2 : i32
    %50 = arith.addi %c0_i32_49, %c2_i32_50 : i32
    %c1_i32_51 = arith.constant 1 : i32
    %51:2 = scf.for %arg33 = %c0_i32_49 to %50 step %c1_i32_51 iter_args(%arg34 = %49, %arg35 = %49) -> (vector<1x32xf32>, vector<1x32xf32>)  : i32 {
      %c64_i32_98 = arith.constant 64 : i32
      %115 = arith.muli %arg33, %c64_i32_98 : i32
      %116 = tpu.assume_multiple %115, 64 : i32
      %c0_99 = arith.constant 0 : index
      %c0_100 = arith.constant 0 : index
      %117 = vector.load %arg30[%c0_99, %c0_100] : memref<128x32xbf16, #tpu.memory_space<vmem>>, vector<128x32xbf16>
      %c2_i32_101 = arith.constant 2 : i32
      %118 = arith.addi %c2_i32_101, %arg33 : i32
      %c4_i32 = arith.constant 4 : i32
      %c0_i32_102 = arith.constant 0 : i32
      %119 = arith.cmpi eq, %c4_i32, %c0_i32_102 : i32
      %c1_i32_103 = arith.constant 1 : i32
      %120 = arith.select %119, %c1_i32_103, %c4_i32 : i32
      %121 = arith.remsi %118, %120 : i32
      %c0_i32_104 = arith.constant 0 : i32
      %122 = arith.cmpi ne, %121, %c0_i32_104 : i32
      %c0_i32_105 = arith.constant 0 : i32
      %123 = arith.cmpi slt, %121, %c0_i32_105 : i32
      %c0_i32_106 = arith.constant 0 : i32
      %124 = arith.cmpi slt, %120, %c0_i32_106 : i32
      %125 = arith.xori %123, %124 : i1
      %126 = arith.andi %125, %122 : i1
      %127 = arith.addi %121, %120 : i32
      %128 = arith.select %126, %127, %121 : i32
      %c64_i32_107 = arith.constant 64 : i32
      %129 = arith.muli %arg33, %c64_i32_107 : i32
      %130 = tpu.assume_multiple %129, 64 : i32
      %c0_i32_108 = arith.constant 0 : i32
      %131 = tpu.memref_slice %arg3[%130, %c0_i32_108] : memref<128x128xi8, #tpu.memory_space<any>> -> memref<64x128xi8, #tpu.memory_space<any>>
      %c0_i32_109 = arith.constant 0 : i32
      %c0_i32_110 = arith.constant 0 : i32
      %132 = tpu.memref_slice %arg27[%128, %c0_i32_109, %c0_i32_110] : memref<4x64x128xi8, #tpu.memory_space<vmem>> -> memref<1x64x128xi8, #tpu.memory_space<vmem>>
      %133 = tpu.memref_squeeze %132 : memref<1x64x128xi8, #tpu.memory_space<vmem>> -> memref<64x128xi8, #tpu.memory_space<vmem>>
      %134 = tpu.memref_slice %arg28[%128] : memref<4x!tpu.dma_semaphore, #tpu.memory_space<semaphore_mem>> -> memref<1x!tpu.dma_semaphore, #tpu.memory_space<semaphore_mem>>
      %135 = tpu.memref_squeeze %134 : memref<1x!tpu.dma_semaphore, #tpu.memory_space<semaphore_mem>> -> memref<!tpu.dma_semaphore, #tpu.memory_space<semaphore_mem>>
      tpu.wait_dma2 semaphore(%135 : memref<!tpu.dma_semaphore, #tpu.memory_space<semaphore_mem>>) src(%131 : memref<64x128xi8, #tpu.memory_space<any>>) dst(%133 : memref<64x128xi8, #tpu.memory_space<vmem>>)
      %c3_i32 = arith.constant 3 : i32
      %136 = arith.addi %118, %c3_i32 : i32
      %c4_i32_111 = arith.constant 4 : i32
      %137 = arith.cmpi slt, %136, %c4_i32_111 : i32
      %138 = arith.extui %137 : i1 to i32
      %c0_i32_112 = arith.constant 0 : i32
      %139 = arith.cmpi ne, %138, %c0_i32_112 : i32
      scf.if %139 {
        %c2_i32_123 = arith.constant 2 : i32
        %c0_i32_124 = arith.constant 0 : i32
        %166 = arith.cmpi eq, %c2_i32_123, %c0_i32_124 : i32
        %c1_i32_125 = arith.constant 1 : i32
        %167 = arith.select %166, %c1_i32_125, %c2_i32_123 : i32
        %168 = arith.remsi %136, %167 : i32
        %c0_i32_126 = arith.constant 0 : i32
        %169 = arith.cmpi ne, %168, %c0_i32_126 : i32
        %c0_i32_127 = arith.constant 0 : i32
        %170 = arith.cmpi slt, %168, %c0_i32_127 : i32
        %c0_i32_128 = arith.constant 0 : i32
        %171 = arith.cmpi slt, %167, %c0_i32_128 : i32
        %172 = arith.xori %170, %171 : i1
        %173 = arith.andi %172, %169 : i1
        %174 = arith.addi %168, %167 : i32
        %175 = arith.select %173, %174, %168 : i32
        %c4_i32_129 = arith.constant 4 : i32
        %c0_i32_130 = arith.constant 0 : i32
        %176 = arith.cmpi eq, %c4_i32_129, %c0_i32_130 : i32
        %c1_i32_131 = arith.constant 1 : i32
        %177 = arith.select %176, %c1_i32_131, %c4_i32_129 : i32
        %178 = arith.remsi %136, %177 : i32
        %c0_i32_132 = arith.constant 0 : i32
        %179 = arith.cmpi ne, %178, %c0_i32_132 : i32
        %c0_i32_133 = arith.constant 0 : i32
        %180 = arith.cmpi slt, %178, %c0_i32_133 : i32
        %c0_i32_134 = arith.constant 0 : i32
        %181 = arith.cmpi slt, %177, %c0_i32_134 : i32
        %182 = arith.xori %180, %181 : i1
        %183 = arith.andi %182, %179 : i1
        %184 = arith.addi %178, %177 : i32
        %185 = arith.select %183, %184, %178 : i32
        %c64_i32_135 = arith.constant 64 : i32
        %186 = arith.muli %175, %c64_i32_135 : i32
        %187 = tpu.assume_multiple %186, 64 : i32
        %c0_i32_136 = arith.constant 0 : i32
        %188 = tpu.memref_slice %arg3[%187, %c0_i32_136] : memref<128x128xi8, #tpu.memory_space<any>> -> memref<64x128xi8, #tpu.memory_space<any>>
        %c0_i32_137 = arith.constant 0 : i32
        %c0_i32_138 = arith.constant 0 : i32
        %189 = tpu.memref_slice %arg27[%185, %c0_i32_137, %c0_i32_138] : memref<4x64x128xi8, #tpu.memory_space<vmem>> -> memref<1x64x128xi8, #tpu.memory_space<vmem>>
        %190 = tpu.memref_squeeze %189 : memref<1x64x128xi8, #tpu.memory_space<vmem>> -> memref<64x128xi8, #tpu.memory_space<vmem>>
        %191 = tpu.memref_slice %arg28[%185] : memref<4x!tpu.dma_semaphore, #tpu.memory_space<semaphore_mem>> -> memref<1x!tpu.dma_semaphore, #tpu.memory_space<semaphore_mem>>
        %192 = tpu.memref_squeeze %191 : memref<1x!tpu.dma_semaphore, #tpu.memory_space<semaphore_mem>> -> memref<!tpu.dma_semaphore, #tpu.memory_space<semaphore_mem>>
        tpu.enqueue_dma source(%188 : memref<64x128xi8, #tpu.memory_space<any>>) target(%190 : memref<64x128xi8, #tpu.memory_space<vmem>>) target_semaphore(%192 : memref<!tpu.dma_semaphore, #tpu.memory_space<semaphore_mem>>)
      } else {
      }
      %140 = arith.index_cast %128 : i32 to index
      %c0_113 = arith.constant 0 : index
      %c0_114 = arith.constant 0 : index
      %141 = vector.load %arg27[%140, %c0_113, %c0_114] : memref<4x64x128xi8, #tpu.memory_space<vmem>>, vector<1x64x128xi8>
      %142 = vector.shape_cast %141 : vector<1x64x128xi8> to vector<64x128xi8>
      %143 = arith.sitofp %142 : vector<64x128xi8> to vector<64x128xbf16>
      %cst_115 = arith.constant dense<0.000000e+00> : vector<64x32xf32>
      %144 = tpu.matmul %143, %117, %cst_115 {dimension_numbers = #tpu.dot_dimension_numbers<[1], [0], [0], [1], [0, 0, 1, 1], [], []>} : vector<64x128xbf16>, vector<128x32xbf16>, vector<64x32xf32> -> vector<64x32xf32>
      %145 = arith.truncf %144 : vector<64x32xf32> to vector<64x32xbf16>
      %cst_116 = arith.constant dense<0.000000e+00> : vector<64x32xf32>
      %146 = tpu.matmul %145, %45, %cst_116 {dimension_numbers = #tpu.dot_dimension_numbers<[1], [0], [0], [1], [0, 0, 1, 1], [], []>} : vector<64x32xbf16>, vector<32x32xbf16>, vector<64x32xf32> -> vector<64x32xf32>
      %147 = vector.broadcast %46 : vector<1x32xf32> to vector<64x32xf32>
      %148 = arith.addf %146, %147 : vector<64x32xf32>
      %cst_117 = arith.constant 0.000000e+00 : f32
      %149 = vector.broadcast %cst_117 : f32 to vector<64x32xf32>
      %150 = arith.maximumf %148, %149 : vector<64x32xf32>
      %151 = arith.truncf %150 : vector<64x32xf32> to vector<64x32xbf16>
      %cst_118 = arith.constant dense<0.000000e+00> : vector<64x32xf32>
      %152 = tpu.matmul %151, %47, %cst_118 {dimension_numbers = #tpu.dot_dimension_numbers<[1], [0], [0], [1], [0, 0, 1, 1], [], []>} : vector<64x32xbf16>, vector<32x32xbf16>, vector<64x32xf32> -> vector<64x32xf32>
      %153 = vector.broadcast %48 : vector<1x32xf32> to vector<64x32xf32>
      %154 = arith.addf %152, %153 : vector<64x32xf32>
      %cst_119 = arith.constant 0.000000e+00 : f32
      %155 = vector.broadcast %cst_119 : f32 to vector<64x32xf32>
      %156 = arith.maximumf %154, %155 : vector<64x32xf32>
      %157 = arith.index_cast %116 : i32 to index
      %c0_120 = arith.constant 0 : index
      %158 = vector.load %arg29[%157, %c0_120] : memref<128x32xf32, #tpu.memory_space<vmem>>, vector<64x32xf32>
      tpu.vector_store %arg29[%157, %c0_120], %156 {strides = array<i32>} : memref<128x32xf32, #tpu.memory_space<vmem>>, vector<64x32xf32>,
      %cst_121 = arith.constant dense<0.000000e+00> : vector<32xf32>
      %159 = vector.multi_reduction <add>, %156, %cst_121 [0] : vector<64x32xf32> to vector<32xf32>
      %160 = vector.shape_cast %159 : vector<32xf32> to vector<1x32xf32>
      %161 = arith.addf %arg34, %160 : vector<1x32xf32>
      %162 = arith.mulf %156, %156 : vector<64x32xf32>
      %cst_122 = arith.constant dense<0.000000e+00> : vector<32xf32>
      %163 = vector.multi_reduction <add>, %162, %cst_122 [0] : vector<64x32xf32> to vector<32xf32>
      %164 = vector.shape_cast %163 : vector<32xf32> to vector<1x32xf32>
      %165 = arith.addf %arg35, %164 : vector<1x32xf32>
      scf.yield %161, %165 : vector<1x32xf32>, vector<1x32xf32>
    }
    %c2_i32_52 = arith.constant 2 : i32
    %cst_53 = arith.constant 1.280000e+02 : f32
    %52 = vector.broadcast %cst_53 : f32 to vector<1x32xf32>
    %53 = arith.divf %51#0, %52 : vector<1x32xf32>
    %cst_54 = arith.constant 1.280000e+02 : f32
    %54 = vector.broadcast %cst_54 : f32 to vector<1x32xf32>
    %55 = arith.divf %51#1, %54 : vector<1x32xf32>
    %56 = arith.mulf %53, %53 : vector<1x32xf32>
    %57 = arith.subf %55, %56 : vector<1x32xf32>
    %cst_55 = arith.constant 0.000000e+00 : f32
    %58 = vector.broadcast %cst_55 : f32 to vector<1x32xf32>
    %59 = arith.maximumf %57, %58 : vector<1x32xf32>
    %cst_56 = arith.constant 9.99999974E-6 : f32
    %60 = vector.broadcast %cst_56 : f32 to vector<1x32xf32>
    %61 = arith.addf %59, %60 : vector<1x32xf32>
    %62 = math.rsqrt %61 : vector<1x32xf32>
    %c0_57 = arith.constant 0 : index
    %c0_58 = arith.constant 0 : index
    %63 = vector.load %arg29[%c0_57, %c0_58] : memref<128x32xf32, #tpu.memory_space<vmem>>, vector<128x32xf32>
    %64 = vector.broadcast %53 : vector<1x32xf32> to vector<128x32xf32>
    %65 = arith.subf %63, %64 : vector<128x32xf32>
    %66 = vector.broadcast %62 : vector<1x32xf32> to vector<128x32xf32>
    %67 = arith.mulf %65, %66 : vector<128x32xf32>
    %68 = arith.truncf %67 : vector<128x32xf32> to vector<128x32xbf16>
    %c0_59 = arith.constant 0 : index
    %c0_60 = arith.constant 0 : index
    %69 = vector.load %arg30[%c0_59, %c0_60] : memref<128x32xbf16, #tpu.memory_space<vmem>>, vector<128x32xbf16>
    tpu.vector_store %arg30[%c0_59, %c0_60], %68 {strides = array<i32>} : memref<128x32xbf16, #tpu.memory_space<vmem>>, vector<128x32xbf16>,
    %c0_61 = arith.constant 0 : index
    %c32 = arith.constant 32 : index
    %70 = vector.load %arg31[%c0_61, %c32] : memref<128x64xbf16, #tpu.memory_space<vmem>>, vector<128x32xbf16>
    tpu.vector_store %arg31[%c0_61, %c32], %68 {strides = array<i32>} : memref<128x64xbf16, #tpu.memory_space<vmem>>, vector<128x32xbf16>,
    %c0_62 = arith.constant 0 : index
    %c0_63 = arith.constant 0 : index
    %71 = vector.load %arg1[%c0_62, %c0_63] : memref<8x128xbf16, #tpu.memory_space<vmem>>, vector<8x128xbf16>
    %cst_64 = arith.constant dense<0.000000e+00> : vector<8x32xf32>
    %72 = tpu.matmul %71, %68, %cst_64 {dimension_numbers = #tpu.dot_dimension_numbers<[1], [0], [0], [1], [0, 0, 1, 1], [], []>} : vector<8x128xbf16>, vector<128x32xbf16>, vector<8x32xf32> -> vector<8x32xf32>
    %73 = arith.truncf %72 : vector<8x32xf32> to vector<8x32xbf16>
    %c0_65 = arith.constant 0 : index
    %c32_66 = arith.constant 32 : index
    %74 = vector.load %arg32[%c0_65, %c32_66] : memref<8x64xbf16, #tpu.memory_space<vmem>>, vector<8x32xbf16>
    tpu.vector_store %arg32[%c0_65, %c32_66], %73 {strides = array<i32>} : memref<8x64xbf16, #tpu.memory_space<vmem>>, vector<8x32xbf16>,
    %c0_67 = arith.constant 0 : index
    %c0_68 = arith.constant 0 : index
    %75 = vector.load %arg32[%c0_67, %c0_68] : memref<8x64xbf16, #tpu.memory_space<vmem>>, vector<8x64xbf16>
    %c0_69 = arith.constant 0 : index
    %c0_70 = arith.constant 0 : index
    %76 = vector.load %arg12[%c0_69, %c0_70] : memref<64x128xbf16, #tpu.memory_space<vmem>>, vector<64x128xbf16>
    %cst_71 = arith.constant dense<0.000000e+00> : vector<8x128xf32>
    %77 = tpu.matmul %75, %76, %cst_71 {dimension_numbers = #tpu.dot_dimension_numbers<[1], [0], [0], [1], [0, 0, 1, 1], [], []>} : vector<8x64xbf16>, vector<64x128xbf16>, vector<8x128xf32> -> vector<8x128xf32>
    %78 = vector.extract_strided_slice %77 {offsets = [0, 0], sizes = [8, 64], strides = [1, 1]} : vector<8x128xf32> to vector<8x64xf32>
    %79 = vector.extract_strided_slice %77 {offsets = [0, 64], sizes = [8, 64], strides = [1, 1]} : vector<8x128xf32> to vector<8x64xf32>
    %c0_72 = arith.constant 0 : index
    %c0_73 = arith.constant 0 : index
    %80 = vector.load %arg13[%c0_72, %c0_73] : memref<1x64xf32, #tpu.memory_space<vmem>>, vector<1x64xf32>
    %81 = vector.broadcast %80 : vector<1x64xf32> to vector<8x64xf32>
    %82 = arith.addf %78, %81 : vector<8x64xf32>
    %cst_74 = arith.constant 0.000000e+00 : f32
    %83 = vector.broadcast %cst_74 : f32 to vector<8x64xf32>
    %84 = arith.maximumf %82, %83 : vector<8x64xf32>
    %85 = arith.truncf %84 : vector<8x64xf32> to vector<8x64xbf16>
    %c0_75 = arith.constant 0 : index
    %c0_76 = arith.constant 0 : index
    %86 = vector.load %arg14[%c0_75, %c0_76] : memref<64x64xbf16, #tpu.memory_space<vmem>>, vector<64x64xbf16>
    %cst_77 = arith.constant dense<0.000000e+00> : vector<8x64xf32>
    %87 = tpu.matmul %85, %86, %cst_77 {dimension_numbers = #tpu.dot_dimension_numbers<[1], [0], [0], [1], [0, 0, 1, 1], [], []>} : vector<8x64xbf16>, vector<64x64xbf16>, vector<8x64xf32> -> vector<8x64xf32>
    %c0_78 = arith.constant 0 : index
    %c0_79 = arith.constant 0 : index
    %88 = vector.load %arg15[%c0_78, %c0_79] : memref<1x64xf32, #tpu.memory_space<vmem>>, vector<1x64xf32>
    %89 = vector.broadcast %88 : vector<1x64xf32> to vector<8x64xf32>
    %90 = arith.addf %87, %89 : vector<8x64xf32>
    %cst_80 = arith.constant 0.000000e+00 : f32
    %91 = vector.broadcast %cst_80 : f32 to vector<8x64xf32>
    %92 = arith.maximumf %90, %91 : vector<8x64xf32>
    %93 = arith.truncf %92 : vector<8x64xf32> to vector<8x64xbf16>
    %c0_81 = arith.constant 0 : index
    %c0_82 = arith.constant 0 : index
    %94 = vector.load %arg16[%c0_81, %c0_82] : memref<64x64xbf16, #tpu.memory_space<vmem>>, vector<64x64xbf16>
    %cst_83 = arith.constant dense<0.000000e+00> : vector<8x64xf32>
    %95 = tpu.matmul %93, %94, %cst_83 {dimension_numbers = #tpu.dot_dimension_numbers<[1], [0], [0], [1], [0, 0, 1, 1], [], []>} : vector<8x64xbf16>, vector<64x64xbf16>, vector<8x64xf32> -> vector<8x64xf32>
    %c0_84 = arith.constant 0 : index
    %c0_85 = arith.constant 0 : index
    %96 = vector.load %arg17[%c0_84, %c0_85] : memref<1x64xf32, #tpu.memory_space<vmem>>, vector<1x64xf32>
    %97 = vector.broadcast %96 : vector<1x64xf32> to vector<8x64xf32>
    %98 = arith.addf %95, %97 : vector<8x64xf32>
    %cst_86 = arith.constant 0.000000e+00 : f32
    %99 = vector.broadcast %cst_86 : f32 to vector<8x64xf32>
    %100 = arith.maximumf %98, %99 : vector<8x64xf32>
    %101 = arith.addf %100, %79 : vector<8x64xf32>
    %c0_87 = arith.constant 0 : index
    %c0_88 = arith.constant 0 : index
    %102 = vector.load %arg18[%c0_87, %c0_88] : memref<1x64xf32, #tpu.memory_space<vmem>>, vector<1x64xf32>
    %103 = vector.broadcast %102 : vector<1x64xf32> to vector<8x64xf32>
    %104 = arith.addf %101, %103 : vector<8x64xf32>
    %105 = arith.truncf %104 : vector<8x64xf32> to vector<8x64xbf16>
    %cst_89 = arith.constant 0.000000e+00 : f32
    %106 = vector.broadcast %cst_89 : f32 to vector<1x1xf32>
    %c0_i32_90 = arith.constant 0 : i32
    %c2_i32_91 = arith.constant 2 : i32
    %107 = arith.addi %c0_i32_90, %c2_i32_91 : i32
    %c1_i32_92 = arith.constant 1 : i32
    %108:2 = scf.for %arg33 = %c0_i32_90 to %107 step %c1_i32_92 iter_args(%arg34 = %106, %arg35 = %106) -> (vector<1x1xf32>, vector<1x1xf32>)  : i32 {
      %c64_i32_98 = arith.constant 64 : i32
      %115 = arith.muli %arg33, %c64_i32_98 : i32
      %116 = tpu.assume_multiple %115, 64 : i32
      %117 = arith.index_cast %116 : i32 to index
      %c0_99 = arith.constant 0 : index
      %118 = vector.load %arg31[%117, %c0_99] : memref<128x64xbf16, #tpu.memory_space<vmem>>, vector<64x64xbf16>
      %c0_100 = arith.constant 0 : index
      %c0_101 = arith.constant 0 : index
      %119 = vector.load %arg19[%c0_100, %c0_101] : memref<64x128xbf16, #tpu.memory_space<vmem>>, vector<64x128xbf16>
      %cst_102 = arith.constant dense<0.000000e+00> : vector<64x128xf32>
      %120 = tpu.matmul %118, %119, %cst_102 {dimension_numbers = #tpu.dot_dimension_numbers<[1], [0], [0], [1], [0, 0, 1, 1], [], []>} : vector<64x64xbf16>, vector<64x128xbf16>, vector<64x128xf32> -> vector<64x128xf32>
      %121 = vector.extract_strided_slice %120 {offsets = [0, 0], sizes = [64, 64], strides = [1, 1]} : vector<64x128xf32> to vector<64x64xf32>
      %122 = vector.extract_strided_slice %120 {offsets = [0, 64], sizes = [64, 64], strides = [1, 1]} : vector<64x128xf32> to vector<64x64xf32>
      %c0_103 = arith.constant 0 : index
      %c0_104 = arith.constant 0 : index
      %123 = vector.load %arg20[%c0_103, %c0_104] : memref<1x64xf32, #tpu.memory_space<vmem>>, vector<1x64xf32>
      %124 = vector.broadcast %123 : vector<1x64xf32> to vector<64x64xf32>
      %125 = arith.addf %121, %124 : vector<64x64xf32>
      %cst_105 = arith.constant 0.000000e+00 : f32
      %126 = vector.broadcast %cst_105 : f32 to vector<64x64xf32>
      %127 = arith.maximumf %125, %126 : vector<64x64xf32>
      %128 = arith.truncf %127 : vector<64x64xf32> to vector<64x64xbf16>
      %c0_106 = arith.constant 0 : index
      %c0_107 = arith.constant 0 : index
      %129 = vector.load %arg21[%c0_106, %c0_107] : memref<64x64xbf16, #tpu.memory_space<vmem>>, vector<64x64xbf16>
      %cst_108 = arith.constant dense<0.000000e+00> : vector<64x64xf32>
      %130 = tpu.matmul %128, %129, %cst_108 {dimension_numbers = #tpu.dot_dimension_numbers<[1], [0], [0], [1], [0, 0, 1, 1], [], []>} : vector<64x64xbf16>, vector<64x64xbf16>, vector<64x64xf32> -> vector<64x64xf32>
      %c0_109 = arith.constant 0 : index
      %c0_110 = arith.constant 0 : index
      %131 = vector.load %arg22[%c0_109, %c0_110] : memref<1x64xf32, #tpu.memory_space<vmem>>, vector<1x64xf32>
      %132 = vector.broadcast %131 : vector<1x64xf32> to vector<64x64xf32>
      %133 = arith.addf %130, %132 : vector<64x64xf32>
      %cst_111 = arith.constant 0.000000e+00 : f32
      %134 = vector.broadcast %cst_111 : f32 to vector<64x64xf32>
      %135 = arith.maximumf %133, %134 : vector<64x64xf32>
      %136 = arith.truncf %135 : vector<64x64xf32> to vector<64x64xbf16>
      %c0_112 = arith.constant 0 : index
      %c0_113 = arith.constant 0 : index
      %137 = vector.load %arg23[%c0_112, %c0_113] : memref<64x64xbf16, #tpu.memory_space<vmem>>, vector<64x64xbf16>
      %cst_114 = arith.constant dense<0.000000e+00> : vector<64x64xf32>
      %138 = tpu.matmul %136, %137, %cst_114 {dimension_numbers = #tpu.dot_dimension_numbers<[1], [0], [0], [1], [0, 0, 1, 1], [], []>} : vector<64x64xbf16>, vector<64x64xbf16>, vector<64x64xf32> -> vector<64x64xf32>
      %c0_115 = arith.constant 0 : index
      %c0_116 = arith.constant 0 : index
      %139 = vector.load %arg24[%c0_115, %c0_116] : memref<1x64xf32, #tpu.memory_space<vmem>>, vector<1x64xf32>
      %140 = vector.broadcast %139 : vector<1x64xf32> to vector<64x64xf32>
      %141 = arith.addf %138, %140 : vector<64x64xf32>
      %cst_117 = arith.constant 0.000000e+00 : f32
      %142 = vector.broadcast %cst_117 : f32 to vector<64x64xf32>
      %143 = arith.maximumf %141, %142 : vector<64x64xf32>
      %144 = arith.addf %143, %122 : vector<64x64xf32>
      %c0_118 = arith.constant 0 : index
      %c0_119 = arith.constant 0 : index
      %145 = vector.load %arg25[%c0_118, %c0_119] : memref<1x64xf32, #tpu.memory_space<vmem>>, vector<1x64xf32>
      %146 = vector.broadcast %145 : vector<1x64xf32> to vector<64x64xf32>
      %147 = arith.addf %144, %146 : vector<64x64xf32>
      %148 = arith.truncf %147 : vector<64x64xf32> to vector<64x64xbf16>
      %cst_120 = arith.constant dense<0.000000e+00> : vector<64x8xf32>
      %149 = tpu.matmul %148, %105, %cst_120 {dimension_numbers = #tpu.dot_dimension_numbers<[1], [1], [0], [0], [0, 0, 1, 0], [], []>} : vector<64x64xbf16>, vector<8x64xbf16>, vector<64x8xf32> -> vector<64x8xf32>
      %150 = arith.index_cast %116 : i32 to index
      %c0_121 = arith.constant 0 : index
      %151 = vector.load %arg2[%150, %c0_121] : memref<128x1xi32, #tpu.memory_space<vmem>>, vector<64x1xi32>
      %152 = tpu.iota {dimensions = array<i32: 1>} : vector<64x8xi32>
      %153 = vector.broadcast %151 : vector<64x1xi32> to vector<64x8xi32>
      %154 = arith.cmpi eq, %153, %152 : vector<64x8xi32>
      %155 = arith.extui %154 : vector<64x8xi1> to vector<64x8xi32>
      %156 = arith.sitofp %155 : vector<64x8xi32> to vector<64x8xf32>
      %cst_122 = arith.constant 0.000000e+00 : f32
      %157 = vector.broadcast %cst_122 : f32 to vector<64x8xf32>
      %158 = arith.subf %157, %149 : vector<64x8xf32>
      %cst_123 = arith.constant 0.000000e+00 : f32
      %159 = vector.broadcast %cst_123 : f32 to vector<64x8xf32>
      %160 = arith.maximumf %158, %159 : vector<64x8xf32>
      %161 = math.absf %158 : vector<64x8xf32>
      %cst_124 = arith.constant 0.000000e+00 : f32
      %162 = vector.broadcast %cst_124 : f32 to vector<64x8xf32>
      %163 = arith.subf %162, %161 : vector<64x8xf32>
      %164 = math.exp %163 : vector<64x8xf32>
      %165 = math.log1p %164 : vector<64x8xf32>
      %166 = arith.addf %160, %165 : vector<64x8xf32>
      %cst_125 = arith.constant 0.693147182 : f32
      %167 = vector.broadcast %cst_125 : f32 to vector<64x8xf32>
      %168 = arith.subf %167, %166 : vector<64x8xf32>
      %169 = arith.mulf %156, %168 : vector<64x8xf32>
      %170 = vector.shape_cast %169 : vector<64x8xf32> to vector<1x64x8xf32>
      %cst_126 = arith.constant dense<0.000000e+00> : vector<1xf32>
      %171 = vector.multi_reduction <add>, %170, %cst_126 [1, 2] : vector<1x64x8xf32> to vector<1xf32>
      %172 = vector.shape_cast %171 : vector<1xf32> to vector<1x1x1xf32>
      %173 = vector.extract %172[0, 0, 0] : f32 from vector<1x1x1xf32>
      %174 = vector.broadcast %173 : f32 to vector<1x1xf32>
      %175 = arith.addf %arg34, %174 : vector<1x1xf32>
      %cst_127 = arith.constant 1.000000e+00 : f32
      %176 = vector.broadcast %cst_127 : f32 to vector<64x8xf32>
      %177 = arith.subf %176, %156 : vector<64x8xf32>
      %178 = arith.addf %166, %149 : vector<64x8xf32>
      %cst_128 = arith.constant 0.693147182 : f32
      %179 = vector.broadcast %cst_128 : f32 to vector<64x8xf32>
      %180 = arith.subf %178, %179 : vector<64x8xf32>
      %181 = arith.mulf %177, %180 : vector<64x8xf32>
      %182 = vector.shape_cast %181 : vector<64x8xf32> to vector<1x64x8xf32>
      %cst_129 = arith.constant dense<0.000000e+00> : vector<1xf32>
      %183 = vector.multi_reduction <add>, %182, %cst_129 [1, 2] : vector<1x64x8xf32> to vector<1xf32>
      %184 = vector.shape_cast %183 : vector<1xf32> to vector<1x1x1xf32>
      %185 = vector.extract %184[0, 0, 0] : f32 from vector<1x1x1xf32>
      %186 = vector.broadcast %185 : f32 to vector<1x1xf32>
      %187 = arith.addf %arg35, %186 : vector<1x1xf32>
      scf.yield %175, %187 : vector<1x1xf32>, vector<1x1xf32>
    }
    %c2_i32_93 = arith.constant 2 : i32
    %cst_94 = arith.constant 1.280000e+02 : f32
    %109 = vector.broadcast %cst_94 : f32 to vector<1x1xf32>
    %110 = arith.divf %108#0, %109 : vector<1x1xf32>
    %cst_95 = arith.constant 8.960000e+02 : f32
    %111 = vector.broadcast %cst_95 : f32 to vector<1x1xf32>
    %112 = arith.divf %108#1, %111 : vector<1x1xf32>
    %113 = arith.subf %112, %110 : vector<1x1xf32>
    %c0_96 = arith.constant 0 : index
    %c0_97 = arith.constant 0 : index
    %114 = vector.load %arg26[%c0_96, %c0_97] : memref<1x1xf32, #tpu.memory_space<vmem>>, vector<1x1xf32>
    tpu.vector_store %arg26[%c0_96, %c0_97], %113 {strides = array<i32>} : memref<1x1xf32, #tpu.memory_space<vmem>>, vector<1x1xf32>,
    return
  }
}

</mosaic_0001>

<bundles_post_ra>
// kernel: tpu_custom_call.1
= control target key start
LH: loop header
LB: loop body
LE: loop exit
PB: predicated region body
PF: predicated region fallthrough
CT: control target
= control target key end

     0   :  { %s5313_s0 = inlined_call_operand.vmem [shape: bf16[128,16], index: 0, kind: input, shape index: {}]   ;;  %s5314_s1 = inlined_call_operand.hbm [shape: bf16[8,128], index: 1, kind: input, shape index: {}]   ;;  %s5315_s2 = inlined_call_operand.vmem [shape: s32[128,1], index: 2, kind: input, shape index: {}]   ;;  %s5316_s3 = inlined_call_operand.vmem [shape: s8[128,128], index: 3, kind: input, shape index: {}]   ;;  %s5317_s4 = inlined_call_operand.hbm [shape: bf16[16,32], index: 4, kind: input, shape index: {}]   ;;  %s5318_s5 = inlined_call_operand.vmem [shape: f32[1,32], index: 5, kind: input, shape index: {}]   ;;  %s5319_s6 = inlined_call_operand.hbm [shape: bf16[32,32], index: 6, kind: input, shape index: {}]   ;;  %s5320_s7 = inlined_call_operand.vmem [shape: f32[1,32], index: 7, kind: input, shape index: {}]   ;;  %s5321_s8 = inlined_call_operand.hbm [shape: bf16[32,32], index: 8, kind: input, shape index: {}]   ;;  %s5322_s9 = inlined_call_operand.hbm [shape: f32[1,32], index: 9, kind: input, shape index: {}]   ;;  %s5323_s10 = inlined_call_operand.hbm [shape: bf16[32,32], index: 10, kind: input, shape index: {}]   ;;  %s5324_s11 = inlined_call_operand.hbm [shape: f32[1,32], index: 11, kind: input, shape index: {}]   ;;  %s5325_s12 = inlined_call_operand.vmem [shape: bf16[64,128], index: 12, kind: input, shape index: {}]   ;;  %s5326_s13 = inlined_call_operand.hbm [shape: f32[1,64], index: 13, kind: input, shape index: {}]   ;;  %s5327_s14 = inlined_call_operand.vmem [shape: bf16[64,64], index: 14, kind: input, shape index: {}]   ;;  %s5328_s15 = inlined_call_operand.hbm [shape: f32[1,64], index: 15, kind: input, shape index: {}]   ;;  %s5329_s16 = inlined_call_operand.vmem [shape: bf16[64,64], index: 16, kind: input, shape index: {}]   ;;  %s5330_s17 = inlined_call_operand.vmem [shape: f32[1,64], index: 17, kind: input, shape index: {}]   ;;  %s5331_s18 = inlined_call_operand.vmem [shape: f32[1,64], index: 18, kind: input, shape index: {}]   ;;  %s5332_s19 = inlined_call_operand.vmem [shape: bf16[64,128], index: 19, kind: input, shape index: {}]   ;;  %s5333_s20 = inlined_call_operand.vmem [shape: f32[1,64], index: 20, kind: input, shape index: {}]   ;;  %s5334_s21 = inlined_call_operand.vmem [shape: bf16[64,64], index: 21, kind: input, shape index: {}]   ;;  %s5335_s22 = inlined_call_operand.vmem [shape: f32[1,64], index: 22, kind: input, shape index: {}]   ;;  %s5336_s23 = inlined_call_operand.vmem [shape: bf16[64,64], index: 23, kind: input, shape index: {}]   ;;  %s5337_s24 = inlined_call_operand.vmem [shape: f32[1,64], index: 24, kind: input, shape index: {}]   ;;  %s5338_s25 = inlined_call_operand.vmem [shape: f32[1,64], index: 25, kind: input, shape index: {}]   ;;  %s5339_s26 = inlined_call_operand.hbm [shape: f32[1,1], index: 26, kind: output, shape index: {}]  }
   0x1   :  { %5344 = sst [smem:[#allocation37_spill]] %s5313_s0 }
   0x2   :  { %5345 = sst [smem:[#allocation38_spill]] %s5314_s1 }
   0x3   :  { %5346 = sst [smem:[#allocation39_spill]] %s5315_s2 }
   0x4   :  { %5347 = sst [smem:[#allocation40_spill]] %s5316_s3 }
   0x5   :  { %5348 = sst [smem:[#allocation41_spill]] %s5317_s4 }
   0x6   :  { %5349 = sst [smem:[#allocation42_spill]] %s5318_s5 }
   0x7   :  { %5350 = sst [smem:[#allocation43_spill]] %s5319_s6 }
   0x8   :  { %5351 = sst [smem:[#allocation44_spill]] %s5320_s7 }
   0x9   :  { %5352 = sst [smem:[#allocation45_spill]] %s5321_s8 }
   0xa   :  { %5353 = sst [smem:[#allocation46_spill]] %s5322_s9 }
   0xb   :  { %5354 = sst [smem:[#allocation47_spill]] %s5323_s10 }
   0xc   :  { %31 = vsyncpa [#allocation9], 0 }
   0xd   :  { %32 = vsyncpa [#allocation12], 0 }
   0xe   :  { %33 = vsyncpa [#allocation15], 0 }
   0xf   :  { %34 = vsyncpa [#allocation18], 0 }
  0x10   :  { %35 = vsyncpa [#allocation21], 0 }
  0x11   :  { %36 = vsyncpa [#allocation10], 0  ;;  %s4126_s27 = smov [#allocation11]  }
  0x12   :  { %s56_s3 = sshll.u32 %s4126_s27, 4  ;;  %s57_s3 = int_to_ptr.vmem [resolvable:$true] %s56_s3 }
  0x13   :  { %s3846_s7 = scalar_lea.vmem %s57_s3, 128  ;;  %p3851_p1 = scmp.lt.s32.totalorder %s57_s3, %s57_s3 }
  0x14   :  { %p3847_p0 = scmp.ne.s32.totalorder %s57_s3, %s3846_s7  ;;  %p3852_p2 = scmp.lt.s32.totalorder %s3846_s7, %s3846_s7 }
  0x16   :  { %p3853_p3 = por %p3852_p2, %p3851_p1 }
  0x18   :  { %p3854_p4 = pnand %p3853_p3, %p3847_p0 }
  0x1a   :  { %3857 = shalt.err (!%p3854_p4)
}
  0x1b   :  { %s5342_s28 = smov 64   ;;  %s4128_s8 = smov 4  }
  0x1c   :  { %s5355_s0 = sld [smem:[#allocation41_spill]]  ;;  %s4129_s9 = smov [#allocation14]  }
  0x1d   :  { %s84_s30 = sshll.u32 %s4129_s9, 4  ;;  %s4130_s2 = smov [#allocation17]   ;;  %s85_s30 = int_to_ptr.vmem [resolvable:$true] %s84_s30 }
  0x1e   :  { %s106_s5 = sshll.u32 %s4130_s2, 4  ;;  %s3866_s10 = scalar_lea.vmem %s85_s30, 256  ;;  %s107_s5 = int_to_ptr.vmem [resolvable:$true] %s106_s5 }
  0x1f   :  { %p3867_p5 = scmp.ne.s32.totalorder %s85_s30, %s3866_s10  ;;  %p3871_p6 = scmp.lt.s32.totalorder %s85_s30, %s85_s30 }
  0x20   :  { %p3872_p7 = scmp.lt.s32.totalorder %s3866_s10, %s3866_s10 }
  0x22   :  { %62 = dma.hbm_to_vmem [thread:$0]  %s5355_s0, 128, %s57_s3, [#allocation12], %s5342_s28, %s5342_s28, %s4128_s8  }
  0x23   :  { %p3873_p8 = por %p3872_p7, %p3871_p6 }
  0x25   :  { %p3874_p9 = pnand %p3873_p8, %p3867_p5 }
  0x27   :  { %3877 = shalt.err (!%p3874_p9)
}
  0x28   :  { %s5356_s27 = sld [smem:[#allocation45_spill]]  ;;  %s3886_s3 = scalar_lea.vmem %s107_s5, 256 }
  0x29   :  { %p3887_p10 = scmp.ne.s32.totalorder %s107_s5, %s3886_s3  ;;  %p3891_p11 = scmp.lt.s32.totalorder %s107_s5, %s107_s5 }
  0x2a   :  { %p3892_p12 = scmp.lt.s32.totalorder %s3886_s3, %s3886_s3 }
  0x2c   :  { %p3893_p13 = por %p3892_p12, %p3891_p11 }
  0x2e   :  { %90 = dma.hbm_to_vmem [thread:$0]  %s5356_s27, 256, %s85_s30, [#allocation15], %s5342_s28, %s5342_s28, %s4128_s8  }
  0x2f   :  { %p3894_p0 = pnand %p3893_p13, %p3887_p10 }
  0x31   :  { %3897 = shalt.err (!%p3894_p0)
}
  0x32   :  { %s5357_s29 = sld [smem:[#allocation47_spill]]  ;;  %s4131_s0 = smov [#allocation20]  }
  0x33   :  { %s131_s9 = sshll.u32 %s4131_s0, 4  ;;  %s4132_s2 = smov [#allocation8]   ;;  %s132_s9 = int_to_ptr.vmem [resolvable:$true] %s131_s9 }
  0x34   :  { %s45_s30 = sshll.u32 %s4132_s2, 4  ;;  %s3906_s10 = scalar_lea.vmem %s132_s9, 16  ;;  %s46_s30 = int_to_ptr.vmem [resolvable:$true] %s45_s30 }
  0x35   :  { %p3907_p1 = scmp.ne.s32.totalorder %s132_s9, %s3906_s10  ;;  %s3910_s6 = scalar_lea.vmem %s132_s9, 32 }
  0x36   :  { %p3911_p2 = scmp.lt.s32.totalorder %s132_s9, %s132_s9  ;;  %p3912_p3 = scmp.lt.s32.totalorder %s3910_s6, %s3906_s10 }
  0x38   :  { %112 = dma.hbm_to_vmem [thread:$0]  %s5357_s29, 256, %s107_s5, [#allocation18], %s5342_s28, %s5342_s28, %s4128_s8  }
  0x39   :  { %p3913_p4 = por %p3912_p3, %p3911_p2 }
  0x3b   :  { %p3914_p5 = pnand %p3913_p4, %p3907_p1 }
  0x3d   :  { %3917 = shalt.err (!%p3914_p5)
}
  0x3e   :  { %134 = dma.hbm_to_vmem [thread:$0]  %s5326_s13, 16, %s132_s9, [#allocation21]  }
  0x3f   :  { %s3926_s3 = scalar_lea.vmem %s46_s30, 64  ;;  %p3931_p7 = scmp.lt.s32.totalorder %s46_s30, %s46_s30 }
  0x40   :  { %p3927_p6 = scmp.ne.s32.totalorder %s46_s30, %s3926_s3  ;;  %p3932_p8 = scmp.lt.s32.totalorder %s3926_s3, %s3926_s3 }
  0x42   :  { %p3933_p9 = por %p3932_p8, %p3931_p7 }
  0x44   :  { %p3934_p10 = pnand %p3933_p9, %p3927_p6 }
  0x46   :  { %3937 = shalt.err (!%p3934_p10)
}
  0x47   :  { %s5358_s4 = sld [smem:[#allocation38_spill]]  ;;  %s4133_s29 = smov [#allocation13]  }
  0x48   :  { %s70_s0 = sshll.u32 %s4133_s29, 4  ;;  %s4134_s2 = smov [#allocation16]   ;;  %s71_s0 = int_to_ptr.vmem [resolvable:$true] %s70_s0 }
  0x49   :  { %s97_s10 = sshll.u32 %s4134_s2, 4  ;;  %s3946_s6 = scalar_lea.vmem %s71_s0, 256  ;;  %s98_s10 = int_to_ptr.vmem [resolvable:$true] %s97_s10 }
  0x4a   :  { %p3947_p11 = scmp.ne.s32.totalorder %s71_s0, %s3946_s6  ;;  %p3951_p12 = scmp.lt.s32.totalorder %s71_s0, %s71_s0 }
  0x4b   :  { %p3952_p13 = scmp.lt.s32.totalorder %s3946_s6, %s3946_s6 }
  0x4d   :  { %48 = dma.hbm_to_vmem [thread:$0]  %s5358_s4, 64, %s46_s30, [#allocation9]  }
  0x4e   :  { %p3953_p0 = por %p3952_p13, %p3951_p12 }
  0x50   :  { %p3954_p1 = pnand %p3953_p0, %p3947_p11 }
  0x52   :  { %3957 = shalt.err (!%p3954_p1)
}
  0x53   :  { %s5359_s1 = sld [smem:[#allocation43_spill]]  ;;  %s3966_s30 = scalar_lea.vmem %s98_s10, 16 }
  0x54   :  { %p3967_p2 = scmp.ne.s32.totalorder %s98_s10, %s3966_s30  ;;  %s3970_s27 = scalar_lea.vmem %s98_s10, 32 }
  0x55   :  { %p3971_p3 = scmp.lt.s32.totalorder %s98_s10, %s98_s10  ;;  %p3972_p4 = scmp.lt.s32.totalorder %s3970_s27, %s3966_s30 }
  0x57   :  { %p3973_p5 = por %p3972_p4, %p3971_p3 }
  0x59   :  { %76 = dma.hbm_to_vmem [thread:$0]  %s5359_s1, 256, %s71_s0, [#allocation12], %s5342_s28, %s5342_s28, %s4128_s8  }
  0x5a   :  { %p3974_p6 = pnand %p3973_p5, %p3967_p2 }
  0x5c   :  { %3977 = shalt.err (!%p3974_p6)
}
  0x5d   :  { %s5360_s7 = sld [smem:[#allocation46_spill]]  ;;  %s4135_s4 = smov [#allocation19]  }
  0x5e   :  { %s119_s29 = sshll.u32 %s4135_s4, 4  ;;  %s4136_s2 = smov [#allocation22]   ;;  %s120_s29 = int_to_ptr.vmem [resolvable:$true] %s119_s29 }
  0x5f   :  { %s143_s6 = sshll.u32 %s4136_s2, 4  ;;  %s3986_s13 = scalar_lea.vmem %s120_s29, 16  ;;  %s144_s6 = int_to_ptr.vmem [resolvable:$true] %s143_s6 }
  0x60   :  { %p3987_p7 = scmp.ne.s32.totalorder %s120_s29, %s3986_s13  ;;  %s3990_s8 = scalar_lea.vmem %s120_s29, 32 }
  0x61   :  { %p3991_p8 = scmp.lt.s32.totalorder %s120_s29, %s120_s29  ;;  %p3992_p9 = scmp.lt.s32.totalorder %s3990_s8, %s3986_s13 }
  0x63   :  { %100 = dma.hbm_to_vmem [thread:$0]  %s5360_s7, 16, %s98_s10, [#allocation15]  }
  0x64   :  { %p3993_p10 = por %p3992_p9, %p3991_p8 }
  0x66   :  { %p3994_p11 = pnand %p3993_p10, %p3987_p7 }
  0x68   :  { %3997 = shalt.err (!%p3994_p11)
}
  0x69   :  { %122 = dma.hbm_to_vmem [thread:$0]  %s5324_s11, 16, %s120_s29, [#allocation18]  }
  0x6a   :  { %s4006_s1 = scalar_lea.vmem %s144_s6, 16  ;;  %s4010_s10 = scalar_lea.vmem %s144_s6, 32 }
  0x6b   :  { %p4007_p12 = scmp.ne.s32.totalorder %s144_s6, %s4006_s1  ;;  %p4011_p13 = scmp.lt.s32.totalorder %s144_s6, %s144_s6 }
  0x6c   :  { %p4012_p0 = scmp.lt.s32.totalorder %s4010_s10, %s4006_s1 }
  0x6e   :  { %p4013_p1 = por %p4012_p0, %p4011_p13 }
  0x70   :  { %p4014_p2 = pnand %p4013_p1, %p4007_p12 }
  0x72   :  { %4017 = shalt.err (!%p4014_p2)
}
  0x73   :  { %146 = dma.hbm_to_vmem [thread:$0]  %s5328_s15, 16, %s144_s6, [#allocation21]  }
  0x74   :  { %4074 = dma.done.wait [#allocation9], 64  }
  0x75   :  { %4075 = vsyncadd [#allocation9], 4294967232 }
  0x76   :  { %4076 = dma.done.wait [#allocation12], 384  }
  0x77   :  { %4077 = vsyncadd [#allocation12], 4294966912 }
  0x78   :  { %4078 = dma.done.wait [#allocation15], 272  }
  0x79   :  { %4079 = vsyncadd [#allocation15], 4294967024 }
  0x7a   :  { %4080 = dma.done.wait [#allocation18], 272  }
  0x7b   :  { %4081 = vsyncadd [#allocation18], 4294967024 }
  0x7c   :  { %4082 = dma.done.wait [#allocation21], 32  }
  0x7d   :  { %4083 = vsyncadd [#allocation21], 4294967264  ;;  %s5361_s5 = sld [smem:[#allocation40_spill]] }
  0x83   :  { %v228_v0 = vld [vmem:[%s5361_s5] sm:$0xff]  ;;  %v230_v1 = vld [vmem:[%s5361_s5 + $0x8] sm:$0xff] }
  0x84   :  { %229 = vst [vmem:[#allocation2] sm:$0xff] %v228_v0  ;;  %231 = vst [vmem:[#allocation2 + $0x8] sm:$0xff] %v230_v1 }
  0x85   :  { %239 = vsyncadd [#allocation3], 256  ;;  %v3113_v2 = vld [vmem:[%s5361_s5 + $0x10] sm:$0xff]  ;;  %v3114_v3 = vld [vmem:[%s5361_s5 + $0x18] sm:$0xff] }
  0x86   :  { %277 = vst [vmem:[#allocation2 + $0x10] sm:$0xff] %v3113_v2  ;;  %279 = vst [vmem:[#allocation2 + $0x18] sm:$0xff] %v3114_v3 }
  0x87   :  { %287 = vsyncadd [#allocation3 + $0x1], 256  ;;  %v323_v4 = vld [vmem:[%s5361_s5] sm:$0xff]  ;;  %v325_v5 = vld [vmem:[%s5361_s5 + $0x8] sm:$0xff] }
  0x88   :  { %324 = vst [vmem:[#allocation2 + $0x20] sm:$0xff] %v323_v4  ;;  %326 = vst [vmem:[#allocation2 + $0x28] sm:$0xff] %v325_v5 }
  0x89   :  { %334 = vsyncadd [#allocation3 + $0x2], 256  ;;  %v4336_v6 = vld [vmem:[#allocation11] sm:$0xf]  ;;  %v4338_v7 = vld [vmem:[#allocation11 + $0x4] sm:$0xf] }
  0x8a   :  { %s5362_s30 = sld [smem:[#allocation42_spill]]  ;;  %v4345_v9 = vld [vmem:[#allocation13] sm:$0xf]  ;;  %v4347_v10 = vld [vmem:[#allocation13 + $0x4] sm:$0xf]  ;;  %v4358_v14 = vmov 0.0  }
  0x8b   :  { %v4349_v11 = vld [vmem:[#allocation13 + $0x8] sm:$0xf]  ;;  %v4351_v12 = vld [vmem:[#allocation13 + $0xc] sm:$0xf]  ;;  %s5363_s3 = sld [smem:[#allocation44_spill]]  ;;  %v4360_v15 = vmov 0.0  }
  0x8c   :  { %s4362_s5 = smov 0  }
  0x90   :  { %v4343_v8 = vld [vmem:[%s5362_s30] ss:$0 sm:$0xff] }
  0x91   :  { %v4356_v13 = vld [vmem:[%s5363_s3] ss:$0 sm:$0xff] }
  0x92 LB: > { %s5364_s15 = sld [smem:[#allocation37_spill]]  ;;  %p368_p3 = scmp.lt.s32.totalorder %s4100_s5, 0  ;;  %s4100_s5 = sphi %s4362_s5, %s348_s5   ;;  %v4096_v15 = vphi %v4360_v15, %v5368_v15   ;;  %v4092_v14 = vphi %v4358_v14, %v5367_v14  }
  0x93   : > { %s369_s6 = ssub.s32 0, %s4100_s5 }
  0x94   : > { %s3117_s13 = smin.u32 %s4100_s5, %s369_s6 }
  0x95   : > { %s371_s8 = sand.u32 3, %s3117_s13  }
  0x96   : > { %s372_s0 = ssub.s32 0, %s371_s8 }
  0x97   : > { %s5397_s0 = smov (!%p368_p3, %s372_s0), %s371_s8 }
  0x98   : > { %v4376_v16 = vld [vmem:[%s5364_s15] sm:$0xf]  ;;  %v4381_v17 = vld [vmem:[%s5364_s15 + $0x4] sm:$0xf]  ;;  %v4386_v18 = vld [vmem:[%s5364_s15 + $0x8] sm:$0xf] }
  0x99   : > { %v4391_v19 = vld [vmem:[%s5364_s15 + $0xc] sm:$0xf]  ;;  %v4396_v20 = vld [vmem:[%s5364_s15 + $0x10] sm:$0xf]  ;;  %v4401_v21 = vld [vmem:[%s5364_s15 + $0x14] sm:$0xf] }
  0x9a   : > { %v4407_v22 = vld [vmem:[%s5364_s15 + $0x18] sm:$0xf]  ;;  %v4412_v23 = vld [vmem:[%s5364_s15 + $0x1c] sm:$0xf]  ;;  %v4417_v24 = vld [vmem:[%s5364_s15 + $0x20] sm:$0xf] }
  0x9b   : > { %v4422_v25 = vld [vmem:[%s5364_s15 + $0x24] sm:$0xf]  ;;  %v362_v26 = vld [vmem:[%s5364_s15 + $0x28] sm:$0xf]  ;;  %v363_v27 = vld [vmem:[%s5364_s15 + $0x2c] sm:$0xf] }
  0x9c   : > { %v364_v28 = vld [vmem:[%s5364_s15 + $0x30] sm:$0xf]  ;;  %v365_v29 = vld [vmem:[%s5364_s15 + $0x34] sm:$0xf]  ;;  %v366_v30 = vld [vmem:[%s5364_s15 + $0x38] sm:$0xf] }
  0x9d   : > { %v367_v31 = vld [vmem:[%s5364_s15 + $0x3c] sm:$0xf]  ;;  %p3119_p4 = scmp.lt.s32.totalorder %s5397_s0, 0  ;;  %s378_s9 = sadd.s32 4, %s5397_s0 }
  0x9f   : > { %s5399_s9 = smov (!%p3119_p4, %s378_s9), %s5397_s0 }
  0xa0   : > { %s3303_s1 = sshll.u32 %s5399_s9, 4  ;;  %s383_s30 = scalar_lea.sflag [#allocation3], %s5399_s9 }
  0xa1   : > { %s4445_s10 = scalar_lea.vmem [#allocation2], %s3303_s1 }
  0xa2   : > { %4084 = dma.done.wait %s383_s30, 256 }
  0xa3   : > { %4085 = vsyncadd %s383_s30, 4294967040  ;;  %s388_s11 = sadd.s32 3, %s4100_s5 }
  0xa4   : > { %p3122_p5 = scmp.ge.s32.totalorder %s388_s11, 4 }
  0xa5   : > { %p393_p6 = scmp.lt.s32.totalorder (!%p3122_p5), %s388_s11, 0  ;;  %s394_s3 = ssub.s32 (!%p3122_p5), 0, %s388_s11 }
  0xa6   : > { %392 = sbr.rel (%p3122_p5) target bundleno = 182 (0xb6), region = 250  ;;  %s3123_s7 = smin.u32 (!%p3122_p5), %s394_s3, %s388_s11 }
  0xa7   : > { %s396_s4 = sand.u32 (!%p3122_p5), 1, %s3123_s7   ;;  %s408_s29 = sand.u32 (!%p3122_p5), 3, %s3123_s7  }
  0xa8   : > { %s397_s2 = ssub.s32 (!%p3122_p5), 0, %s396_s4  ;;  %s409_s6 = ssub.s32 (!%p3122_p5), 0, %s408_s29 }
  0xa9   : > { %s5365_s15 = sld [smem:[#allocation40_spill]] (!%p3122_p5) }
  0xab   : > { %s5401_s2 = smov (!%p393_p6, %s397_s2), %s396_s4  ;;  %s5403_s6 = smov (!%p393_p6, %s409_s6), %s408_s29 }
  0xac   : > { %p3125_p7 = scmp.lt.s32.totalorder %s5401_s2, 0  ;;  %s403_s13 = sadd.s32 2, %s5401_s2 }
  0xad   : > { %p3128_p8 = scmp.lt.s32.totalorder %s5403_s6, 0  ;;  %s415_s8 = sadd.s32 4, %s5403_s6 }
  0xae   : > { %s5405_s13 = smov (!%p3125_p7, %s403_s13), %s5401_s2 }
  0xaf   : > { %s5407_s8 = smov (!%p3128_p8, %s415_s8), %s5403_s6  ;;  %s3129_s0 = sshll.u32 %s5405_s13, 6 }
  0xb0   : > { %s418_s9 = sshra.s32 %s3129_s0, 5  ;;  %s3304_s1 = sshll.u32 %s5407_s8, 4 }
  0xb1   : > { %s3130_s30 = sshll.u32 %s418_s9, 3  ;;  %s424_s3 = scalar_lea.vmem [#allocation2], %s3304_s1 }
  0xb2   : > { %s421_s11 = scalar_lea.vmem %s5365_s15, %s3130_s30  ;;  %s425_s7 = scalar_lea.sflag [#allocation3], %s5407_s8 }
  0xb3   : > { %v459_v32 = vld [vmem:[%s421_s11] sm:$0xff]  ;;  %v461_v33 = vld [vmem:[%s421_s11 + $0x8] sm:$0xff] }
  0xb4   : > { %460 = vst [vmem:[%s424_s3] sm:$0xff] %v459_v32  ;;  %462 = vst [vmem:[%s424_s3 + $0x8] sm:$0xff] %v461_v33 }
  0xb5   : > { %470 = vsyncadd %s425_s7, 256 }
  0xb6 PF: > { %v3140_v34 = vcombine.low %v366_v30, %v367_v31  ;;  %v3139_v35 = vcombine.low %v364_v28, %v365_v29  ;;  %v3138_v38 = vcombine.low %v362_v26, %v363_v27  ;;  %v3137_v39 = vcombine.low %v4417_v24, %v4422_v25  ;;  %s5366_s28 = sshll.u32 %s4100_s5, 6  ;;  %s348_s5 = sadd.s32 1, %s4100_s5  }
  0xb7   : > { %v3136_v40 = vcombine.low %v4407_v22, %v4412_v23  ;;  %v3135_v41 = vcombine.low %v4396_v20, %v4401_v21  ;;  %v3134_v42 = vcombine.low %v4386_v18, %v4391_v19  ;;  %v3133_v43 = vcombine.low %v4376_v16, %v4381_v17  ;;  %s4485_s15 = scalar_lea.vmem [#allocation4], %s5366_s28  ;;  %p345_p9 = scmp.ge.s32.totalorder %s348_s5, 2  }
  0xb8   : > { %3449 = vmatprep.subr.bf16.mxu0 %v3140_v34  ;;  %v3142_v48 = vcombine.low %v4336_v6, %v4338_v7  ;;  %v3149_v49 = vcombine.low %v4349_v11, %v4351_v12  ;;  %vm606_vm0 = vcmask 130048   ;;  %v3148_v62 = vcombine.low %v4345_v9, %v4347_v10  ;;  %s4644_s5 = smov (%p345_p9), 0  }
  0xb9   : > { %3450 = vmatpush3.bf16.msra.mxu0 %v3140_v34  ;;  %vm714_vm1 = vcmask 261120   ;;  %vm4138_vm2 = vmmov (%p345_p9), 0   ;;  %vm981_vm3 = vcmask (%p345_p9), 257024  }
  0xba   : > { %3451 = vmatprep.subr.bf16.mxu0 %v3139_v35  ;;  %3473 = vmatprep.subr.bf16.mxu1 %v3142_v48 }
  0xbb   : > { %v471_v36 = vld [vmem:[%s4445_s10] sm:$0xff]  ;;  %v472_v44 = vld [vmem:[%s4445_s10 + $0x8] sm:$0xff]  ;;  %3474 = vmatpush3.bf16.msra.mxu1 %v3142_v48 }
  0xbc   : > { %v473_v37 = vunpack.c.l.s8.bf16 %v471_v36  ;;  %v474_v45 = vunpack.c.h.s8.bf16 %v471_v36  ;;  %v475_v46 = vunpack.c.l.s8.bf16 %v472_v44  ;;  %v476_v47 = vunpack.c.h.s8.bf16 %v472_v44  ;;  %3483 = vmatprep.subr.bf16.mxu1 %v3149_v49 }
  0xbd   : > { %3452 = vmatpush3.bf16.msra.mxu0 %v3139_v35 }
  0xbe   : > { %3465 = vmatprep.mubr.bf16.mxu0 %v473_v37  ;;  %3453 = vmatprep.subr.bf16.mxu0 %v3138_v38 }
  0xc1   : > { %3454 = vmatpush3.bf16.msra.mxu0 %v3138_v38 }
  0xc2   : > { %3455 = vmatprep.subr.bf16.mxu0 %v3137_v39 }
  0xc5   : > { %3456 = vmatpush3.bf16.msra.mxu0 %v3137_v39 }
  0xc6   : > { %3457 = vmatprep.subr.bf16.mxu0 %v3136_v40 }
  0xc9   : > { %3458 = vmatpush3.bf16.msra.mxu0 %v3136_v40 }
  0xca   : > { %3459 = vmatprep.subr.bf16.mxu0 %v3135_v41 }
  0xcd   : > { %3460 = vmatpush3.bf16.msra.mxu0 %v3135_v41 }
  0xce   : > { %3461 = vmatprep.subr.bf16.mxu0 %v3134_v42 }
  0xd1   : > { %3462 = vmatpush3.bf16.msra.mxu0 %v3134_v42 }
  0xd2   : > { %3463 = vmatprep.subr.bf16.mxu0 %v3133_v43 }
  0xd5   : > { %3464 = vmatpush3.bf16.msra.mxu0 %v3133_v43 }
  0xd8   : > { %3466 = vmatmul.mubr.bf16.vlgmr.msra.gmra.mxu0 %v474_v45 }
  0xd9   : > { %3469 = vmatprep.mubr.bf16.mxu0 %v475_v46 }
  0xe0   : > { %3470 = vmatmul.mubr.bf16.gmra.mxu0 %v476_v47 }
 0x198   : > { %v3467_v50 = vpop.f32.mrf.mxu0 }
 0x19a   : > { %v559_v51 = vpop.f32.mrf.mxu0 }
 0x19c   : > { %v3468_v52 = vpop.f32.mrf.mxu0 }
 0x19d   : > { %v591_v55 = vpack.c.bf16 %v3468_v52, %v3467_v50 }
 0x19e   : > { %v562_v53 = vpop.f32.mrf.mxu0 }
 0x19f   : > { %v590_v54 = vpack.c.bf16 %v562_v53, %v559_v51 }
 0x1a0   : > { %v3471_v56 = vpop.f32.mrf.mxu0 }
 0x1a1   : > { %3475 = vmatprep.mubr.msk.bf16.mxu1 %vm606_vm0, %v590_v54 }
 0x1a2   : > { %v575_v57 = vpop.f32.mrf.mxu0  ;;  %3476 = vmatmul.mubr.msk.bf16.vlgmr.msra.gmra.mxu1 %vm606_vm0, %v591_v55 }
 0x1a3   : > { %3484 = vmatpush3.bf16.msra.mxu1 %v3149_v49 }
 0x1a4   : > { %v3472_v58 = vpop.f32.mrf.mxu0  ;;  %3485 = vmatprep.subr.bf16.mxu1 %v3148_v62 }
 0x1a5   : > { %v593_v61 = vpack.c.bf16 %v3472_v58, %v3471_v56 }
 0x1a6   : > { %v578_v59 = vpop.f32.mrf.mxu0 }
 0x1a7   : > { %v592_v60 = vpack.c.bf16 %v578_v59, %v575_v57  ;;  %3486 = vmatpush3.bf16.msra.mxu1 %v3148_v62 }
 0x1a9   : > { %3479 = vmatprep.mubr.msk.bf16.mxu1 %vm606_vm0, %v592_v60 }
 0x1aa   : > { %3480 = vmatmul.mubr.msk.bf16.gmra.mxu1 %vm606_vm0, %v593_v61 }
 0x262   : > { %v3477_v63 = vpop.f32.mrf.mxu1 }
 0x263   : > { %v662_v4 = vadd.f32 %v3477_v63, %v4343_v8 }
 0x264   : > { %v653_v0 = vpop.f32.mrf.mxu1 }
 0x265   : > { %v654_v2 = vadd.f32 %v4343_v8, %v653_v0  ;;  %v686_v21 = vmax.f32 %v662_v4, 0.0 }
 0x266   : > { %v3478_v1 = vpop.f32.mrf.mxu1 }
 0x267   : > { %v665_v3 = vadd.f32 %v3478_v1, %v4343_v8  ;;  %v684_v19 = vmax.f32 %v654_v2, 0.0 }
 0x268   : > { %v656_v5 = vpop.f32.mrf.mxu1 }
 0x269   : > { %v657_v16 = vadd.f32 %v4343_v8, %v656_v5  ;;  %v687_v17 = vmax.f32 %v665_v3, 0.0 }
 0x26a   : > { %v3481_v18 = vpop.f32.mrf.mxu1 }
 0x26b   : > { %v685_v20 = vmax.f32 %v657_v16, 0.0  ;;  %v693_v24 = vpack.c.bf16 %v687_v17, %v686_v21  ;;  %v678_v28 = vadd.f32 %v3481_v18, %v4343_v8 }
 0x26c   : > { %v669_v22 = vpop.f32.mrf.mxu1 }
 0x26d   : > { %v692_v23 = vpack.c.bf16 %v685_v20, %v684_v19  ;;  %v670_v26 = vadd.f32 %v4343_v8, %v669_v22  ;;  %v690_v34 = vmax.f32 %v678_v28, 0.0 }
 0x26e   : > { %v3482_v25 = vpop.f32.mrf.mxu1 }
 0x26f   : > { %v681_v27 = vadd.f32 %v3482_v25, %v4343_v8  ;;  %3487 = vmatprep.mubr.msk.bf16.mxu1 %vm714_vm1, %v692_v23  ;;  %v688_v32 = vmax.f32 %v670_v26, 0.0 }
 0x270   : > { %v672_v29 = vpop.f32.mrf.mxu1  ;;  %3488 = vmatmul.mubr.msk.bf16.vlgmr.msra.gmra.mxu1 %vm714_vm1, %v693_v24 }
 0x271   : > { %v673_v30 = vadd.f32 %v4343_v8, %v672_v29  ;;  %v691_v31 = vmax.f32 %v681_v27, 0.0 }
 0x273   : > { %v689_v33 = vmax.f32 %v673_v30, 0.0  ;;  %v695_v36 = vpack.c.bf16 %v691_v31, %v690_v34 }
 0x275   : > { %v694_v35 = vpack.c.bf16 %v689_v33, %v688_v32 }
 0x277   : > { %3491 = vmatprep.mubr.msk.bf16.mxu1 %vm714_vm1, %v694_v35 }
 0x278   : > { %3492 = vmatmul.mubr.msk.bf16.gmra.mxu1 %vm714_vm1, %v695_v36 }
 0x330   : > { %v3489_v37 = vpop.f32.mrf.mxu1 }
 0x331   : > { %v770_v38 = vadd.f32 %v3489_v37, %v4356_v13 }
 0x332   : > { %v761_v39 = vpop.f32.mrf.mxu1 }
 0x333   : > { %v794_v40 = vmax.f32 %v770_v38, 0.0  ;;  %v762_v41 = vadd.f32 %v4356_v13, %v761_v39 }
 0x334   : > { %v3490_v42 = vpop.f32.mrf.mxu1 }
 0x335   : > { %803 = vst.msk [vmem:[%s4485_s15 + $0x10] sm:$0xff] %vm714_vm1, %v794_v40  ;;  %v792_v43 = vmax.f32 %v762_v41, 0.0  ;;  %v773_v44 = vadd.f32 %v3490_v42, %v4356_v13  ;;  %v833_v53 = vmul.f32 %v794_v40, %v794_v40  ;;  %v812_v60 = vsel %vm714_vm1, %v794_v40, 0.0 }
 0x336   : > { %v764_v45 = vpop.f32.mrf.mxu1 }
 0x337   : > { %801 = vst.msk [vmem:[%s4485_s15] sm:$0xff] %vm714_vm1, %v792_v43  ;;  %v795_v46 = vmax.f32 %v773_v44, 0.0  ;;  %v765_v47 = vadd.f32 %v4356_v13, %v764_v45  ;;  %v831_v50 = vmul.f32 %v792_v43, %v792_v43  ;;  %v809_v56 = vsel %vm714_vm1, %v792_v43, 0.0 }
 0x338   : > { %v3493_v48 = vpop.f32.mrf.mxu1  ;;  %v842_v4 = vsel %vm714_vm1, %v833_v53, 0.0 }
 0x339   : > { %804 = vst.msk [vmem:[%s4485_s15 + $0x18] sm:$0xff] %vm714_vm1, %v795_v46  ;;  %v786_v49 = vadd.f32 %v3493_v48, %v4356_v13  ;;  %v793_v51 = vmax.f32 %v765_v47, 0.0  ;;  %v839_v63 = vsel %vm714_vm1, %v831_v50, 0.0  ;;  %v834_v0 = vmul.f32 %v795_v46, %v795_v46 }
 0x33a   : > { %v777_v52 = vpop.f32.mrf.mxu1  ;;  %v814_v17 = vsel %vm714_vm1, %v795_v46, 0.0 }
 0x33b   : > { %v798_v54 = vmax.f32 %v786_v49, 0.0  ;;  %v778_v55 = vadd.f32 %v4356_v13, %v777_v52  ;;  %802 = vst.msk [vmem:[%s4485_s15 + $0x8] sm:$0xff] %vm714_vm1, %v793_v51  ;;  %v810_v57 = vsel %vm714_vm1, %v793_v51, 0.0  ;;  %v832_v58 = vmul.f32 %v793_v51, %v793_v51 }
 0x33c   : > { %v3494_v59 = vpop.f32.mrf.mxu1  ;;  %v811_v61 = vadd.f32 %v810_v57, %v809_v56  ;;  %v844_v23 = vsel %vm714_vm1, %v834_v0, 0.0 }
 0x33d   : > { %807 = vst.msk [vmem:[%s4485_s15 + $0x30] sm:$0xff] %vm714_vm1, %v798_v54  ;;  %v796_v62 = vmax.f32 %v778_v55, 0.0  ;;  %v840_v1 = vsel %vm714_vm1, %v832_v58, 0.0  ;;  %v789_v2 = vadd.f32 %v3494_v59, %v4356_v13  ;;  %v837_v28 = vmul.f32 %v798_v54, %v798_v54 }
 0x33e   : > { %v780_v3 = vpop.f32.mrf.mxu1  ;;  %v813_v5 = vadd.f32 %v812_v60, %v811_v61  ;;  %v841_v16 = vadd.f32 %v840_v1, %v839_v63  ;;  %v820_v34 = vsel %vm714_vm1, %v798_v54, 0.0  ;;  %v4137_v61 = vmov (%p345_p9), 0.0  }
 0x33f   : > { %805 = vst.msk [vmem:[%s4485_s15 + $0x20] sm:$0xff] %vm714_vm1, %v796_v62  ;;  %v835_v18 = vmul.f32 %v796_v62, %v796_v62  ;;  %v799_v19 = vmax.f32 %v789_v2, 0.0  ;;  %v781_v20 = vadd.f32 %v4356_v13, %v780_v3  ;;  %v816_v24 = vsel %vm714_vm1, %v796_v62, 0.0  ;;  %3495 = vmatprep.subr.bf16.mxu0 (%p345_p9), %v4137_v61  ;;  %3511 = vmatprep.mubr.msk.bf16.mxu0 (%p345_p9), %vm4138_vm2, %v4137_v61 }
 0x340   : > { %v843_v21 = vadd.f32 %v842_v4, %v841_v16  ;;  %v815_v22 = vadd.f32 %v814_v17, %v813_v5  ;;  %v850_v39 = vsel %vm714_vm1, %v837_v28, 0.0 }
 0x341   : > { %808 = vst.msk [vmem:[%s4485_s15 + $0x38] sm:$0xff] %vm714_vm1, %v799_v19  ;;  %v797_v25 = vmax.f32 %v781_v20, 0.0  ;;  %v846_v29 = vsel %vm714_vm1, %v835_v18, 0.0  ;;  %v838_v35 = vmul.f32 %v799_v19, %v799_v19  ;;  %v822_v40 = vsel %vm714_vm1, %v799_v19, 0.0 }
 0x342   : > { %v817_v26 = vadd.f32 %v816_v24, %v815_v22  ;;  %v845_v27 = vadd.f32 %v844_v23, %v843_v21 }
 0x343   : > { %806 = vst.msk [vmem:[%s4485_s15 + $0x28] sm:$0xff] %vm714_vm1, %v797_v25  ;;  %v818_v30 = vsel %vm714_vm1, %v797_v25, 0.0  ;;  %v836_v31 = vmul.f32 %v797_v25, %v797_v25  ;;  %v852_v43 = vsel %vm714_vm1, %v838_v35, 0.0 }
 0x344   : > { %v847_v32 = vadd.f32 %v846_v29, %v845_v27  ;;  %v819_v33 = vadd.f32 %v818_v30, %v817_v26 }
 0x345   : > { %v848_v36 = vsel %vm714_vm1, %v836_v31, 0.0 }
 0x346   : > { %v821_v37 = vadd.f32 %v820_v34, %v819_v33  ;;  %v849_v38 = vadd.f32 %v848_v36, %v847_v32 }
 0x348   : > { %v823_v41 = vadd.f32 %v822_v40, %v821_v37  ;;  %v851_v42 = vadd.f32 %v850_v39, %v849_v38 }
 0x34a   : > { %v824_v44 = vrot.slane %v823_v41, 4  ;;  %v853_v45 = vadd.f32 %v852_v43, %v851_v42  ;;  %v883_v1 = vld [vmem:[#allocation4 + $0x70] sm:$0xff] (%p345_p9)  ;;  %v884_v2 = vld [vmem:[#allocation4 + $0x78] sm:$0xff] (%p345_p9)  ;;  %v881_v3 = vld [vmem:[#allocation4 + $0x60] sm:$0xff] (%p345_p9) }
 0x34b   :  { %v882_v6 = vld [vmem:[#allocation4 + $0x68] sm:$0xff] (%p345_p9)  ;;  %v879_v7 = vld [vmem:[#allocation4 + $0x50] sm:$0xff] (%p345_p9)  ;;  %v880_v8 = vld [vmem:[#allocation4 + $0x58] sm:$0xff] (%p345_p9) }
 0x34c   : > { %v825_v46 = vadd.f32 %v824_v44, %v823_v41  ;;  %v854_v47 = vrot.slane %v853_v45, 4  ;;  %v877_v9 = vld [vmem:[#allocation4 + $0x40] sm:$0xff] (%p345_p9)  ;;  %v878_v10 = vld [vmem:[#allocation4 + $0x48] sm:$0xff] (%p345_p9)  ;;  %v875_v11 = vld [vmem:[#allocation4 + $0x30] sm:$0xff] (%p345_p9) }
 0x34d   :  { %v876_v12 = vld [vmem:[#allocation4 + $0x38] sm:$0xff] (%p345_p9)  ;;  %v4541_v13 = vld [vmem:[#allocation4 + $0x20] sm:$0xff] (%p345_p9)  ;;  %v874_v17 = vld [vmem:[#allocation4 + $0x28] sm:$0xff] (%p345_p9) }
 0x34e   : > { %v826_v48 = vrot.slane %v825_v46, 2  ;;  %v855_v49 = vadd.f32 %v854_v47, %v853_v45  ;;  %v871_v18 = vld [vmem:[#allocation4 + $0x10] sm:$0xff] (%p345_p9)  ;;  %v872_v19 = vld [vmem:[#allocation4 + $0x18] sm:$0xff] (%p345_p9)  ;;  %v869_v26 = vld [vmem:[#allocation4] sm:$0xff] (%p345_p9) }
 0x34f   :  { %v870_v36 = vld [vmem:[#allocation4 + $0x8] sm:$0xff] (%p345_p9) }
 0x350   : > { %v827_v50 = vadd.f32 %v826_v48, %v825_v46  ;;  %v856_v51 = vrot.slane %v855_v49, 2 }
 0x352   : > { %v828_v52 = vrot.slane %v827_v50, 1  ;;  %v857_v53 = vadd.f32 %v856_v51, %v855_v49 }
 0x354   : > { %v829_v54 = vadd.f32 %v828_v52, %v827_v50  ;;  %v858_v55 = vrot.slane %v857_v53, 1 }
 0x356   : > { %v830_v56 = vadd.f32 %v4096_v15, %v829_v54   ;;  %v859_v57 = vadd.f32 %v858_v55, %v857_v53  ;;  %347 = sbr.rel (!%p345_p9) target bundleno = 146 (0x92), region = 417 }
 0x358   : > { %v860_v58 = vadd.f32 %v4092_v14, %v859_v57   ;;  %v5368_v15 = vmov %v830_v56  ;;  %v4534_v59 = vmul.f32 (%p345_p9), 0.0078125, %v830_v56 }
 0x35a   : > { %v5367_v14 = vmov %v860_v58  ;;  %v863_v60 = vmul.f32 (%p345_p9), 0.0078125, %v860_v58  ;;  %v864_v15 = vmul.f32 (%p345_p9), %v4534_v59, %v4534_v59  ;;  %v900_v4 = vsub.f32 (%p345_p9), %v884_v2, %v4534_v59 }
 0x35b   :  { %v899_v14 = vsub.f32 %v883_v1, %v4534_v59  ;;  %v897_v5 = vsub.f32 %v881_v3, %v4534_v59  ;;  %v898_v16 = vsub.f32 %v882_v6, %v4534_v59  ;;  %v895_v20 = vsub.f32 %v879_v7, %v4534_v59 }
 0x35c   :  { %v865_v62 = vsub.f32 %v863_v60, %v864_v15  ;;  %v896_v21 = vsub.f32 %v880_v8, %v4534_v59  ;;  %v893_v22 = vsub.f32 %v877_v9, %v4534_v59  ;;  %v894_v23 = vsub.f32 %v878_v10, %v4534_v59 }
 0x35d   :  { %v891_v24 = vsub.f32 %v875_v11, %v4534_v59  ;;  %v892_v25 = vsub.f32 %v876_v12, %v4534_v59  ;;  %v889_v28 = vsub.f32 %v4541_v13, %v4534_v59  ;;  %v890_v29 = vsub.f32 %v874_v17, %v4534_v59  ;;  %v1014_v13 = vld [vmem:[#allocation8] sm:$0xf]  ;;  %v4627_v17 = vld [vmem:[#allocation16] ss:$0 sm:$0xff] }
 0x35e   :  { %v866_v63 = vmax.f32 %v865_v62, 0.0  ;;  %v887_v30 = vsub.f32 %v871_v18, %v4534_v59  ;;  %v888_v31 = vsub.f32 %v872_v19, %v4534_v59  ;;  %v885_v40 = vsub.f32 %v869_v26, %v4534_v59  ;;  %v4629_v18 = vld [vmem:[#allocation17] sm:$0xf]  ;;  %v4631_v19 = vld [vmem:[#allocation17 + $0x4] sm:$0xf] }
 0x35f   :  { %v886_v48 = vsub.f32 %v870_v36, %v4534_v59 }
 0x360   :  { %v867_v0 = vadd.f32 1e-05, %v866_v63 }
 0x362   :  { %3772 = vrsqrt.f32 %v867_v0 }
 0x36f   :  { %v3773_v27 = vpop.eup %3772 }
 0x370   :  { %v915_v32 = vmul.f32 %v3773_v27, %v899_v14  ;;  %v916_v33 = vmul.f32 %v3773_v27, %v900_v4  ;;  %v913_v34 = vmul.f32 %v3773_v27, %v897_v5  ;;  %v914_v35 = vmul.f32 %v3773_v27, %v898_v16  ;;  %v4619_v14 = vld [vmem:[#allocation14] sm:$0xf]  ;;  %v4621_v4 = vld [vmem:[#allocation14 + $0x4] sm:$0xf]  ;;  %v4623_v5 = vld [vmem:[#allocation14 + $0x8] sm:$0xf] }
 0x371   :  { %v4558_v37 = vmul.f32 %v3773_v27, %v895_v20  ;;  %v4560_v38 = vmul.f32 %v3773_v27, %v896_v21  ;;  %v4562_v39 = vmul.f32 %v3773_v27, %v893_v22  ;;  %v4565_v44 = vmul.f32 %v3773_v27, %v894_v23  ;;  %v4625_v16 = vld [vmem:[#allocation14 + $0xc] sm:$0xf]  ;;  %v4633_v20 = vld [vmem:[#allocation17 + $0x8] sm:$0xf]  ;;  %v4635_v21 = vld [vmem:[#allocation17 + $0xc] sm:$0xf] }
 0x372   :  { %v924_v41 = vpack.c.bf16 %v916_v33, %v915_v32  ;;  %v3319_v42 = vpack.c.bf16 %v915_v32, %v915_v32  ;;  %v3320_v43 = vpack.c.bf16 %v916_v33, %v916_v33  ;;  %v3317_v45 = vpack.c.bf16 %v913_v34, %v913_v34  ;;  %v4637_v22 = vld [vmem:[#allocation19] ss:$0 sm:$0xff] }
 0x373   :  { %v3318_v46 = vpack.c.bf16 %v914_v35, %v914_v35  ;;  %v3315_v47 = vpack.c.bf16 %v4558_v37, %v4558_v37  ;;  %v923_v49 = vpack.c.bf16 %v914_v35, %v913_v34  ;;  %v3316_v50 = vpack.c.bf16 %v4560_v38, %v4560_v38 }
 0x374   :  { %996 = vst.msk [vmem:[#allocation5 + $0x38] sm:$0xf] %vm981_vm3, %v3319_v42  ;;  %997 = vst.msk [vmem:[#allocation5 + $0x3c] sm:$0xf] %vm981_vm3, %v3320_v43  ;;  %3496 = vmatpush3.bf16.msra.mxu0 %v924_v41  ;;  %v3313_v51 = vpack.c.bf16 %v4562_v39, %v4562_v39  ;;  %v3314_v52 = vpack.c.bf16 %v4565_v44, %v4565_v44  ;;  %v907_v53 = vmul.f32 %v3773_v27, %v891_v24 }
 0x375   :  { %1012 = vst.msk [vmem:[#allocation6 + $0x38] sm:$0xf] %vm981_vm3, %v3319_v42  ;;  %1013 = vst.msk [vmem:[#allocation6 + $0x3c] sm:$0xf] %vm981_vm3, %v3320_v43  ;;  %3497 = vmatprep.subr.bf16.mxu0 %v4137_v61  ;;  %v908_v54 = vmul.f32 %v3773_v27, %v892_v25  ;;  %v905_v55 = vmul.f32 %v3773_v27, %v889_v28  ;;  %v906_v56 = vmul.f32 %v3773_v27, %v890_v29  ;;  %v4640_v28 = vmov 0.0  }
 0x376   :  { %994 = vst.msk [vmem:[#allocation5 + $0x30] sm:$0xf] %vm981_vm3, %v3317_v45  ;;  %995 = vst.msk [vmem:[#allocation5 + $0x34] sm:$0xf] %vm981_vm3, %v3318_v46  ;;  %v903_v57 = vmul.f32 %v3773_v27, %v887_v30  ;;  %v904_v58 = vmul.f32 %v3773_v27, %v888_v31  ;;  %v3311_v59 = vpack.c.bf16 %v907_v53, %v907_v53  ;;  %v4642_v29 = vmov 0.0  }
 0x377   :  { %1010 = vst.msk [vmem:[#allocation6 + $0x30] sm:$0xf] %vm981_vm3, %v3317_v45  ;;  %1011 = vst.msk [vmem:[#allocation6 + $0x34] sm:$0xf] %vm981_vm3, %v3318_v46  ;;  %v3312_v60 = vpack.c.bf16 %v908_v54, %v908_v54  ;;  %v901_v15 = vmul.f32 %v3773_v27, %v885_v40  ;;  %v902_v62 = vmul.f32 %v3773_v27, %v886_v48 }
 0x378   :  { %992 = vst.msk [vmem:[#allocation5 + $0x28] sm:$0xf] %vm981_vm3, %v3315_v47  ;;  %1008 = vst.msk [vmem:[#allocation6 + $0x28] sm:$0xf] %vm981_vm3, %v3315_v47  ;;  %3498 = vmatpush3.bf16.msra.mxu0 %v923_v49  ;;  %v922_v63 = vpack.c.bf16 %v4560_v38, %v4558_v37  ;;  %v3309_v0 = vpack.c.bf16 %v905_v55, %v905_v55  ;;  %v3310_v1 = vpack.c.bf16 %v906_v56, %v906_v56 }
 0x379   :  { %993 = vst.msk [vmem:[#allocation5 + $0x2c] sm:$0xf] %vm981_vm3, %v3316_v50  ;;  %1009 = vst.msk [vmem:[#allocation6 + $0x2c] sm:$0xf] %vm981_vm3, %v3316_v50  ;;  %v3307_v2 = vpack.c.bf16 %v903_v57, %v903_v57  ;;  %3499 = vmatprep.subr.bf16.mxu0 %v4137_v61  ;;  %v3308_v3 = vpack.c.bf16 %v904_v58, %v904_v58  ;;  %v3305_v6 = vpack.c.bf16 %v901_v15, %v901_v15 }
 0x37a   :  { %990 = vst.msk [vmem:[#allocation5 + $0x20] sm:$0xf] %vm981_vm3, %v3313_v51  ;;  %991 = vst.msk [vmem:[#allocation5 + $0x24] sm:$0xf] %vm981_vm3, %v3314_v52  ;;  %v3306_v7 = vpack.c.bf16 %v902_v62, %v902_v62  ;;  %v921_v8 = vpack.c.bf16 %v4565_v44, %v4562_v39  ;;  %v920_v9 = vpack.c.bf16 %v908_v54, %v907_v53 }
 0x37b   :  { %1006 = vst.msk [vmem:[#allocation6 + $0x20] sm:$0xf] %vm981_vm3, %v3313_v51  ;;  %1007 = vst.msk [vmem:[#allocation6 + $0x24] sm:$0xf] %vm981_vm3, %v3314_v52  ;;  %v919_v10 = vpack.c.bf16 %v906_v56, %v905_v55  ;;  %v918_v11 = vpack.c.bf16 %v904_v58, %v903_v57  ;;  %v917_v12 = vpack.c.bf16 %v902_v62, %v901_v15 }
 0x37c   :  { %988 = vst.msk [vmem:[#allocation5 + $0x18] sm:$0xf] %vm981_vm3, %v3311_v59  ;;  %989 = vst.msk [vmem:[#allocation5 + $0x1c] sm:$0xf] %vm981_vm3, %v3312_v60  ;;  %3500 = vmatpush3.bf16.msra.mxu0 %v922_v63 }
 0x37d   :  { %1004 = vst.msk [vmem:[#allocation6 + $0x18] sm:$0xf] %vm981_vm3, %v3311_v59  ;;  %1005 = vst.msk [vmem:[#allocation6 + $0x1c] sm:$0xf] %vm981_vm3, %v3312_v60  ;;  %3501 = vmatprep.subr.bf16.mxu0 %v4137_v61 }
 0x37e   :  { %986 = vst.msk [vmem:[#allocation5 + $0x10] sm:$0xf] %vm981_vm3, %v3309_v0  ;;  %987 = vst.msk [vmem:[#allocation5 + $0x14] sm:$0xf] %vm981_vm3, %v3310_v1 }
 0x37f   :  { %1002 = vst.msk [vmem:[#allocation6 + $0x10] sm:$0xf] %vm981_vm3, %v3309_v0  ;;  %1003 = vst.msk [vmem:[#allocation6 + $0x14] sm:$0xf] %vm981_vm3, %v3310_v1 }
 0x380   :  { %984 = vst.msk [vmem:[#allocation5 + $0x8] sm:$0xf] %vm981_vm3, %v3307_v2  ;;  %1000 = vst.msk [vmem:[#allocation6 + $0x8] sm:$0xf] %vm981_vm3, %v3307_v2  ;;  %3502 = vmatpush3.bf16.msra.mxu0 %v921_v8 }
 0x381   :  { %985 = vst.msk [vmem:[#allocation5 + $0xc] sm:$0xf] %vm981_vm3, %v3308_v3  ;;  %1001 = vst.msk [vmem:[#allocation6 + $0xc] sm:$0xf] %vm981_vm3, %v3308_v3  ;;  %3503 = vmatprep.subr.bf16.mxu0 %v4137_v61 }
 0x382   :  { %982 = vst.msk [vmem:[#allocation5] sm:$0xf] %vm981_vm3, %v3305_v6  ;;  %983 = vst.msk [vmem:[#allocation5 + $0x4] sm:$0xf] %vm981_vm3, %v3306_v7 }
 0x383   :  { %998 = vst.msk [vmem:[#allocation6] sm:$0xf] %vm981_vm3, %v3305_v6  ;;  %999 = vst.msk [vmem:[#allocation6 + $0x4] sm:$0xf] %vm981_vm3, %v3306_v7 }
 0x384   :  { %3504 = vmatpush3.bf16.msra.mxu0 %v920_v9 }
 0x385   :  { %3505 = vmatprep.subr.bf16.mxu0 %v4137_v61 }
 0x388   :  { %3506 = vmatpush3.bf16.msra.mxu0 %v919_v10 }
 0x389   :  { %3507 = vmatprep.subr.bf16.mxu0 %v4137_v61 }
 0x38c   :  { %3508 = vmatpush3.bf16.msra.mxu0 %v918_v11 }
 0x38d   :  { %3509 = vmatprep.subr.bf16.mxu0 %v4137_v61 }
 0x390   :  { %3510 = vmatpush3.bf16.msra.mxu0 %v917_v12 }
 0x393   :  { %3512 = vmatmul.mubr.bf16.vlgmr.msra.gmra.mxu0 %v1014_v13 }
 0x453   :  { %v1049_v23 = vpop.f32.mrf.mxu0 }
 0x454   :  { %v1055_v24 = vpack.c.bf16 %v1049_v23, %v1049_v23 }
 0x455   :  { %v3513_v25 = vpop.f32.mrf.mxu0 }
 0x456   :  { %1056 = vst.msk [vmem:[#allocation7] sm:$0xf] %vm981_vm3, %v1055_v24 }
 0x457   :  { %v1052_v26 = vpop.f32.mrf.mxu0 }
 0x459   :  { %v3514_v27 = vpop.f32.mrf.mxu0 }
 0x45a LB: > { %v4655_v30 = vld [vmem:[#allocation5] sm:$0xf]  ;;  %v4657_v31 = vld [vmem:[#allocation5 + $0x4] sm:$0xf]  ;;  %v4659_v32 = vld [vmem:[#allocation5 + $0x8] sm:$0xf]  ;;  %s4112_s5 = sphi %s4644_s5, %s1072_s5   ;;  %v4108_v29 = vphi %v4642_v29, %v5372_v29   ;;  %v4104_v28 = vphi %v4640_v28, %v5371_v28  }
 0x45b   : > { %v4661_v33 = vld [vmem:[#allocation5 + $0xc] sm:$0xf]  ;;  %v4663_v34 = vld [vmem:[#allocation5 + $0x10] sm:$0xf]  ;;  %v4665_v35 = vld [vmem:[#allocation5 + $0x14] sm:$0xf] }
 0x45c   : > { %v4668_v36 = vld [vmem:[#allocation5 + $0x18] sm:$0xf]  ;;  %v4670_v37 = vld [vmem:[#allocation5 + $0x1c] sm:$0xf]  ;;  %s1092_s10 = sadd.s32 2, %s4112_s5 }
 0x45d   : > { %v4673_v38 = vld [vmem:[#allocation5 + $0x20] sm:$0xf]  ;;  %v4675_v39 = vld [vmem:[#allocation5 + $0x24] sm:$0xf]  ;;  %v1086_v40 = vld [vmem:[#allocation5 + $0x28] sm:$0xf] }
 0x45e   : > { %v1087_v41 = vld [vmem:[#allocation5 + $0x2c] sm:$0xf]  ;;  %v1088_v42 = vld [vmem:[#allocation5 + $0x30] sm:$0xf]  ;;  %v1089_v43 = vld [vmem:[#allocation5 + $0x34] sm:$0xf] }
 0x45f   : > { %v1090_v44 = vld [vmem:[#allocation5 + $0x38] sm:$0xf]  ;;  %v1091_v45 = vld [vmem:[#allocation5 + $0x3c] sm:$0xf]  ;;  %p1093_p10 = scmp.lt.s32.totalorder %s1092_s10, 0  ;;  %s1094_s4 = ssub.s32 0, %s1092_s10 }
 0x460   : > { %s3171_s29 = smin.u32 %s1094_s4, %s1092_s10 }
 0x461   : > { %s1096_s2 = sand.u32 3, %s3171_s29  }
 0x462   : > { %s1097_s6 = ssub.s32 0, %s1096_s2 }
 0x463   : > { %s5409_s6 = smov (!%p1093_p10, %s1097_s6), %s1096_s2 }
 0x464   : > { %p3173_p11 = scmp.lt.s32.totalorder %s5409_s6, 0  ;;  %s1103_s13 = sadd.s32 4, %s5409_s6 }
 0x466   : > { %s5411_s13 = smov (!%p3173_p11, %s1103_s13), %s5409_s6 }
 0x467   : > { %s3321_s8 = sshll.u32 %s5411_s13, 4  ;;  %s1108_s9 = scalar_lea.sflag [#allocation3], %s5411_s13 }
 0x468   : > { %s4677_s0 = scalar_lea.vmem [#allocation2], %s3321_s8 }
 0x469   : > { %4086 = dma.done.wait %s1108_s9, 256 }
 0x46a   : > { %4087 = vsyncadd %s1108_s9, 4294967040  ;;  %s1113_s1 = sadd.s32 5, %s4112_s5 }
 0x46b   : > { %p3176_p12 = scmp.ge.s32.totalorder %s1113_s1, 4 }
 0x46c   : > { %p1118_p13 = scmp.lt.s32.totalorder (!%p3176_p12), %s1113_s1, 0  ;;  %s1119_s30 = ssub.s32 (!%p3176_p12), 0, %s1113_s1 }
 0x46d   : > { %1117 = sbr.rel (%p3176_p12) target bundleno = 1149 (0x47d), region = 295  ;;  %s3177_s11 = smin.u32 (!%p3176_p12), %s1119_s30, %s1113_s1 }
 0x46e   : > { %s1121_s3 = sand.u32 (!%p3176_p12), 1, %s3177_s11   ;;  %s1133_s7 = sand.u32 (!%p3176_p12), 3, %s3177_s11  }
 0x46f   : > { %s1122_s28 = ssub.s32 (!%p3176_p12), 0, %s1121_s3  ;;  %s1134_s15 = ssub.s32 (!%p3176_p12), 0, %s1133_s7 }
 0x470   : > { %s5369_s27 = sld [smem:[#allocation40_spill]] (!%p3176_p12) }
 0x472   : > { %s5413_s28 = smov (!%p1118_p13, %s1122_s28), %s1121_s3  ;;  %s5415_s15 = smov (!%p1118_p13, %s1134_s15), %s1133_s7 }
 0x473   : > { %p3179_p0 = scmp.lt.s32.totalorder %s5413_s28, 0  ;;  %s1128_s10 = sadd.s32 2, %s5413_s28 }
 0x474   : > { %p3182_p1 = scmp.lt.s32.totalorder %s5415_s15, 0  ;;  %s1140_s4 = sadd.s32 4, %s5415_s15 }
 0x475   : > { %s5417_s10 = smov (!%p3179_p0, %s1128_s10), %s5413_s28 }
 0x476   : > { %s5419_s4 = smov (!%p3182_p1, %s1140_s4), %s5415_s15  ;;  %s3183_s29 = sshll.u32 %s5417_s10, 6 }
 0x477   : > { %s1143_s2 = sshra.s32 %s3183_s29, 5  ;;  %s3322_s6 = sshll.u32 %s5419_s4, 4 }
 0x478   : > { %s3184_s13 = sshll.u32 %s1143_s2, 3  ;;  %s1149_s30 = scalar_lea.vmem [#allocation2], %s3322_s6 }
 0x479   : > { %s1146_s1 = scalar_lea.vmem %s5369_s27, %s3184_s13  ;;  %s1150_s11 = scalar_lea.sflag [#allocation3], %s5419_s4 }
 0x47a   : > { %v1184_v46 = vld [vmem:[%s1146_s1] sm:$0xff]  ;;  %v1186_v47 = vld [vmem:[%s1146_s1 + $0x8] sm:$0xff] }
 0x47b   : > { %1185 = vst [vmem:[%s1149_s30] sm:$0xff] %v1184_v46  ;;  %1187 = vst [vmem:[%s1149_s30 + $0x8] sm:$0xff] %v1186_v47 }
 0x47c   : > { %1195 = vsyncadd %s1150_s11, 256 }
 0x47d PF: > { %v3194_v48 = vcombine.low %v1090_v44, %v1091_v45  ;;  %v3193_v49 = vcombine.low %v1088_v42, %v1089_v43  ;;  %v3192_v52 = vcombine.low %v1086_v40, %v1087_v41  ;;  %v3191_v53 = vcombine.low %v4673_v38, %v4675_v39  ;;  %s5370_s27 = sshll.u32 %s4112_s5, 6  ;;  %s1072_s5 = sadd.s32 1, %s4112_s5  }
 0x47e   : > { %v3190_v54 = vcombine.low %v4668_v36, %v4670_v37  ;;  %v3189_v55 = vcombine.low %v4663_v34, %v4665_v35  ;;  %v3188_v56 = vcombine.low %v4659_v32, %v4661_v33  ;;  %v3187_v57 = vcombine.low %v4655_v30, %v4657_v31  ;;  %p1069_p2 = scmp.ge.s32.totalorder %s1072_s5, 2  }
 0x47f   : > { %3515 = vmatprep.subr.bf16.mxu0 %v3194_v48  ;;  %v3197_v62 = vcombine.low %v4623_v5, %v4625_v16  ;;  %v3196_v63 = vcombine.low %v4619_v14, %v4621_v4  ;;  %v3204_v0 = vcombine.low %v4633_v20, %v4635_v21  ;;  %v3203_v24 = vcombine.low %v4629_v18, %v4631_v19  ;;  %s5373_s3 = smov (%p1069_p2), 64   ;;  %s4982_s2 = smov (%p1069_p2), 0  }
 0x480   : > { %3516 = vmatpush3.bf16.msra.mxu0 %v3194_v48  ;;  %vm1774_vm4 = vcmask (%p1069_p2), 519424   ;;  %vm1873_vm5 = vcmask (%p1069_p2), 523264  }
 0x481   : > { %3517 = vmatprep.subr.bf16.mxu0 %v3193_v49  ;;  %3539 = vmatprep.subr.bf16.mxu1 %v3197_v62 }
 0x482   : > { %v1196_v50 = vld [vmem:[%s4677_s0] sm:$0xff]  ;;  %v1197_v58 = vld [vmem:[%s4677_s0 + $0x8] sm:$0xff]  ;;  %3540 = vmatpush3.bf16.msra.mxu1 %v3197_v62  ;;  %s4723_s0 = scalar_lea.vmem [#allocation4], %s5370_s27 }
 0x483   : > { %v1198_v51 = vunpack.c.l.s8.bf16 %v1196_v50  ;;  %v1199_v59 = vunpack.c.h.s8.bf16 %v1196_v50  ;;  %v1200_v60 = vunpack.c.l.s8.bf16 %v1197_v58  ;;  %v1201_v15 = vunpack.c.h.s8.bf16 %v1197_v58  ;;  %3541 = vmatprep.subr.bf16.mxu1 %v3196_v63 }
 0x484   : > { %3518 = vmatpush3.bf16.msra.mxu0 %v3193_v49 }
 0x485   : > { %3531 = vmatprep.mubr.bf16.mxu0 %v1198_v51  ;;  %3519 = vmatprep.subr.bf16.mxu0 %v3192_v52 }
 0x486   : > { %3542 = vmatpush3.bf16.msra.mxu1 %v3196_v63 }
 0x487   : > { %3551 = vmatprep.subr.bf16.mxu1 %v3204_v0 }
 0x488   : > { %3520 = vmatpush3.bf16.msra.mxu0 %v3192_v52 }
 0x489   : > { %3521 = vmatprep.subr.bf16.mxu0 %v3191_v53 }
 0x48c   : > { %3522 = vmatpush3.bf16.msra.mxu0 %v3191_v53 }
 0x48d   : > { %3523 = vmatprep.subr.bf16.mxu0 %v3190_v54 }
 0x490   : > { %3524 = vmatpush3.bf16.msra.mxu0 %v3190_v54 }
 0x491   : > { %3525 = vmatprep.subr.bf16.mxu0 %v3189_v55 }
 0x494   : > { %3526 = vmatpush3.bf16.msra.mxu0 %v3189_v55 }
 0x495   : > { %3527 = vmatprep.subr.bf16.mxu0 %v3188_v56 }
 0x498   : > { %3528 = vmatpush3.bf16.msra.mxu0 %v3188_v56 }
 0x499   : > { %3529 = vmatprep.subr.bf16.mxu0 %v3187_v57 }
 0x49c   : > { %3530 = vmatpush3.bf16.msra.mxu0 %v3187_v57 }
 0x49d   :  { %3563 = vmatprep.subr.bf16.mxu0 (%p1069_p2), %v4137_v61 }
 0x49f   : > { %3532 = vmatmul.mubr.bf16.vlgmr.msra.gmra.mxu0 %v1199_v59 }
 0x4a0   : > { %3535 = vmatprep.mubr.bf16.mxu0 %v1200_v60 }
 0x4a7   : > { %3536 = vmatmul.mubr.bf16.gmra.mxu0 %v1201_v15 }
 0x4a8   :  { %3579 = vmatprep.mubr.msk.bf16.mxu0 (%p1069_p2), %vm4138_vm2, %v4137_v61 }
 0x55f   : > { %v3533_v1 = vpop.f32.mrf.mxu0 }
 0x561   : > { %v1284_v2 = vpop.f32.mrf.mxu0 }
 0x563   : > { %v3534_v3 = vpop.f32.mrf.mxu0 }
 0x564   : > { %v1316_v8 = vpack.c.bf16 %v3534_v3, %v3533_v1 }
 0x565   : > { %v1287_v6 = vpop.f32.mrf.mxu0 }
 0x566   : > { %v1315_v7 = vpack.c.bf16 %v1287_v6, %v1284_v2 }
 0x567   : > { %v3537_v9 = vpop.f32.mrf.mxu0 }
 0x568   : > { %3543 = vmatprep.mubr.msk.bf16.mxu1 %vm714_vm1, %v1315_v7 }
 0x569   : > { %v1300_v10 = vpop.f32.mrf.mxu0  ;;  %3544 = vmatmul.mubr.msk.bf16.vlgmr.msra.gmra.mxu1 %vm714_vm1, %v1316_v8 }
 0x56a   : > { %3552 = vmatpush3.bf16.msra.mxu1 %v3204_v0 }
 0x56b   : > { %v3538_v11 = vpop.f32.mrf.mxu0  ;;  %3553 = vmatprep.subr.bf16.mxu1 %v3203_v24 }
 0x56c   : > { %v1318_v23 = vpack.c.bf16 %v3538_v11, %v3537_v9 }
 0x56d   : > { %v1303_v12 = vpop.f32.mrf.mxu0 }
 0x56e   : > { %v1317_v13 = vpack.c.bf16 %v1303_v12, %v1300_v10  ;;  %3554 = vmatpush3.bf16.msra.mxu1 %v3203_v24 }
 0x56f   :  { %3583 = vmatprep.subr.bf16.mxu1 (%p1069_p2), %v4137_v61 }
 0x570   : > { %3547 = vmatprep.mubr.msk.bf16.mxu1 %vm714_vm1, %v1317_v13 }
 0x571   : > { %3548 = vmatmul.mubr.msk.bf16.gmra.mxu1 %vm714_vm1, %v1318_v23 }
 0x629   : > { %v3545_v25 = vpop.f32.mrf.mxu1 }
 0x62a   : > { %v1393_v32 = vadd.f32 %v3545_v25, %v4627_v17 }
 0x62b   : > { %v1384_v26 = vpop.f32.mrf.mxu1 }
 0x62c   : > { %v1385_v30 = vadd.f32 %v4627_v17, %v1384_v26  ;;  %v1417_v39 = vmax.f32 %v1393_v32, 0.0 }
 0x62d   : > { %v3546_v27 = vpop.f32.mrf.mxu1 }
 0x62e   : > { %v1396_v31 = vadd.f32 %v3546_v27, %v4627_v17  ;;  %v1415_v37 = vmax.f32 %v1385_v30, 0.0 }
 0x62f   : > { %v1387_v33 = vpop.f32.mrf.mxu1 }
 0x630   : > { %v1388_v34 = vadd.f32 %v4627_v17, %v1387_v33  ;;  %v1418_v35 = vmax.f32 %v1396_v31, 0.0 }
 0x631   : > { %v3549_v36 = vpop.f32.mrf.mxu1 }
 0x632   : > { %v1416_v38 = vmax.f32 %v1388_v34, 0.0  ;;  %v1424_v42 = vpack.c.bf16 %v1418_v35, %v1417_v39  ;;  %v1409_v46 = vadd.f32 %v3549_v36, %v4627_v17 }
 0x633   : > { %v1400_v40 = vpop.f32.mrf.mxu1 }
 0x634   : > { %v1423_v41 = vpack.c.bf16 %v1416_v38, %v1415_v37  ;;  %v1401_v44 = vadd.f32 %v4627_v17, %v1400_v40  ;;  %v1421_v52 = vmax.f32 %v1409_v46, 0.0 }
 0x635   : > { %v3550_v43 = vpop.f32.mrf.mxu1 }
 0x636   : > { %v1412_v45 = vadd.f32 %v3550_v43, %v4627_v17  ;;  %3555 = vmatprep.mubr.msk.bf16.mxu1 %vm714_vm1, %v1423_v41  ;;  %v1419_v50 = vmax.f32 %v1401_v44, 0.0 }
 0x637   : > { %v1403_v47 = vpop.f32.mrf.mxu1  ;;  %3556 = vmatmul.mubr.msk.bf16.vlgmr.msra.gmra.mxu1 %vm714_vm1, %v1424_v42 }
 0x638   : > { %v1404_v48 = vadd.f32 %v4627_v17, %v1403_v47  ;;  %v1422_v49 = vmax.f32 %v1412_v45, 0.0 }
 0x63a   : > { %v1420_v51 = vmax.f32 %v1404_v48, 0.0  ;;  %v1426_v54 = vpack.c.bf16 %v1422_v49, %v1421_v52 }
 0x63c   : > { %v1425_v53 = vpack.c.bf16 %v1420_v51, %v1419_v50 }
 0x63e   : > { %3559 = vmatprep.mubr.msk.bf16.mxu1 %vm714_vm1, %v1425_v53 }
 0x63f   : > { %3560 = vmatmul.mubr.msk.bf16.gmra.mxu1 %vm714_vm1, %v1426_v54 }
 0x640   :  { %3591 = vmatprep.mubr.msk.bf16.mxu1 (%p1069_p2), %vm4138_vm2, %v4137_v61 }
 0x6f7   : > { %v3557_v55 = vpop.f32.mrf.mxu1 }
 0x6f8   : > { %v1500_v56 = vadd.f32 %v3557_v55, %v4637_v22 }
 0x6f9   : > { %v1491_v57 = vpop.f32.mrf.mxu1 }
 0x6fa   : > { %v1524_v58 = vmax.f32 %v1500_v56, 0.0  ;;  %v1492_v59 = vadd.f32 %v4637_v22, %v1491_v57 }
 0x6fb   : > { %v3558_v60 = vpop.f32.mrf.mxu1 }
 0x6fc   : > { %1533 = vst.msk [vmem:[%s4723_s0 + $0x10] sm:$0xff] %vm714_vm1, %v1524_v58  ;;  %v1522_v15 = vmax.f32 %v1492_v59, 0.0  ;;  %v1503_v62 = vadd.f32 %v3558_v60, %v4637_v22  ;;  %v1563_v9 = vmul.f32 %v1524_v58, %v1524_v58  ;;  %v1542_v25 = vsel %vm714_vm1, %v1524_v58, 0.0 }
 0x6fd   : > { %v1494_v63 = vpop.f32.mrf.mxu1 }
 0x6fe   : > { %1531 = vst.msk [vmem:[%s4723_s0] sm:$0xff] %vm714_vm1, %v1522_v15  ;;  %v1525_v0 = vmax.f32 %v1503_v62, 0.0  ;;  %v1495_v1 = vadd.f32 %v4637_v22, %v1494_v63  ;;  %v1561_v6 = vmul.f32 %v1522_v15, %v1522_v15  ;;  %v1539_v12 = vsel %vm714_vm1, %v1522_v15, 0.0 }
 0x6ff   : > { %v3561_v2 = vpop.f32.mrf.mxu1  ;;  %v1572_v35 = vsel %vm714_vm1, %v1563_v9, 0.0 }
 0x700   : > { %1534 = vst.msk [vmem:[%s4723_s0 + $0x18] sm:$0xff] %vm714_vm1, %v1525_v0  ;;  %v1516_v3 = vadd.f32 %v3561_v2, %v4637_v22  ;;  %v1523_v7 = vmax.f32 %v1495_v1, 0.0  ;;  %v1569_v30 = vsel %vm714_vm1, %v1561_v6, 0.0  ;;  %v1564_v31 = vmul.f32 %v1525_v0, %v1525_v0 }
 0x701   : > { %v1507_v8 = vpop.f32.mrf.mxu1  ;;  %v1544_v38 = vsel %vm714_vm1, %v1525_v0, 0.0 }
 0x702   : > { %v1528_v10 = vmax.f32 %v1516_v3, 0.0  ;;  %v1508_v11 = vadd.f32 %v4637_v22, %v1507_v8  ;;  %1532 = vst.msk [vmem:[%s4723_s0 + $0x8] sm:$0xff] %vm714_vm1, %v1523_v7  ;;  %v1540_v13 = vsel %vm714_vm1, %v1523_v7, 0.0  ;;  %v1562_v23 = vmul.f32 %v1523_v7, %v1523_v7 }
 0x703   : > { %v3562_v24 = vpop.f32.mrf.mxu1  ;;  %v1541_v26 = vadd.f32 %v1540_v13, %v1539_v12  ;;  %v1574_v44 = vsel %vm714_vm1, %v1564_v31, 0.0 }
 0x704   : > { %1537 = vst.msk [vmem:[%s4723_s0 + $0x30] sm:$0xff] %vm714_vm1, %v1528_v10  ;;  %v1526_v27 = vmax.f32 %v1508_v11, 0.0  ;;  %v1570_v32 = vsel %vm714_vm1, %v1562_v23, 0.0  ;;  %v1519_v33 = vadd.f32 %v3562_v24, %v4637_v22  ;;  %v1567_v49 = vmul.f32 %v1528_v10, %v1528_v10 }
 0x705   : > { %v1510_v34 = vpop.f32.mrf.mxu1  ;;  %v1543_v36 = vadd.f32 %v1542_v25, %v1541_v26  ;;  %v1571_v37 = vadd.f32 %v1570_v32, %v1569_v30  ;;  %v1550_v55 = vsel %vm714_vm1, %v1528_v10, 0.0 }
 0x706   : > { %1535 = vst.msk [vmem:[%s4723_s0 + $0x20] sm:$0xff] %vm714_vm1, %v1526_v27  ;;  %v1565_v39 = vmul.f32 %v1526_v27, %v1526_v27  ;;  %v1529_v40 = vmax.f32 %v1519_v33, 0.0  ;;  %v1511_v41 = vadd.f32 %v4637_v22, %v1510_v34  ;;  %v1546_v45 = vsel %vm714_vm1, %v1526_v27, 0.0 }
 0x707   : > { %v1573_v42 = vadd.f32 %v1572_v35, %v1571_v37  ;;  %v1545_v43 = vadd.f32 %v1544_v38, %v1543_v36  ;;  %v1580_v60 = vsel %vm714_vm1, %v1567_v49, 0.0 }
 0x708   : > { %1538 = vst.msk [vmem:[%s4723_s0 + $0x38] sm:$0xff] %vm714_vm1, %v1529_v40  ;;  %v1527_v46 = vmax.f32 %v1511_v41, 0.0  ;;  %v1576_v50 = vsel %vm714_vm1, %v1565_v39, 0.0  ;;  %v1568_v56 = vmul.f32 %v1529_v40, %v1529_v40  ;;  %v1552_v15 = vsel %vm714_vm1, %v1529_v40, 0.0 }
 0x709   : > { %v1547_v47 = vadd.f32 %v1546_v45, %v1545_v43  ;;  %v1575_v48 = vadd.f32 %v1574_v44, %v1573_v42 }
 0x70a   : > { %1536 = vst.msk [vmem:[%s4723_s0 + $0x28] sm:$0xff] %vm714_vm1, %v1527_v46  ;;  %v1548_v51 = vsel %vm714_vm1, %v1527_v46, 0.0  ;;  %v1566_v52 = vmul.f32 %v1527_v46, %v1527_v46  ;;  %v1582_v0 = vsel %vm714_vm1, %v1568_v56, 0.0 }
 0x70b   : > { %v1577_v53 = vadd.f32 %v1576_v50, %v1575_v48  ;;  %v1549_v54 = vadd.f32 %v1548_v51, %v1547_v47 }
 0x70c   : > { %v1578_v57 = vsel %vm714_vm1, %v1566_v52, 0.0 }
 0x70d   : > { %v1551_v58 = vadd.f32 %v1550_v55, %v1549_v54  ;;  %v1579_v59 = vadd.f32 %v1578_v57, %v1577_v53 }
 0x70f   : > { %v1553_v62 = vadd.f32 %v1552_v15, %v1551_v58  ;;  %v1581_v63 = vadd.f32 %v1580_v60, %v1579_v59 }
 0x711   : > { %v1554_v1 = vrot.slane %v1553_v62, 4  ;;  %v1583_v2 = vadd.f32 %v1582_v0, %v1581_v63  ;;  %v1612_v14 = vld [vmem:[#allocation4 + $0x70] sm:$0xff] (%p1069_p2)  ;;  %v1613_v4 = vld [vmem:[#allocation4 + $0x78] sm:$0xff] (%p1069_p2)  ;;  %v1610_v5 = vld [vmem:[#allocation4 + $0x60] sm:$0xff] (%p1069_p2) }
 0x712   :  { %v1611_v16 = vld [vmem:[#allocation4 + $0x68] sm:$0xff] (%p1069_p2)  ;;  %v1608_v21 = vld [vmem:[#allocation4 + $0x50] sm:$0xff] (%p1069_p2)  ;;  %v1609_v22 = vld [vmem:[#allocation4 + $0x58] sm:$0xff] (%p1069_p2) }
 0x713   : > { %v1555_v3 = vadd.f32 %v1554_v1, %v1553_v62  ;;  %v1584_v6 = vrot.slane %v1583_v2, 4  ;;  %v1606_v40 = vld [vmem:[#allocation4 + $0x40] sm:$0xff] (%p1069_p2)  ;;  %v1607_v41 = vld [vmem:[#allocation4 + $0x48] sm:$0xff] (%p1069_p2)  ;;  %v1604_v48 = vld [vmem:[#allocation4 + $0x30] sm:$0xff] (%p1069_p2) }
 0x714   :  { %v1605_v49 = vld [vmem:[#allocation4 + $0x38] sm:$0xff] (%p1069_p2)  ;;  %v1602_v55 = vld [vmem:[#allocation4 + $0x20] sm:$0xff] (%p1069_p2)  ;;  %v1603_v56 = vld [vmem:[#allocation4 + $0x28] sm:$0xff] (%p1069_p2) }
 0x715   : > { %v1556_v7 = vrot.slane %v1555_v3, 2  ;;  %v1585_v8 = vadd.f32 %v1584_v6, %v1583_v2  ;;  %v1600_v62 = vld [vmem:[#allocation4 + $0x10] sm:$0xff] (%p1069_p2)  ;;  %v1601_v63 = vld [vmem:[#allocation4 + $0x18] sm:$0xff] (%p1069_p2) }
 0x717   : > { %v1557_v9 = vadd.f32 %v1556_v7, %v1555_v3  ;;  %v1586_v10 = vrot.slane %v1585_v8, 2  ;;  %v1598_v7 = vld [vmem:[#allocation4] sm:$0xff] (%p1069_p2) }
 0x719   : > { %v1558_v11 = vrot.slane %v1557_v9, 1  ;;  %v1587_v12 = vadd.f32 %v1586_v10, %v1585_v8  ;;  %v1599_v8 = vld [vmem:[#allocation4 + $0x8] sm:$0xff] (%p1069_p2) }
 0x71b   : > { %v1559_v13 = vadd.f32 %v1558_v11, %v1557_v9  ;;  %v1588_v23 = vrot.slane %v1587_v12, 1 }
 0x71d   : > { %v1560_v24 = vadd.f32 %v4108_v29, %v1559_v13   ;;  %v1589_v25 = vadd.f32 %v1588_v23, %v1587_v12  ;;  %1071 = sbr.rel (!%p1069_p2) target bundleno = 1114 (0x45a), region = 428 }
 0x71f   : > { %v1590_v26 = vadd.f32 %v4104_v28, %v1589_v25   ;;  %v5372_v29 = vmov %v1560_v24  ;;  %v4773_v27 = vmul.f32 (%p1069_p2), 0.0078125, %v1560_v24 }
 0x721   : > { %v5371_v28 = vmov %v1590_v26  ;;  %v1592_v30 = vmul.f32 (%p1069_p2), 0.0078125, %v1590_v26  ;;  %v1593_v29 = vmul.f32 (%p1069_p2), %v4773_v27, %v4773_v27  ;;  %v1628_v17 = vsub.f32 (%p1069_p2), %v1612_v14, %v4773_v27 }
 0x722   :  { %v1629_v18 = vsub.f32 %v1613_v4, %v4773_v27  ;;  %v1626_v19 = vsub.f32 %v1610_v5, %v4773_v27  ;;  %v1627_v20 = vsub.f32 %v1611_v16, %v4773_v27  ;;  %v1624_v34 = vsub.f32 %v1608_v21, %v4773_v27 }
 0x723   :  { %v1594_v31 = vsub.f32 %v1592_v30, %v1593_v29  ;;  %v1625_v35 = vsub.f32 %v1609_v22, %v4773_v27  ;;  %v1622_v43 = vsub.f32 %v1606_v40, %v4773_v27  ;;  %v1623_v47 = vsub.f32 %v1607_v41, %v4773_v27  ;;  %v1791_v30 = vld [vmem:[#allocation8] sm:$0xf]  ;;  %v3775_v29 = vld [vmem:[%s5325_s12 + $0x10] sm:$0xff]   ;;  %v3780_v40 = vld [vmem:[%s5327_s14 + $0x8] sm:$0xff]  }
 0x724   :  { %v1620_v50 = vsub.f32 %v1604_v48, %v4773_v27  ;;  %v1621_v54 = vsub.f32 %v1605_v49, %v4773_v27  ;;  %v1618_v57 = vsub.f32 %v1602_v55, %v4773_v27  ;;  %v1619_v15 = vsub.f32 %v1603_v56, %v4773_v27  ;;  %v3781_v41 = vld [vmem:[%s5327_s14] sm:$0xff]   ;;  %v3782_v49 = vld [vmem:[%s5329_s16 + $0x18] sm:$0xff]  }
 0x725   :  { %v1595_v32 = vmax.f32 %v1594_v31, 0.0  ;;  %v1616_v0 = vsub.f32 %v1600_v62, %v4773_v27  ;;  %v1617_v6 = vsub.f32 %v1601_v63, %v4773_v27  ;;  %v1614_v9 = vsub.f32 %v1598_v7, %v4773_v27  ;;  %v3776_v31 = vld [vmem:[%s5325_s12 + $0x8] sm:$0xff]   ;;  %v3785_v62 = vld [vmem:[%s5329_s16] sm:$0xff]  }
 0x726   :  { %v1615_v13 = vsub.f32 %v1599_v8, %v4773_v27  ;;  %v3774_v27 = vld [vmem:[%s5325_s12 + $0x18] sm:$0xff]  }
 0x727   :  { %v1596_v33 = vadd.f32 1e-05, %v1595_v32  ;;  %3584 = vmatpush3.bf16.msra.mxu1 %v3774_v27  ;;  %v3777_v32 = vld [vmem:[%s5325_s12] sm:$0xff]   ;;  %s4139_s12 = smov 32  }
 0x728   :  { %3585 = vmatprep.subr.bf16.mxu1 %v4137_v61 }
 0x729   :  { %3786 = vrsqrt.f32 %v1596_v33 }
 0x72b   :  { %3586 = vmatpush3.bf16.msra.mxu1 %v3775_v29 }
 0x72c   :  { %3587 = vmatprep.subr.bf16.mxu1 %v4137_v61 }
 0x72f   :  { %3588 = vmatpush3.bf16.msra.mxu1 %v3776_v31 }
 0x730   :  { %3589 = vmatprep.subr.bf16.mxu1 %v4137_v61 }
 0x733   :  { %3590 = vmatpush3.bf16.msra.mxu1 %v3777_v32 }
 0x734   :  { %3595 = vmatprep.subr.bf16.mxu1 %v4137_v61 }
 0x736   :  { %v3787_v28 = vpop.eup %3786 }
 0x737   :  { %v4788_v36 = vmul.f32 %v3787_v28, %v1628_v17  ;;  %v4790_v37 = vmul.f32 %v3787_v28, %v1629_v18  ;;  %v4792_v38 = vmul.f32 %v3787_v28, %v1626_v19  ;;  %v4794_v39 = vmul.f32 %v3787_v28, %v1627_v20 }
 0x738   :  { %v4801_v45 = vmul.f32 %v3787_v28, %v1624_v34  ;;  %v4803_v46 = vmul.f32 %v3787_v28, %v1625_v35  ;;  %v1638_v52 = vmul.f32 %v3787_v28, %v1622_v43  ;;  %v4810_v53 = vmul.f32 %v3787_v28, %v1623_v47  ;;  %v3778_v34 = vld [vmem:[%s5327_s14 + $0x18] sm:$0xff]  }
 0x739   :  { %v1653_v42 = vpack.c.bf16 %v4790_v37, %v4788_v36  ;;  %v1652_v44 = vpack.c.bf16 %v4794_v39, %v4792_v38  ;;  %v1636_v59 = vmul.f32 %v3787_v28, %v1620_v50  ;;  %v4816_v60 = vmul.f32 %v3787_v28, %v1621_v54  ;;  %v3783_v50 = vld [vmem:[%s5329_s16 + $0x10] sm:$0xff]  }
 0x73a   :  { %v1651_v51 = vpack.c.bf16 %v4803_v46, %v4801_v45  ;;  %v1650_v58 = vpack.c.bf16 %v4810_v53, %v1638_v52  ;;  %v1634_v2 = vmul.f32 %v3787_v28, %v1618_v57  ;;  %v4822_v3 = vmul.f32 %v3787_v28, %v1619_v15  ;;  %v3784_v15 = vld [vmem:[%s5329_s16 + $0x8] sm:$0xff]  }
 0x73b   :  { %3564 = vmatpush3.bf16.msra.mxu0 %v1653_v42  ;;  %v1649_v1 = vpack.c.bf16 %v4816_v60, %v1636_v59  ;;  %v1632_v11 = vmul.f32 %v3787_v28, %v1616_v0  ;;  %v4828_v12 = vmul.f32 %v3787_v28, %v1617_v6  ;;  %v4833_v24 = vmul.f32 %v3787_v28, %v1614_v9 }
 0x73c   :  { %3565 = vmatprep.subr.bf16.mxu0 %v4137_v61  ;;  %v1648_v10 = vpack.c.bf16 %v4822_v3, %v1634_v2  ;;  %v4835_v25 = vmul.f32 %v3787_v28, %v1615_v13  ;;  %v3327_v14 = vpack.c.bf16 %v1634_v2, %v1634_v2  ;;  %v3329_v4 = vpack.c.bf16 %v1636_v59, %v1636_v59 }
 0x73d   :  { %v1647_v23 = vpack.c.bf16 %v4828_v12, %v1632_v11  ;;  %v3325_v33 = vpack.c.bf16 %v1632_v11, %v1632_v11  ;;  %v3331_v5 = vpack.c.bf16 %v1638_v52, %v1638_v52  ;;  %v3333_v16 = vpack.c.bf16 %v4801_v45, %v4801_v45 }
 0x73e   :  { %v1646_v26 = vpack.c.bf16 %v4835_v25, %v4833_v24  ;;  %1714 = vst.msk [vmem:[#allocation5 + $0x10] sm:$0xf] %vm981_vm3, %v3327_v14  ;;  %1716 = vst.msk [vmem:[#allocation5 + $0x18] sm:$0xf] %vm981_vm3, %v3329_v4  ;;  %v3335_v20 = vpack.c.bf16 %v4792_v38, %v4792_v38  ;;  %v3779_v38 = vld [vmem:[%s5327_s14 + $0x10] sm:$0xff]   ;;  %v3323_v63 = vpack.c.bf16 %v4833_v24, %v4833_v24 }
 0x73f   :  { %3566 = vmatpush3.bf16.msra.mxu0 %v1652_v44  ;;  %1712 = vst.msk [vmem:[#allocation5 + $0x8] sm:$0xf] %vm981_vm3, %v3325_v33  ;;  %1718 = vst.msk [vmem:[#allocation5 + $0x20] sm:$0xf] %vm981_vm3, %v3331_v5  ;;  %v3324_v0 = vpack.c.bf16 %v4835_v25, %v4835_v25  ;;  %v3328_v2 = vpack.c.bf16 %v4822_v3, %v4822_v3  ;;  %v3332_v6 = vpack.c.bf16 %v4810_v53, %v4810_v53 }
 0x740   :  { %3567 = vmatprep.subr.bf16.mxu0 %v4137_v61  ;;  %1720 = vst.msk [vmem:[#allocation5 + $0x28] sm:$0xf] %vm981_vm3, %v3333_v16  ;;  %1722 = vst.msk [vmem:[#allocation5 + $0x30] sm:$0xf] %vm981_vm3, %v3335_v20  ;;  %v3334_v7 = vpack.c.bf16 %v4803_v46, %v4803_v46  ;;  %v3336_v8 = vpack.c.bf16 %v4794_v39, %v4794_v39  ;;  %1726 = vrot.lane.b32.xlu1 %v3323_v63, %s4139_s12 }
 0x741   :  { %1710 = vst.msk [vmem:[#allocation5] sm:$0xf] %vm981_vm3, %v3323_v63  ;;  %1711 = vst.msk [vmem:[#allocation5 + $0x4] sm:$0xf] %vm981_vm3, %v3324_v0  ;;  %v3337_v53 = vpack.c.bf16 %v4788_v36, %v4788_v36 }
 0x742   :  { %1715 = vst.msk [vmem:[#allocation5 + $0x14] sm:$0xf] %vm981_vm3, %v3328_v2  ;;  %1719 = vst.msk [vmem:[#allocation5 + $0x24] sm:$0xf] %vm981_vm3, %v3332_v6 }
 0x743   :  { %3568 = vmatpush3.bf16.msra.mxu0 %v1651_v51  ;;  %v3231_v51 = vld [vmem:[#allocation20] ss:$0 sm:$0xff]  ;;  %1721 = vst.msk [vmem:[#allocation5 + $0x2c] sm:$0xf] %vm981_vm3, %v3334_v7  ;;  %1723 = vst.msk [vmem:[#allocation5 + $0x34] sm:$0xf] %vm981_vm3, %v3336_v8 }
 0x744   :  { %3569 = vmatprep.subr.bf16.mxu0 %v4137_v61  ;;  %1724 = vst.msk [vmem:[#allocation5 + $0x38] sm:$0xf] %vm981_vm3, %v3337_v53  ;;  %1728 = vrot.lane.b32.xlu1 %v3324_v0, %s4139_s12 }
 0x747   :  { %3570 = vmatpush3.bf16.msra.mxu0 %v1650_v58 }
 0x748   :  { %3571 = vmatprep.subr.bf16.mxu0 %v4137_v61 }
 0x74b   :  { %3572 = vmatpush3.bf16.msra.mxu0 %v1649_v1  ;;  %v3326_v1 = vpack.c.bf16 %v4828_v12, %v4828_v12 }
 0x74c   :  { %3573 = vmatprep.subr.bf16.mxu0 %v4137_v61 }
 0x74d   :  { %1713 = vst.msk [vmem:[#allocation5 + $0xc] sm:$0xf] %vm981_vm3, %v3326_v1  ;;  %1732 = vrot.lane.b32.xlu1 %v3326_v1, %s4139_s12 }
 0x74f   :  { %3574 = vmatpush3.bf16.msra.mxu0 %v1648_v10 }
 0x750   :  { %3575 = vmatprep.subr.bf16.mxu0 %v4137_v61 }
 0x751   :  { %1736 = vrot.lane.b32.xlu1 %v3328_v2, %s4139_s12 }
 0x753   :  { %3576 = vmatpush3.bf16.msra.mxu0 %v1647_v23 }
 0x754   :  { %3577 = vmatprep.subr.bf16.mxu0 %v4137_v61 }
 0x757   :  { %3578 = vmatpush3.bf16.msra.mxu0 %v1646_v26 }
 0x758   :  { %3607 = vmatprep.subr.bf16.mxu0 %v4137_v61 }
 0x75a   :  { %3580 = vmatmul.mubr.bf16.vlgmr.msra.gmra.mxu0 %v1791_v30 }
 0x75b   :  { %3615 = vmatprep.mubr.msk.bf16.mxu0 %vm4138_vm2, %v4137_v61  ;;  %3608 = vmatpush3.bf16.msra.mxu0 %v3782_v49 }
 0x75c   :  { %3609 = vmatprep.subr.bf16.mxu0 %v4137_v61 }
 0x75f   :  { %3610 = vmatpush3.bf16.msra.mxu0 %v3783_v50 }
 0x760   :  { %3611 = vmatprep.subr.bf16.mxu0 %v4137_v61 }
 0x763   :  { %3612 = vmatpush3.bf16.msra.mxu0 %v3784_v15 }
 0x764   :  { %3613 = vmatprep.subr.bf16.mxu0 %v4137_v61 }
 0x767   :  { %3614 = vmatpush3.bf16.msra.mxu0 %v3785_v62 }
 0x7b2   :  { %v1727_v36 = vpop.permute.xlu1 %1726 }
 0x7b3   :  { %1775 = vst.msk [vmem:[#allocation6] sm:$0xf] %vm1774_vm4, %v1727_v36 }
 0x7b6   :  { %v1729_v39 = vpop.permute.xlu1 %1728 }
 0x7b7   :  { %1776 = vst.msk [vmem:[#allocation6 + $0x4] sm:$0xf] %vm1774_vm4, %v1729_v39 }
 0x7bf   :  { %v1733_v11 = vpop.permute.xlu1 %1732 }
 0x7c0   :  { %1778 = vst.msk [vmem:[#allocation6 + $0xc] sm:$0xf] %vm1774_vm4, %v1733_v11 }
 0x7c3   :  { %v1737_v24 = vpop.permute.xlu1 %1736 }
 0x7c4   :  { %1780 = vst.msk [vmem:[#allocation6 + $0x14] sm:$0xf] %vm1774_vm4, %v1737_v24 }
 0x81a   :  { %v1826_v17 = vpop.f32.mrf.mxu0 }
 0x81b   :  { %v3339_v18 = vpack.c.bf16 %v1826_v17, %v1826_v17  ;;  %v3244_v17 = vld [vmem:[%s5331_s18] ss:$0 sm:$0xff] }
 0x81c   :  { %v3581_v19 = vpop.f32.mrf.mxu0 }
 0x81d   :  { %1836 = vrot.lane.b32.xlu0 %v3339_v18, %s4139_s12 }
 0x81e   :  { %v1829_v21 = vpop.f32.mrf.mxu0 }
 0x820   :  { %v3582_v22 = vpop.f32.mrf.mxu0 }
 0x821   :  { %1730 = vrot.lane.b32.xlu0 %v3325_v33, %s4139_s12  ;;  %v3238_v33 = vld [vmem:[%s5330_s17] ss:$0 sm:$0xff] }
 0x825   :  { %1734 = vrot.lane.b32.xlu0 %v3327_v14, %s4139_s12 }
 0x829   :  { %1738 = vrot.lane.b32.xlu0 %v3329_v4, %s4139_s12 }
 0x82d   :  { %1742 = vrot.lane.b32.xlu0 %v3331_v5, %s4139_s12 }
 0x831   :  { %1746 = vrot.lane.b32.xlu0 %v3333_v16, %s4139_s12 }
 0x835   :  { %1750 = vrot.lane.b32.xlu0 %v3335_v20, %s4139_s12 }
 0x88f   :  { %v1837_v28 = vpop.permute.xlu0 %1836 }
 0x890   :  { %1839 = vst.msk [vmem:[#allocation7] sm:$0xf] %vm1774_vm4, %v1837_v28  ;;  %v4978_v28 = vmov 0.0  }
 0x893   :  { %v1731_v42 = vpop.permute.xlu0 %1730 }
 0x894   :  { %1777 = vst.msk [vmem:[#allocation6 + $0x8] sm:$0xf] %vm1774_vm4, %v1731_v42 }
 0x897   :  { %v1840_v35 = vld [vmem:[#allocation7] sm:$0xf]  ;;  %v1735_v43 = vpop.permute.xlu0 %1734 }
 0x898   :  { %3592 = vmatmul.mubr.msk.bf16.vlgmr.msra.gmra.mxu1 %vm1873_vm5, %v1840_v35  ;;  %1779 = vst.msk [vmem:[#allocation6 + $0x10] sm:$0xf] %vm1774_vm4, %v1735_v43 }
 0x899   :  { %3596 = vmatpush3.bf16.msra.mxu1 %v3778_v34  ;;  %3603 = vmatprep.mubr.msk.bf16.mxu1 %vm4138_vm2, %v4137_v61  ;;  %v4980_v34 = vmov 0.0  }
 0x89a   :  { %3597 = vmatprep.subr.bf16.mxu1 %v4137_v61 }
 0x89b   :  { %v1739_v44 = vpop.permute.xlu0 %1738 }
 0x89c   :  { %1781 = vst.msk [vmem:[#allocation6 + $0x18] sm:$0xf] %vm1774_vm4, %v1739_v44 }
 0x89d   :  { %3598 = vmatpush3.bf16.msra.mxu1 %v3779_v38 }
 0x89e   :  { %3599 = vmatprep.subr.bf16.mxu1 %v4137_v61 }
 0x89f   :  { %v1743_v45 = vpop.permute.xlu0 %1742 }
 0x8a0   :  { %1783 = vst.msk [vmem:[#allocation6 + $0x20] sm:$0xf] %vm1774_vm4, %v1743_v45 }
 0x8a1   :  { %3600 = vmatpush3.bf16.msra.mxu1 %v3780_v40 }
 0x8a2   :  { %3601 = vmatprep.subr.bf16.mxu1 %v4137_v61  ;;  %v3330_v61 = vpack.c.bf16 %v4816_v60, %v4816_v60  ;;  %v3338_v60 = vpack.c.bf16 %v4790_v37, %v4790_v37  ;;  %v3232_v37 = vld [vmem:[#allocation22] ss:$0 sm:$0xff] }
 0x8a3   :  { %v1747_v47 = vpop.permute.xlu0 %1746 }
 0x8a4   :  { %1785 = vst.msk [vmem:[#allocation6 + $0x28] sm:$0xf] %vm1774_vm4, %v1747_v47  ;;  %1740 = vrot.lane.b32.xlu1 %v3330_v61, %s4139_s12 }
 0x8a5   :  { %3602 = vmatpush3.bf16.msra.mxu1 %v3781_v41  ;;  %1717 = vst.msk [vmem:[#allocation5 + $0x1c] sm:$0xf] %vm981_vm3, %v3330_v61  ;;  %1725 = vst.msk [vmem:[#allocation5 + $0x3c] sm:$0xf] %vm981_vm3, %v3338_v60 }
 0x8a7   :  { %v1751_v48 = vpop.permute.xlu0 %1750 }
 0x8a8   :  { %1787 = vst.msk [vmem:[#allocation6 + $0x30] sm:$0xf] %vm1774_vm4, %v1751_v48  ;;  %1744 = vrot.lane.b32.xlu1 %v3332_v6, %s4139_s12 }
 0x8ac   :  { %1748 = vrot.lane.b32.xlu1 %v3334_v7, %s4139_s12 }
 0x8b0   :  { %1752 = vrot.lane.b32.xlu1 %v3336_v8, %s4139_s12 }
 0x8b4   :  { %1756 = vrot.lane.b32.xlu1 %v3338_v60, %s4139_s12 }
 0x916   :  { %v1741_v25 = vpop.permute.xlu1 %1740 }
 0x917   :  { %1782 = vst.msk [vmem:[#allocation6 + $0x1c] sm:$0xf] %vm1774_vm4, %v1741_v25 }
 0x91a   :  { %v1745_v26 = vpop.permute.xlu1 %1744 }
 0x91b   :  { %1784 = vst.msk [vmem:[#allocation6 + $0x24] sm:$0xf] %vm1774_vm4, %v1745_v26 }
 0x91e   :  { %v1749_v30 = vpop.permute.xlu1 %1748 }
 0x91f   :  { %1786 = vst.msk [vmem:[#allocation6 + $0x2c] sm:$0xf] %vm1774_vm4, %v1749_v30 }
 0x922   :  { %v1753_v29 = vpop.permute.xlu1 %1752 }
 0x923   :  { %1788 = vst.msk [vmem:[#allocation6 + $0x34] sm:$0xf] %vm1774_vm4, %v1753_v29 }
 0x926   :  { %v1757_v31 = vpop.permute.xlu1 %1756 }
 0x927   :  { %1790 = vst.msk [vmem:[#allocation6 + $0x3c] sm:$0xf] %vm1774_vm4, %v1757_v31 }
 0x958   :  { %v1911_v52 = vpop.f32.mrf.mxu1 }
 0x959   :  { %v1924_v54 = vadd.f32 %v3231_v51, %v1911_v52  ;;  %2095 = vrot.lane.b32.xlu0 %v1911_v52, %s5373_s3 }
 0x95a   :  { %v3593_v55 = vpop.f32.mrf.mxu1 }
 0x95b   :  { %v1925_v56 = vmax.f32 %v1924_v54, 0.0 }
 0x95c   :  { %v1914_v57 = vpop.f32.mrf.mxu1 }
 0x95d   :  { %v1926_v58 = vpack.c.bf16 %v1925_v56, %v1925_v56  ;;  %1754 = vrot.lane.b32.xlu0 %v3337_v53, %s4139_s12 }
 0x95e   :  { %v3594_v59 = vpop.f32.mrf.mxu1 }
 0x95f   :  { %3604 = vmatmul.mubr.msk.bf16.vlgmr.msra.gmra.mxu1 %vm1873_vm5, %v1926_v58 }
 0x9cb   :  { %v2096_v27 = vpop.permute.xlu0 %2095 }
 0x9cf   :  { %v1755_v32 = vpop.permute.xlu0 %1754 }
 0x9d0   :  { %1789 = vst.msk [vmem:[#allocation6 + $0x38] sm:$0xf] %vm1774_vm4, %v1755_v32 }
 0xa1f   :  { %v2003_v46 = vpop.f32.mrf.mxu1 }
 0xa20   :  { %v2004_v3 = vadd.f32 %v3232_v37, %v2003_v46 }
 0xa21   :  { %v3605_v9 = vpop.f32.mrf.mxu1 }
 0xa22   :  { %v2009_v10 = vmax.f32 %v2004_v3, 0.0 }
 0xa23   :  { %v2006_v12 = vpop.f32.mrf.mxu1 }
 0xa24   :  { %v2010_v13 = vpack.c.bf16 %v2009_v10, %v2009_v10 }
 0xa25   :  { %v3606_v23 = vpop.f32.mrf.mxu1 }
 0xa26   :  { %3616 = vmatmul.mubr.msk.bf16.vlgmr.msra.gmra.mxu0 %vm1873_vm5, %v2010_v13 }
 0xae6   :  { %v2087_v14 = vpop.f32.mrf.mxu0 }
 0xae7   :  { %v2088_v4 = vadd.f32 %v3238_v33, %v2087_v14 }
 0xae8   :  { %v3617_v5 = vpop.f32.mrf.mxu0 }
 0xae9   :  { %v2093_v16 = vmax.f32 %v2088_v4, 0.0 }
 0xaea   :  { %v2090_v18 = vpop.f32.mrf.mxu0 }
 0xaeb   :  { %v2098_v19 = vadd.f32 %v2096_v27, %v2093_v16 }
 0xaec   :  { %v3618_v20 = vpop.f32.mrf.mxu0 }
 0xaed   :  { %v2106_v21 = vadd.f32 %v3244_v17, %v2098_v19 }
 0xaef   :  { %v4976_v22 = vpack.c.bf16 %v2106_v21, %v2106_v21 }
 0xaf0 LB: > { %v3790_v35 = vld [vmem:[%s5332_s19 + $0x18] sm:$0xff]   ;;  %v3791_v38 = vld [vmem:[%s5332_s19 + $0x10] sm:$0xff]   ;;  %s3245_s8 = sshll.u32 %s4124_s2, 6  ;;  %v3792_v40 = vld [vmem:[%s5332_s19 + $0x8] sm:$0xff]   ;;  %s4140_s29 = smov 64   ;;  %vm2879_vm2 = vcmask 64512   ;;  %s4124_s2 = sphi %s4982_s2, %s2113_s2   ;;  %v4120_v34 = vphi %v4980_v34, %v5395_v34   ;;  %v4116_v28 = vphi %v4978_v28, %v5394_v28  }
 0xaf1   : > { %3619 = vmatprep.subr.bf16.mxu0 %v3790_v35  ;;  %s2117_s30 = sshra.s32 %s3245_s8, 3  ;;  %v3798_v41 = vld [vmem:[%s5334_s21 + $0x18] sm:$0xff]   ;;  %v3793_v43 = vld [vmem:[%s5332_s19] sm:$0xff]   ;;  %v3799_v48 = vld [vmem:[%s5334_s21 + $0x10] sm:$0xff]   ;;  %s5374_s7 = sld [smem:[#allocation39_spill]] }
 0xaf2   : > { %3620 = vmatpush3.bf16.msra.mxu0 %v3790_v35  ;;  %s3246_s11 = sshll.u32 %s2117_s30, 2  ;;  %3635 = vmatprep.subr.bf16.mxu1 %v3798_v41  ;;  %v3800_v49 = vld [vmem:[%s5334_s21 + $0x8] sm:$0xff]   ;;  %v3801_v50 = vld [vmem:[%s5334_s21] sm:$0xff]   ;;  %v3802_v58 = vld [vmem:[%s5336_s23 + $0x18] sm:$0xff]   ;;  %s2113_s2 = sadd.s32 1, %s4124_s2  }
 0xaf3   : > { %3621 = vmatprep.subr.bf16.mxu0 %v3791_v38  ;;  %s2120_s0 = scalar_lea.vmem [#allocation6], %s3246_s11  ;;  %3636 = vmatpush3.bf16.msra.mxu1 %v3798_v41  ;;  %v3259_v54 = vld [vmem:[%s5333_s20] ss:$0 sm:$0xff]  ;;  %v3803_v23 = vld [vmem:[%s5336_s23 + $0x10] sm:$0xff]   ;;  %v3804_v24 = vld [vmem:[%s5336_s23 + $0x8] sm:$0xff]   ;;  %p2110_p3 = scmp.ge.s32.totalorder %s2113_s2, 2  }
 0xaf4   : > { %v3794_v42 = vld [vmem:[%s2120_s0] sm:$0xff]   ;;  %v3795_v44 = vld [vmem:[%s2120_s0 + $0x8] sm:$0xff]   ;;  %v3796_v45 = vld [vmem:[%s2120_s0 + $0x10] sm:$0xff]   ;;  %3637 = vmatprep.subr.bf16.mxu1 %v3799_v48  ;;  %s4143_s12 = smov (%p2110_p3), [#allocation23]  }
 0xaf5   : > { %3627 = vmatprep.mubr.msk.bf16.mxu0 %vm1873_vm5, %v3794_v42  ;;  %v3797_v47 = vld [vmem:[%s2120_s0 + $0x18] sm:$0xff]   ;;  %v3805_v25 = vld [vmem:[%s5336_s23] sm:$0xff]   ;;  %s2976_s17 = sshll.u32 (%p2110_p3), %s4143_s12, 4  ;;  %s2977_s17 = int_to_ptr.vmem [resolvable:$true] %s2976_s17 }
 0xaf6   : > { %3622 = vmatpush3.bf16.msra.mxu0 %v3791_v38  ;;  %v3260_v27 = vld [vmem:[%s5335_s22] ss:$0 sm:$0xff]  ;;  %s4018_s18 = scalar_lea.vmem (%p2110_p3), %s2977_s17, 16  ;;  %s4022_s6 = scalar_lea.vmem (%p2110_p3), %s2977_s17, 32 }
 0xaf7   : > { %3623 = vmatprep.subr.bf16.mxu0 %v3792_v40  ;;  %3638 = vmatpush3.bf16.msra.mxu1 %v3799_v48  ;;  %s2676_s28 = scalar_lea.vmem %s5374_s7, %s3245_s8  ;;  %p4019_p4 = scmp.ne.s32.totalorder (%p2110_p3), %s2977_s17, %s4018_s18 }
 0xaf8   : > { %3639 = vmatprep.subr.bf16.mxu1 %v3800_v49  ;;  %p4023_p5 = scmp.lt.s32.totalorder (%p2110_p3), %s2977_s17, %s2977_s17  ;;  %p4024_p6 = scmp.lt.s32.totalorder (%p2110_p3), %s4022_s6, %s4018_s18 }
 0xafa   : > { %3624 = vmatpush3.bf16.msra.mxu0 %v3792_v40  ;;  %p4025_p7 = por (%p2110_p3), %p4024_p6, %p4023_p5 }
 0xafb   : > { %3625 = vmatprep.subr.bf16.mxu0 %v3793_v43  ;;  %3640 = vmatpush3.bf16.msra.mxu1 %v3800_v49 }
 0xafc   : > { %3641 = vmatprep.subr.bf16.mxu1 %v3801_v50  ;;  %p4026_p8 = pnand (%p2110_p3), %p4025_p7, %p4019_p4 }
 0xafe   : > { %3626 = vmatpush3.bf16.msra.mxu0 %v3793_v43 }
 0xaff   : > { %3642 = vmatpush3.bf16.msra.mxu1 %v3801_v50  ;;  %3651 = vmatprep.subr.bf16.mxu0 %v3802_v58 }
 0xb00   : > { %3677 = vmatprep.subr.msk.bf16.mxu1 %vm1873_vm5, %v4976_v22 }
 0xb01   : > { %3628 = vmatmul.mubr.msk.bf16.vlgmr.msra.gmra.mxu0 %vm1873_vm5, %v3795_v44 }
 0xb02   : > { %3631 = vmatprep.mubr.msk.bf16.mxu0 %vm1873_vm5, %v3796_v45  ;;  %3652 = vmatpush3.bf16.msra.mxu0 %v3802_v58  ;;  %v2680_v58 = vld [vmem:[%s2676_s28 + $0x18] sm:$0xff] }
 0xb03   : > { %3653 = vmatprep.subr.bf16.mxu0 %v3803_v23 }
 0xb06   : > { %3654 = vmatpush3.bf16.msra.mxu0 %v3803_v23 }
 0xb07   : > { %3655 = vmatprep.subr.bf16.mxu0 %v3804_v24 }
 0xb09   : > { %3632 = vmatmul.mubr.msk.bf16.gmra.mxu0 %vm1873_vm5, %v3797_v47 }
 0xb0a   : > { %3656 = vmatpush3.bf16.msra.mxu0 %v3804_v24 }
 0xb0b   : > { %3657 = vmatprep.subr.bf16.mxu0 %v3805_v25 }
 0xb0e   : > { %3658 = vmatpush3.bf16.msra.mxu0 %v3805_v25 }
 0xbc1   : > { %v3629_v51 = vpop.f32.mrf.mxu0 }
 0xbc2   : > { %2549 = vrot.lane.b32.xlu1 %v3629_v51, %s4140_s29  ;;  %v2267_v59 = vadd.f32 %v3629_v51, %v3259_v54 }
 0xbc3   : > { %v2227_v52 = vpop.f32.mrf.mxu0 }
 0xbc4   : > { %2545 = vrot.lane.b32.xlu0 %v2227_v52, %s4140_s29  ;;  %v2265_v56 = vadd.f32 %v3259_v54, %v2227_v52  ;;  %v2275_v61 = vmax.f32 %v2267_v59, 0.0  ;;  %v2609_v52 = vsel %vm1873_vm5, %v4976_v22, 0  ;;  %v2681_v59 = vld [vmem:[%s2676_s28 + $0x20] sm:$0xff] }
 0xbc5   : > { %v3630_v55 = vpop.f32.mrf.mxu0 }
 0xbc6   : > { %v2268_v57 = vadd.f32 %v3630_v55, %v3259_v54  ;;  %2551 = vrot.lane.b32.xlu1 %v3630_v55, %s4140_s29  ;;  %v2273_v1 = vmax.f32 %v2265_v56, 0.0  ;;  %v2678_v55 = vld [vmem:[%s2676_s28 + $0x8] sm:$0xff]  ;;  %v2677_v56 = vld [vmem:[%s2676_s28] sm:$0xff] }
 0xbc7   : > { %v2230_v15 = vpop.f32.mrf.mxu0 }
 0xbc8   : > { %v2266_v62 = vadd.f32 %v3259_v54, %v2230_v15  ;;  %2547 = vrot.lane.b32.xlu0 %v2230_v15, %s4140_s29  ;;  %v2276_v63 = vmax.f32 %v2268_v57, 0.0  ;;  %v2679_v57 = vld [vmem:[%s2676_s28 + $0x10] sm:$0xff]  ;;  %v2682_v15 = vld [vmem:[%s2676_s28 + $0x28] sm:$0xff] }
 0xbc9   : > { %v3633_v0 = vpop.f32.mrf.mxu0 }
 0xbca   : > { %v2274_v2 = vmax.f32 %v2266_v62, 0.0  ;;  %v2282_v60 = vpack.c.bf16 %v2276_v63, %v2275_v61  ;;  %v2271_v37 = vadd.f32 %v3633_v0, %v3259_v54  ;;  %v2683_v62 = vld [vmem:[%s2676_s28 + $0x30] sm:$0xff]  ;;  %v2684_v63 = vld [vmem:[%s2676_s28 + $0x38] sm:$0xff] }
 0xbcb   : > { %v2243_v6 = vpop.f32.mrf.mxu0 }
 0xbcc   : > { %2553 = vrot.lane.b32.xlu0 %v2243_v6, %s4140_s29  ;;  %v2281_v7 = vpack.c.bf16 %v2274_v2, %v2273_v1  ;;  %v2269_v53 = vadd.f32 %v3259_v54, %v2243_v6  ;;  %v2279_v11 = vmax.f32 %v2271_v37, 0.0  ;;  %v3269_v1 = vld [vmem:[%s5337_s24] ss:$0 sm:$0xff] }
 0xbcd   : > { %v3634_v8 = vpop.f32.mrf.mxu0 }
 0xbce   : > { %v2272_v36 = vadd.f32 %v3634_v8, %v3259_v54  ;;  %3643 = vmatprep.mubr.msk.bf16.mxu1 %vm1873_vm5, %v2281_v7  ;;  %v2277_v9 = vmax.f32 %v2269_v53, 0.0 }
 0xbcf   : > { %v2246_v39 = vpop.f32.mrf.mxu0  ;;  %3644 = vmatmul.mubr.msk.bf16.vlgmr.msra.gmra.mxu1 %vm1873_vm5, %v2282_v60 }
 0xbd0   : > { %v2270_v46 = vadd.f32 %v3259_v54, %v2246_v39  ;;  %2557 = vrot.lane.b32.xlu0 %v3633_v0, %s4140_s29  ;;  %2555 = vrot.lane.b32.xlu1 %v2246_v39, %s4140_s29  ;;  %v2280_v3 = vmax.f32 %v2272_v36, 0.0  ;;  %v4141_v54 = vmov 0  }
 0xbd1   : > { %3668 = vmatpush3.bf16.xpose.msra.mxu1 %v2609_v52  ;;  %3789 = vset.pattern.permute.xlu1 %v4141_v54 }
 0xbd2   : > { %v2278_v10 = vmax.f32 %v2270_v46, 0.0  ;;  %v2284_v13 = vpack.c.bf16 %v2280_v3, %v2279_v11  ;;  %3788 = vset.pattern.permute.xlu0 %v4141_v54 }
 0xbd4   : > { %2559 = vrot.lane.b32.xlu1 %v3634_v8, %s4140_s29  ;;  %v2283_v12 = vpack.c.bf16 %v2278_v10, %v2277_v9  ;;  %2688 = vperm.xlu0 %3788, %v2677_v56  }
 0xbd6   : > { %3647 = vmatprep.mubr.msk.bf16.mxu1 %vm1873_vm5, %v2283_v12 }
 0xbd7   : > { %3648 = vmatmul.mubr.msk.bf16.gmra.mxu1 %vm1873_vm5, %v2284_v13 }
 0xbd8   : > { %2691 = vperm.xlu1 %3789, %v2678_v55   ;;  %2697 = vperm.xlu0 %3788, %v2680_v58  }
 0xbdc   : > { %2694 = vperm.xlu1 %3789, %v2679_v57   ;;  %2703 = vperm.xlu0 %3788, %v2682_v15  }
 0xbe0   : > { %2700 = vperm.xlu1 %3789, %v2681_v59   ;;  %2709 = vperm.xlu0 %3788, %v2684_v63  }
 0xbe4   : > { %2706 = vperm.xlu1 %3789, %v2683_v62  }
 0xc34   : > { %v2550_v61 = vpop.permute.xlu1 %2549 }
 0xc36   : > { %v2546_v0 = vpop.permute.xlu0 %2545 }
 0xc38   : > { %v2552_v3 = vpop.permute.xlu1 %2551 }
 0xc3a   : > { %v2548_v53 = vpop.permute.xlu0 %2547 }
 0xc8f   : > { %v3645_v26 = vpop.f32.mrf.mxu1 }
 0xc90   : > { %v2379_v33 = vadd.f32 %v3645_v26, %v3260_v27 }
 0xc91   : > { %v2370_v30 = vpop.f32.mrf.mxu1 }
 0xc92   : > { %v2371_v31 = vadd.f32 %v3260_v27, %v2370_v30  ;;  %v2403_v19 = vmax.f32 %v2379_v33, 0.0  ;;  %v2554_v30 = vpop.permute.xlu0 %2553 }
 0xc93   : > { %v3646_v29 = vpop.f32.mrf.mxu1 }
 0xc94   : > { %v2382_v32 = vadd.f32 %v3646_v29, %v3260_v27  ;;  %v2401_v17 = vmax.f32 %v2371_v31, 0.0  ;;  %v3278_v29 = vld [vmem:[%s5338_s25] ss:$0 sm:$0xff] }
 0xc95   : > { %v2373_v14 = vpop.f32.mrf.mxu1 }
 0xc96   : > { %v2374_v4 = vadd.f32 %v3260_v27, %v2373_v14  ;;  %v2404_v5 = vmax.f32 %v2382_v32, 0.0 }
 0xc97   : > { %v3649_v16 = vpop.f32.mrf.mxu1 }
 0xc98   : > { %v2402_v18 = vmax.f32 %v2374_v4, 0.0  ;;  %v2410_v35 = vpack.c.bf16 %v2404_v5, %v2403_v19  ;;  %v2395_v42 = vadd.f32 %v3649_v16, %v3260_v27 }
 0xc99   : > { %v2386_v20 = vpop.f32.mrf.mxu1 }
 0xc9a   : > { %v2409_v21 = vpack.c.bf16 %v2402_v18, %v2401_v17  ;;  %v2387_v40 = vadd.f32 %v3260_v27, %v2386_v20  ;;  %v2407_v49 = vmax.f32 %v2395_v42, 0.0 }
 0xc9b   : > { %v3650_v38 = vpop.f32.mrf.mxu1 }
 0xc9c   : > { %v2398_v41 = vadd.f32 %v3650_v38, %v3260_v27  ;;  %3659 = vmatprep.mubr.msk.bf16.mxu0 %vm1873_vm5, %v2409_v21  ;;  %v2405_v47 = vmax.f32 %v2387_v40, 0.0 }
 0xc9d   : > { %v2389_v43 = vpop.f32.mrf.mxu1  ;;  %3660 = vmatmul.mubr.msk.bf16.vlgmr.msra.gmra.mxu0 %vm1873_vm5, %v2410_v35 }
 0xc9e   : > { %v2390_v44 = vadd.f32 %v3260_v27, %v2389_v43  ;;  %v2408_v45 = vmax.f32 %v2398_v41, 0.0  ;;  %v2556_v27 = vpop.permute.xlu1 %2555  ;;  %v2558_v41 = vpop.permute.xlu0 %2557 }
 0xca0   : > { %v2406_v48 = vmax.f32 %v2390_v44, 0.0  ;;  %v2412_v51 = vpack.c.bf16 %v2408_v45, %v2407_v49 }
 0xca2   : > { %v2411_v50 = vpack.c.bf16 %v2406_v48, %v2405_v47  ;;  %v2560_v42 = vpop.permute.xlu1 %2559  ;;  %v5084_v15 = vpop.permute.xlu0 %2688 }
 0xca4   : > { %3663 = vmatprep.mubr.msk.bf16.mxu0 %vm1873_vm5, %v2411_v50 }
 0xca5   : > { %3664 = vmatmul.mubr.msk.bf16.gmra.mxu0 %vm1873_vm5, %v2412_v51 }
 0xca6   : > { %v5080_v58 = vpop.permute.xlu1 %2691 }
 0xd5d   : > { %v3661_v2 = vpop.f32.mrf.mxu0 }
 0xd5e   : > { %v2507_v6 = vadd.f32 %v3661_v2, %v3269_v1 }
 0xd5f   : > { %v2498_v7 = vpop.f32.mrf.mxu0 }
 0xd60   : > { %v2499_v8 = vadd.f32 %v3269_v1, %v2498_v7  ;;  %v2531_v39 = vmax.f32 %v2507_v6, 0.0 }
 0xd61   : > { %v3662_v60 = vpop.f32.mrf.mxu0 }
 0xd62   : > { %v2529_v36 = vmax.f32 %v2499_v8, 0.0  ;;  %v2510_v37 = vadd.f32 %v3662_v60, %v3269_v1  ;;  %v2571_v24 = vadd.f32 %v2550_v61, %v2531_v39  ;;  %v2698_v39 = vpop.permute.xlu0 %2697 }
 0xd63   : > { %v2501_v46 = vpop.f32.mrf.mxu0 }
 0xd64   : > { %v2532_v9 = vmax.f32 %v2510_v37, 0.0  ;;  %v2502_v10 = vadd.f32 %v3269_v1, %v2501_v46  ;;  %v2569_v12 = vadd.f32 %v2546_v0, %v2529_v36  ;;  %v2586_v17 = vadd.f32 %v3278_v29, %v2571_v24 }
 0xd65   : > { %v3665_v11 = vpop.f32.mrf.mxu0 }
 0xd66   : > { %v2572_v13 = vadd.f32 %v2552_v3, %v2532_v9  ;;  %v2530_v23 = vmax.f32 %v2502_v10, 0.0  ;;  %v2523_v25 = vadd.f32 %v3665_v11, %v3269_v1  ;;  %v2584_v4 = vadd.f32 %v3278_v29, %v2569_v12 }
 0xd67   : > { %v2514_v26 = vpop.f32.mrf.mxu0 }
 0xd68   : > { %v2570_v31 = vadd.f32 %v2548_v53, %v2530_v23  ;;  %v2515_v32 = vadd.f32 %v3269_v1, %v2514_v26  ;;  %v2587_v33 = vadd.f32 %v3278_v29, %v2572_v13  ;;  %v2535_v18 = vmax.f32 %v2523_v25, 0.0  ;;  %v2695_v53 = vpop.permute.xlu1 %2694 }
 0xd69   : > { %v3666_v14 = vpop.f32.mrf.mxu0  ;;  %v2685_v26 = vlaneseq }
 0xd6a   : > { %v2585_v5 = vadd.f32 %v3278_v29, %v2570_v31  ;;  %v2533_v16 = vmax.f32 %v2515_v32, 0.0  ;;  %v2526_v19 = vadd.f32 %v3666_v14, %v3269_v1  ;;  %v2593_v38 = vpack.c.bf16 %v2587_v33, %v2586_v17  ;;  %v2704_v14 = vpop.permute.xlu0 %2703 }
 0xd6b   : > { %v2517_v20 = vpop.f32.mrf.mxu0  ;;  %v2575_v45 = vadd.f32 %v2558_v41, %v2535_v18  ;;  %v2686_v18 = vand.u32 127, %v2685_v26 }
 0xd6c   : > { %v2518_v21 = vadd.f32 %v3269_v1, %v2517_v20  ;;  %v2592_v35 = vpack.c.bf16 %v2585_v5, %v2584_v4  ;;  %v2536_v40 = vmax.f32 %v2526_v19, 0.0  ;;  %v2573_v43 = vadd.f32 %v2554_v30, %v2533_v16 }
 0xd6d   : > { %v2590_v52 = vadd.f32 %v3278_v29, %v2575_v45  ;;  %vm2711_vm6 = vcmp.eq.s32.totalorder %v5084_v15, %v2686_v18  ;;  %vm2713_vm7 = vcmp.eq.s32.totalorder %v2695_v53, %v2686_v18  ;;  %vm2712_vm8 = vcmp.eq.s32.totalorder %v5080_v58, %v2686_v18 }
 0xd6e   : > { %v2534_v44 = vmax.f32 %v2518_v21, 0.0  ;;  %3669 = vmatprep.mubr.msk.bf16.mxu1 %vm1873_vm5, %v2592_v35  ;;  %v2576_v47 = vadd.f32 %v2560_v42, %v2536_v40  ;;  %v2588_v50 = vadd.f32 %v3278_v29, %v2573_v43  ;;  %v2710_v41 = vpop.permute.xlu0 %2709  ;;  %vm2714_vm9 = vcmp.eq.s32.totalorder %v2698_v39, %v2686_v18 }
 0xd6f   : > { %3670 = vmatmul.mubr.msk.bf16.vlgmr.msra.gmra.mxu1 %vm1873_vm5, %v2593_v38  ;;  %vm2716_vm11 = vcmp.eq.s32.totalorder %v2704_v14, %v2686_v18  ;;  %vm2718_vm13 = vcmp.eq.s32.totalorder %v2710_v41, %v2686_v18 }
 0xd70   : > { %v2574_v48 = vadd.f32 %v2556_v27, %v2534_v44  ;;  %v2591_v49 = vadd.f32 %v3278_v29, %v2576_v47  ;;  %v4142_v47 = vmov 0.0  }
 0xd72   : > { %v2589_v51 = vadd.f32 %v3278_v29, %v2574_v48  ;;  %v2595_v55 = vpack.c.bf16 %v2591_v49, %v2590_v52  ;;  %v2701_v29 = vpop.permute.xlu1 %2700  ;;  %v5128_v48 = vsel %vm2712_vm8, 1.0, %v4142_v47  ;;  %v5132_v49 = vsel %vm2711_vm6, 1.0, %v4142_v47 }
 0xd73   : > { %vm2715_vm10 = vcmp.eq.s32.totalorder %v2701_v29, %v2686_v18  ;;  %vm2968_vm8 = vcmask (%p2110_p3), 0  }
 0xd74   : > { %v2594_v54 = vpack.c.bf16 %v2589_v51, %v2588_v50  ;;  %v5135_v50 = vsel %vm2713_vm7, 1.0, %v4142_v47  ;;  %v5137_v51 = vsel %vm2714_vm9, 1.0, %v4142_v47 }
 0xd76   : > { %3673 = vmatprep.mubr.msk.bf16.mxu1 %vm1873_vm5, %v2594_v54  ;;  %v2707_v40 = vpop.permute.xlu1 %2706  ;;  %v5140_v54 = vsel %vm2715_vm10, 1.0, %v4142_v47 }
 0xd77   : > { %3674 = vmatmul.mubr.msk.bf16.gmra.mxu1 %vm1873_vm5, %v2595_v55  ;;  %vm2717_vm12 = vcmp.eq.s32.totalorder %v2707_v40, %v2686_v18  ;;  %v5142_v55 = vsel %vm2716_vm11, 1.0, %v4142_v47  ;;  %v2910_v53 = vsub.f32 1.0, %v5140_v54 }
 0xe2f   : > { %v5077_v56 = vpop.f32.mrf.mxu1 }
 0xe30   : > { %v2737_v57 = vsub.f32 0.0, %v5077_v56 }
 0xe31   : > { %v5082_v59 = vpop.f32.mrf.mxu1 }
 0xe32   : > { %v2753_v62 = vand.u32 2147483647, %v2737_v57  ;;  %v2735_v63 = vsub.f32 0.0, %v5082_v59 }
 0xe33   : > { %v5089_v0 = vpop.f32.mrf.mxu1 }
 0xe34   : > { %v2761_v1 = vsub.f32 0.0, %v2753_v62  ;;  %v2751_v2 = vand.u32 2147483647, %v2735_v63  ;;  %v2738_v61 = vsub.f32 0.0, %v5089_v0  ;;  %v5144_v62 = vsel %vm2717_vm12, 1.0, %v4142_v47 }
 0xe35   : > { %v5094_v6 = vpop.f32.mrf.mxu1  ;;  %v5161_v26 = vmax.f32 %v2735_v63, 0.0 }
 0xe36   : > { %v2771_v7 = vmul.f32 1.442695, %v2761_v1  ;;  %v2759_v8 = vsub.f32 0.0, %v2751_v2  ;;  %v2754_v60 = vand.u32 2147483647, %v2738_v61  ;;  %v2736_v36 = vsub.f32 0.0, %v5094_v6 }
 0xe37   : > { %v5099_v37 = vpop.f32.mrf.mxu1  ;;  %v5146_v1 = vsel %vm2718_vm13, 1.0, %v4142_v47  ;;  %v2906_v2 = vsub.f32 1.0, %v5132_v49 }
 0xe38   : > { %3806 = vpow2.f32 %v2771_v7  ;;  %v2767_v46 = vmul.f32 1.442695, %v2759_v8  ;;  %v2762_v3 = vsub.f32 0.0, %v2754_v60  ;;  %v2741_v9 = vsub.f32 0.0, %v5099_v37 }
 0xe39   : > { %v2752_v10 = vand.u32 2147483647, %v2736_v36  ;;  %v5104_v11 = vpop.f32.mrf.mxu1  ;;  %v2908_v7 = vsub.f32 1.0, %v5135_v50  ;;  %v2907_v8 = vsub.f32 1.0, %v5128_v48  ;;  %v2909_v60 = vsub.f32 1.0, %v5137_v51 }
 0xe3a   : > { %3808 = vpow2.f32 %v2767_v46  ;;  %v2773_v12 = vmul.f32 1.442695, %v2762_v3  ;;  %v2757_v13 = vand.u32 2147483647, %v2741_v9  ;;  %v2739_v24 = vsub.f32 0.0, %v5104_v11 }
 0xe3b   : > { %v2760_v23 = vsub.f32 0.0, %v2752_v10  ;;  %v5109_v25 = vpop.f32.mrf.mxu1  ;;  %v5171_v14 = vmax.f32 %v2736_v36, 0.0 }
 0xe3c   : > { %3810 = vpow2.f32 %v2773_v12  ;;  %v2765_v30 = vsub.f32 0.0, %v2757_v13  ;;  %v2742_v27 = vsub.f32 0.0, %v5109_v25  ;;  %v2755_v32 = vand.u32 2147483647, %v2739_v24 }
 0xe3d   : > { %v2769_v31 = vmul.f32 1.442695, %v2760_v23  ;;  %v5114_v33 = vpop.f32.mrf.mxu1  ;;  %v2745_v23 = vmax.f32 %v2737_v57, 0.0  ;;  %v5175_v57 = vmax.f32 %v2741_v9, 0.0  ;;  %v5179_v63 = vmax.f32 %v2739_v24, 0.0 }
 0xe3e   : > { %v2779_v4 = vmul.f32 1.442695, %v2765_v30  ;;  %v2758_v5 = vand.u32 2147483647, %v2742_v27  ;;  %v2740_v16 = vsub.f32 0.0, %v5114_v33  ;;  %v2763_v17 = vsub.f32 0.0, %v2755_v32 }
 0xe3f   : > { %3812 = vpow2.f32 %v2769_v31  ;;  %v5167_v32 = vmax.f32 %v2738_v61, 0.0  ;;  %v5184_v36 = vmax.f32 %v2742_v27, 0.0 }
 0xe40   : > { %3814 = vpow2.f32 %v2779_v4  ;;  %v2766_v19 = vsub.f32 0.0, %v2758_v5  ;;  %v2756_v20 = vand.u32 2147483647, %v2740_v16  ;;  %v2775_v21 = vmul.f32 1.442695, %v2763_v17 }
 0xe41   : > { %v5192_v41 = vmax.f32 %v2740_v16, 0.0 }
 0xe42   : > { %v2781_v35 = vmul.f32 1.442695, %v2766_v19  ;;  %v2764_v38 = vsub.f32 0.0, %v2756_v20  ;;  %3816 = vpow2.f32 %v2775_v21 }
 0xe44   : > { %3818 = vpow2.f32 %v2781_v35  ;;  %v2777_v42 = vmul.f32 1.442695, %v2764_v38 }
 0xe45   : > { %v5123_v43 = vpop.eup %3806 }
 0xe46   : > { %v2801_v44 = vadd.f32 1.0, %v5123_v43  ;;  %3820 = vpow2.f32 %v2777_v42  ;;  %v2804_v3 = vmul.f32 -0.5, %v5123_v43  ;;  %v2807_v31 = vand.u32 2147483647, %v5123_v43 }
 0xe47   : > { %v5126_v45 = vpop.eup %3808 }
 0xe48   : > { %3822 = vlog2.f32 %v2801_v44  ;;  %v2783_v52 = vadd.f32 1.0, %v5126_v45  ;;  %v2786_v30 = vmul.f32 -0.5, %v5126_v45  ;;  %v2805_v18 = vadd.f32 1.0, %v2804_v3 }
 0xe49   : > { %v3811_v58 = vpop.eup %3810  ;;  %v2789_v61 = vand.u32 2147483647, %v5126_v45  ;;  %vm5186_vm14 = vcmp.lt.f32.partialorder %v2807_v31, 0.0004427343 }
 0xe4a   : > { %3824 = vlog2.f32 %v2783_v52  ;;  %v2810_v15 = vadd.f32 1.0, %v3811_v58  ;;  %v2813_v5 = vmul.f32 -0.5, %v3811_v58  ;;  %v2787_v20 = vadd.f32 1.0, %v2786_v30 }
 0xe4b   : > { %v2816_v24 = vand.u32 2147483647, %v3811_v58  ;;  %v2806_v52 = vmul.f32 %v5123_v43, %v2805_v18  ;;  %vm5197_vm15 = vcmp.lt.f32.partialorder %v2789_v61, 0.0004427343 }
 0xe4c   : > { %v3813_v46 = vpop.eup %3812  ;;  %3826 = vlog2.f32 %v2810_v15  ;;  %v2814_v44 = vadd.f32 1.0, %v2813_v5 }
 0xe4d   : > { %v3815_v13 = vpop.eup %3814  ;;  %v2792_v29 = vadd.f32 1.0, %v3813_v46  ;;  %v2795_v21 = vmul.f32 -0.5, %v3813_v46  ;;  %v2798_v27 = vand.u32 2147483647, %v3813_v46  ;;  %vm5203_vm0 = vcmp.lt.f32.partialorder %v2816_v24, 0.0004427343 }
 0xe4e   : > { %v2837_v4 = vadd.f32 1.0, %v3815_v13  ;;  %v2840_v35 = vmul.f32 -0.5, %v3815_v13  ;;  %v2815_v18 = vmul.f32 %v3811_v58, %v2814_v44 }
 0xe4f   : > { %3828 = vlog2.f32 %v2792_v29  ;;  %v3817_v17 = vpop.eup %3816  ;;  %v2788_v29 = vmul.f32 %v5126_v45, %v2787_v20  ;;  %v2796_v16 = vadd.f32 1.0, %v2795_v21  ;;  %vm5207_vm1 = vcmp.lt.f32.partialorder %v2798_v27, 0.0004427343 }
 0xe50   : > { %3830 = vlog2.f32 %v2837_v4  ;;  %v2819_v38 = vadd.f32 1.0, %v3817_v17  ;;  %v2822_v47 = vmul.f32 -0.5, %v3817_v17  ;;  %v2841_v31 = vadd.f32 1.0, %v2840_v35 }
 0xe51   : > { %v3819_v19 = vpop.eup %3818  ;;  %v2843_v4 = vand.u32 2147483647, %v3815_v13  ;;  %v2825_v10 = vand.u32 2147483647, %v3817_v17  ;;  %v2797_v39 = vmul.f32 %v3813_v46, %v2796_v16 }
 0xe52   : > { %v2846_v40 = vadd.f32 1.0, %v3819_v19  ;;  %3832 = vlog2.f32 %v2819_v38  ;;  %v2849_v38 = vmul.f32 -0.5, %v3819_v19  ;;  %v2852_v21 = vand.u32 2147483647, %v3819_v19 }
 0xe53   : > { %v5194_v42 = vpop.eup %3820  ;;  %vm5214_vm3 = vcmp.lt.f32.partialorder %v2843_v4, 0.0004427343  ;;  %vm5223_vm4 = vcmp.lt.f32.partialorder %v2825_v10, 0.0004427343 }
 0xe54   : > { %3834 = vlog2.f32 %v2846_v40  ;;  %v2828_v3 = vadd.f32 1.0, %v5194_v42  ;;  %v2823_v40 = vadd.f32 1.0, %v2822_v47  ;;  %v2831_v35 = vmul.f32 -0.5, %v5194_v42 }
 0xe55   : > { %v3823_v30 = vpop.eup %3822  ;;  %v2850_v47 = vadd.f32 1.0, %v2849_v38  ;;  %vm5229_vm6 = vcmp.lt.f32.partialorder %v2852_v21, 0.0004427343 }
 0xe56   : > { %v2803_v12 = vmul.f32 0.6931472, %v3823_v30  ;;  %3836 = vlog2.f32 %v2828_v3  ;;  %v2842_v3 = vmul.f32 %v3815_v13, %v2841_v31  ;;  %v2824_v16 = vmul.f32 %v3817_v17, %v2823_v40 }
 0xe57   : > { %v3825_v43 = vpop.eup %3824 }
 0xe58   : > { %v2809_v45 = vsel %vm5186_vm14, %v2806_v52, %v2803_v12  ;;  %v2785_v20 = vmul.f32 0.6931472, %v3825_v43  ;;  %v2834_v12 = vand.u32 2147483647, %v5194_v42 }
 0xe59   : > { %v3827_v24 = vpop.eup %3826  ;;  %v2857_v30 = vadd.f32 %v2809_v45, %v2745_v23  ;;  %v2851_v45 = vmul.f32 %v3819_v19, %v2850_v47 }
 0xe5a   : > { %v2791_v44 = vsel %vm5197_vm15, %v2788_v29, %v2785_v20  ;;  %v2812_v27 = vmul.f32 0.6931472, %v3827_v24  ;;  %v2832_v29 = vadd.f32 1.0, %v2831_v35  ;;  %vm5235_vm7 = vcmp.lt.f32.partialorder %v2834_v12, 0.0004427343 }
 0xe5b   : > { %v2916_v9 = vadd.f32 %v5077_v56, %v2857_v30  ;;  %v2855_v52 = vadd.f32 %v2791_v44, %v5161_v26  ;;  %v2865_v46 = vsub.f32 0.6931472, %v2857_v30 }
 0xe5c   : > { %v3829_v13 = vpop.eup %3828  ;;  %v2818_v23 = vsel %vm5203_vm0, %v2815_v18, %v2812_v27  ;;  %v2833_v19 = vmul.f32 %v5194_v42, %v2832_v29 }
 0xe5d   : > { %v3831_v31 = vpop.eup %3830  ;;  %v3293_v4 = vadd.f32 -0.6931472, %v2916_v9  ;;  %v2914_v56 = vadd.f32 %v2855_v52, %v5082_v59  ;;  %v2858_v10 = vadd.f32 %v2818_v23, %v5167_v32  ;;  %v2794_v26 = vmul.f32 0.6931472, %v3829_v13 }
 0xe5e   : > { %v2839_v38 = vmul.f32 0.6931472, %v3831_v31  ;;  %v2863_v5 = vsub.f32 0.6931472, %v2855_v52  ;;  %v2873_v21 = vmul.f32 %v5135_v50, %v2865_v46 }
 0xe5f   : > { %v3291_v17 = vadd.f32 -0.6931472, %v2914_v56  ;;  %v2917_v18 = vadd.f32 %v5089_v0, %v2858_v10  ;;  %v2800_v40 = vsel %vm5207_vm1, %v2797_v39, %v2794_v26  ;;  %v3833_v35 = vpop.eup %3832  ;;  %v2932_v39 = vmul.f32 %v3293_v4, %v2908_v7 }
 0xe60   : > { %v2856_v59 = vadd.f32 %v2800_v40, %v5171_v14  ;;  %v2845_v32 = vsel %vm5214_vm3, %v2842_v3, %v2839_v38  ;;  %v2871_v24 = vmul.f32 %v5132_v49, %v2863_v5  ;;  %v2821_v27 = vmul.f32 0.6931472, %v3833_v35 }
 0xe61   : > { %v3835_v30 = vpop.eup %3834  ;;  %v2861_v44 = vadd.f32 %v2845_v32, %v5175_v57  ;;  %v2930_v0 = vmul.f32 %v3291_v17, %v2906_v2  ;;  %v3294_v61 = vadd.f32 -0.6931472, %v2917_v18  ;;  %v2883_v9 = vsel %vm2879_vm2, %v2873_v21, 0.0 }
 0xe62   : > { %v2915_v14 = vadd.f32 %v2856_v59, %v5094_v6  ;;  %v2848_v47 = vmul.f32 0.6931472, %v3835_v30  ;;  %v2864_v58 = vsub.f32 0.6931472, %v2856_v59  ;;  %v2827_v12 = vsel %vm5223_vm4, %v2824_v16, %v2821_v27 }
 0xe63   : > { %v3837_v3 = vpop.eup %3836  ;;  %v2920_v42 = vadd.f32 %v5099_v37, %v2861_v44  ;;  %v2880_v57 = vsel %vm2879_vm2, %v2871_v24, 0.0  ;;  %v2859_v2 = vadd.f32 %v2827_v12, %v5179_v63  ;;  %v2938_v37 = vsel %vm2879_vm2, %v2930_v0, 0.0 }
 0xe64   : > { %v3292_v49 = vadd.f32 -0.6931472, %v2915_v14  ;;  %v2854_v50 = vsel %vm5229_vm6, %v2851_v45, %v2848_v47  ;;  %v2830_v7 = vmul.f32 0.6931472, %v3837_v3  ;;  %v2872_v52 = vmul.f32 %v5128_v48, %v2864_v58 }
 0xe65   : > { %v2862_v6 = vadd.f32 %v2854_v50, %v5184_v36  ;;  %v2866_v46 = vsub.f32 0.6931472, %v2858_v10  ;;  %v2918_v43 = vadd.f32 %v2859_v2, %v5104_v11  ;;  %v2933_v63 = vmul.f32 %v3294_v61, %v2909_v60 }
 0xe66   : > { %v2836_v13 = vsel %vm5235_vm7, %v2833_v19, %v2830_v7  ;;  %v2931_v23 = vmul.f32 %v3292_v49, %v2907_v8  ;;  %v2881_v36 = vsel %vm2879_vm2, %v2872_v52, 0.0  ;;  %v2941_v15 = vsel %vm2879_vm2, %v2932_v39, 0.0 }
 0xe67   : > { %v2860_v16 = vadd.f32 %v2836_v13, %v5192_v41  ;;  %v2874_v29 = vmul.f32 %v5137_v51, %v2866_v46  ;;  %v3295_v31 = vadd.f32 -0.6931472, %v2918_v43  ;;  %v2921_v11 = vadd.f32 %v5109_v25, %v2862_v6 }
 0xe68   : > { %v2939_v4 = vsel %vm2879_vm2, %v2931_v23, 0.0  ;;  %v2882_v56 = vadd.f32 %v2881_v36, %v2880_v57  ;;  %v3297_v10 = vadd.f32 -0.6931472, %v2920_v42  ;;  %v2943_v60 = vsel %vm2879_vm2, %v2933_v63, 0.0 }
 0xe69   : > { %v2919_v48 = vadd.f32 %v2860_v16, %v5114_v33  ;;  %v2940_v8 = vadd.f32 %v2939_v4, %v2938_v37  ;;  %v2867_v41 = vsub.f32 0.6931472, %v2859_v2  ;;  %v2934_v38 = vmul.f32 %v3295_v31, %v2910_v53 }
 0xe6a   : > { %v2884_v26 = vadd.f32 %v2883_v9, %v2882_v56  ;;  %v2868_v45 = vsub.f32 0.6931472, %v2860_v16  ;;  %v2885_v5 = vsel %vm2879_vm2, %v2874_v29, 0.0  ;;  %v2869_v25 = vsub.f32 0.6931472, %v2861_v44 }
 0xe6b   : > { %v3296_v20 = vadd.f32 -0.6931472, %v2919_v48  ;;  %v2942_v51 = vadd.f32 %v2941_v15, %v2940_v8  ;;  %v3298_v17 = vadd.f32 -0.6931472, %v2921_v11  ;;  %v2875_v40 = vmul.f32 %v5140_v54, %v2867_v41 }
 0xe6c   : > { %v2886_v18 = vadd.f32 %v2885_v5, %v2884_v26  ;;  %v2876_v33 = vmul.f32 %v5142_v55, %v2868_v45  ;;  %v5391_v35 = vsub.f32 1.0, %v5142_v55  ;;  %v5392_v32 = vsub.f32 1.0, %v5144_v62 }
 0xe6d   : > { %v2944_v21 = vadd.f32 %v2943_v60, %v2942_v51  ;;  %v2870_v53 = vsub.f32 0.6931472, %v2862_v6  ;;  %v2887_v24 = vsel %vm2879_vm2, %v2875_v40, 0.0  ;;  %v2945_v30 = vsel %vm2879_vm2, %v2934_v38, 0.0 }
 0xe6e   : > { %v2935_v59 = vmul.f32 %v3296_v20, %v5391_v35  ;;  %v2936_v19 = vmul.f32 %v3297_v10, %v5392_v32  ;;  %v2889_v44 = vsel %vm2879_vm2, %v2876_v33, 0.0  ;;  %v2877_v27 = vmul.f32 %v5144_v62, %v2869_v25 }
 0xe6f   : > { %v2888_v0 = vadd.f32 %v2887_v24, %v2886_v18  ;;  %v2946_v54 = vadd.f32 %v2945_v30, %v2944_v21  ;;  %v2878_v39 = vmul.f32 %v5146_v1, %v2870_v53  ;;  %v5393_v61 = vsub.f32 1.0, %v5146_v1 }
 0xe70   : > { %v2947_v14 = vsel %vm2879_vm2, %v2935_v59, 0.0  ;;  %v2891_v3 = vsel %vm2879_vm2, %v2877_v27, 0.0  ;;  %v2949_v42 = vsel %vm2879_vm2, %v2936_v19, 0.0 }
 0xe71   : > { %v2937_v55 = vmul.f32 %v3298_v17, %v5393_v61  ;;  %v2890_v47 = vadd.f32 %v2889_v44, %v2888_v0  ;;  %v2948_v58 = vadd.f32 %v2947_v14, %v2946_v54  ;;  %v2893_v9 = vsel %vm2879_vm2, %v2878_v39, 0.0 }
 0xe73   : > { %v2892_v12 = vadd.f32 %v2891_v3, %v2890_v47  ;;  %v2950_v57 = vadd.f32 %v2949_v42, %v2948_v58  ;;  %v2951_v62 = vsel %vm2879_vm2, %v2937_v55, 0.0 }
 0xe75   : > { %v2894_v49 = vadd.f32 %v2893_v9, %v2892_v12  ;;  %v2952_v2 = vadd.f32 %v2951_v62, %v2950_v57 }
 0xe77   : > { %2895 = vadd.xlane.f32.xlu1 %v2894_v49  ;;  %2953 = vadd.xlane.f32.xlu0 %v2952_v2 }
 0xf00   : > { %v2896_v1 = vpop.xlane.xlu1 %2895  ;;  %v2954_v50 = vpop.xlane.xlu0 %2953 }
 0xf01   : > { %v2897_v7 = vrot.slane %v2896_v1, 4  ;;  %v2955_v6 = vrot.slane %v2954_v50, 4 }
 0xf03   : > { %v2898_v52 = vadd.f32 %v2897_v7, %v2896_v1  ;;  %v2956_v37 = vadd.f32 %v2955_v6, %v2954_v50 }
 0xf05   : > { %v2899_v46 = vrot.slane %v2898_v52, 2  ;;  %v2957_v43 = vrot.slane %v2956_v37, 2 }
 0xf07   : > { %v2958_v13 = vadd.f32 %v2957_v43, %v2956_v37  ;;  %v2900_v23 = vadd.f32 %v2899_v46, %v2898_v52 }
 0xf09   : > { %v2901_v63 = vrot.slane %v2900_v23, 1  ;;  %v2959_v16 = vrot.slane %v2958_v13, 1 }
 0xf0b   : > { %v2902_v36 = vadd.f32 %v2901_v63, %v2900_v23  ;;  %v2960_v15 = vadd.f32 %v2959_v16, %v2958_v13 }
 0xf0d   : > { %3678 = vpush %v2902_v36 }
 0xf0e   : > { %3680 = vpush %v2960_v15 }
 0xf3e   : > { %s3679_s4 = spop %3678 }
 0xf3f   : > { %v2904_v29 = vstv %s3679_s4  ;;  %s3681_s29 = spop %3680  ;;  %2112 = sbr.rel (!%p2110_p3) target bundleno = 2800 (0xaf0), region = 439 }
 0xf40   : > { %v2905_v31 = vadd.f32 %v4120_v34, %v2904_v29   ;;  %v2962_v11 = vstv %s3681_s29 }
 0xf41   : > { %v2963_v4 = vadd.f32 %v4116_v28, %v2962_v11  }
 0xf42   : > { %v5395_v34 = vmov %v2905_v31  ;;  %v2964_v56 = vmul.f32 (%p2110_p3), 0.0078125, %v2905_v31 }
 0xf43   : > { %v5394_v28 = vmov %v2963_v4  ;;  %v2966_v10 = vmul.f32 (%p2110_p3), 0.0011160715, %v2963_v4 }
 0xf45   :  { %v2967_v48 = vsub.f32 %v2966_v10, %v2964_v56 }
 0xf47   :  { %2969 = vst.msk [vmem:[#allocation23] sm:$0x1] %vm2968_vm8, %v2967_v48 }
 0xf48   :  { %4029 = shalt.err (!%p4026_p8)
}
 0xf49   :  { %2979 = dma.vmem_to_hbm [thread:$0]  %s2977_s17, 16, %s5339_s26, [#allocation10]  }
 0xf4a   :  { %4088 = dma.done.wait [#allocation10], 16  }
 0xf4b   :  { %4089 = vsyncadd [#allocation10], 4294967280 }
 0xf4c   :  { %2983 = vsyncpa [#allocation9], 1 }
 0xf4d   :  { %2984 = vsyncpa [#allocation12], 1 }
 0xf4e   :  { %2985 = vsyncpa [#allocation15], 1 }
 0xf4f   :  { %2986 = vsyncpa [#allocation18], 1 }
 0xf50   :  { %2987 = vsyncpa [#allocation21], 1 }
 0xf51   :  { %2988 = vsyncpa [#allocation10], 1 }
 0xf52   :  { %2989 = vsyncmov [#allocation3] }
 0xf55   :  { %s2990_s19 = vpop.sfrf %2989 }
 0xf56   :  { %p3299_p9 = scmp.ne.s32.totalorder %s2990_s19, 0 }
 0xf58   :  { %2994 = shalt.err (%p3299_p9)  }
 0xf59   :  { %2996 = vsyncmov [#allocation3 + $0x1] }
 0xf5c   :  { %s2997_s20 = vpop.sfrf %2996 }
 0xf5d   :  { %p3300_p10 = scmp.ne.s32.totalorder %s2997_s20, 0 }
 0xf5f   :  { %3001 = shalt.err (%p3300_p10)  }
 0xf60   :  { %3003 = vsyncmov [#allocation3 + $0x2] }
 0xf63   :  { %s3004_s21 = vpop.sfrf %3003 }
 0xf64   :  { %p3301_p11 = scmp.ne.s32.totalorder %s3004_s21, 0 }
 0xf66   :  { %3008 = shalt.err (%p3301_p11)  }
 0xf67   :  { %3010 = vsyncmov [#allocation3 + $0x3] }
 0xf6a   :  { %s3011_s22 = vpop.sfrf %3010 }
 0xf6b   :  { %p3302_p12 = scmp.ne.s32.totalorder %s3011_s22, 0 }
 0xf6d   :  { %3015 = shalt.err (%p3302_p12)  }

</bundles_post_ra>
